<compile_context>
chip_gen: v7x
topology: tpu7x:2x2x1
jax: 0.10.0
libtpu: 0.0.40
codegen_flags: <defaults>
</compile_context>

<pallas_src>
import numpy as np

import jax
import jax.numpy as jnp
from jax import lax
from jax.experimental import pallas as pl
from jax.experimental.pallas import tpu as pltpu

BT = 8  # images per grid step (multiple of 8; raise to 16/32 on v6e/v7x for larger M)


# -----------------------------------------------------------------------------
# Fused forward kernel (one grid step == BT batch elements)
# -----------------------------------------------------------------------------
def _fused_net_kernel(x1_ref, b1w_ref, bias1_ref, b2w_ref, bias2_ref,
                      wf1_ref, bf1_ref, wf2_ref, bf2_ref, wf3_ref, bf3_ref,
                      out_ref):
    f32 = jnp.float32
    bt = out_ref.shape[0]          # BT
    rows1 = 12 * bt                # conv1/pool1 row-quotient slab height
    rows2 = 10 * bt                # conv2/pool2 row slab height

    # ---- Stage 1: conv1 (3x3, pad 1) + ReLU + 2x2 max-pool --------------------
    # x1_ref[0, a4]: (12*BT, 150); row = r*BT + b, lanes = di*50 + padded-col.
    # B1: (150, 288); lanes of result = par*144 + s1*6 + c.
    B1 = b1w_ref[...]
    y1 = [jnp.dot(x1_ref[0, a4], B1, preferred_element_type=f32)
          for a4 in range(4)]                                  # 4 x (12*BT, 288)

    C1 = 144
    bias1 = bias1_ref[...]                                     # (1, 144), tile(b1, 24)
    # pool1 phase p (p = pool-row mod 2): max over conv rows {4r+2p, 4r+2p+1} and
    # column parities, then bias + ReLU.  p1[p][r*BT+b, s1*6+c] = pool1[b, c, 2r+p, s1].
    p1 = []
    for p in range(2):
        m = jnp.maximum(jnp.maximum(y1[2 * p][:, :C1],     y1[2 * p][:, C1:]),
                        jnp.maximum(y1[2 * p + 1][:, :C1], y1[2 * p + 1][:, C1:]))
        p1.append(jnp.maximum(m + bias1, 0.0))                 # (12*BT, 144)

    # ---- Stage 2: conv2 (5x5, no pad) + ReLU + 2x2 max-pool --------------------
    # Per conv2-row parity a2: sum of 5 dots; LHS row windows are sublane-aligned
    # slices (offsets are multiples of BT).  Result lanes = par*120 + s2*12 + co.
    B2 = [b2w_ref[di] for di in range(5)]                      # 5 x (144, 240)
    y2 = []
    for a2 in range(2):
        acc = None
        for di in range(5):
            u = a2 + di
            lhs = p1[u % 2][(u // 2) * bt:(u // 2) * bt + rows2, :]   # (10*BT, 144)
            part = jnp.dot(lhs, B2[di], preferred_element_type=f32)
            acc = part if acc is None else acc + part
        y2.append(acc)                                         # (10*BT, 240)

    C2 = 120
    bias2 = bias2_ref[...]                                     # (1, 120), tile(b2, 10)
    m2 = jnp.maximum(jnp.maximum(y2[0][:, :C2], y2[0][:, C2:]),
                     jnp.maximum(y2[1][:, :C2], y2[1][:, C2:]))
    p2 = jnp.maximum(m2 + bias2, 0.0)                          # (10*BT, 120)
    # p2[m*BT+b, s2*12+co] = relu(maxpool(conv2))[b, co, m, s2]

    # ---- Stage 3: flatten (NCHW order baked into Wf1) + fc1/fc2/fc3 ------------
    # Lane-pad feature groups to 128 and concatenate at 128-aligned offsets;
    # no VMEM scratch round trip, no masked partial-lane stores.
    p2p = jnp.concatenate([p2, jnp.zeros((rows2, 8), f32)], axis=1)     # (10*BT, 128)
    feat = jnp.concatenate(
        [p2p[m * bt:(m + 1) * bt, :] for m in range(10)], axis=1)       # (BT, 1280)

    h = jnp.dot(feat, wf1_ref[...], preferred_element_type=f32) + bf1_ref[...]
    h = jnp.maximum(h, 0.0)
    h = jnp.dot(h, wf2_ref[...], preferred_element_type=f32) + bf2_ref[...]
    h = jnp.maximum(h, 0.0)
    out_ref[...] = jnp.dot(h, wf3_ref[...], preferred_element_type=f32) + bf3_ref[...]


# -----------------------------------------------------------------------------
# Wrapper: input prep (XLA, raw image only) + fused pallas_call
# -----------------------------------------------------------------------------
def net_forward(x_nchw, kp):
    N, C, H, W = x_nchw.shape
    assert (C, H, W) == (1, 48, 48), "Net expects (N, 1, 48, 48) inputs"

    Np = ((N + BT - 1) // BT) * BT
    x = x_nchw[:, 0, :, :]
    if Np != N:
        x = jnp.concatenate([x, jnp.zeros((Np - N, 48, 48), x.dtype)], axis=0)

    xpad = jnp.pad(x, ((0, 0), (1, 1), (1, 1)))                 # (Np, 50, 50)
    # mod-4 row phases: ph[n, u, r, :] = xpad[n, 4r+u, :]
    ph = jnp.stack([xpad[:, u::4, :][:, :12, :] for u in range(6)], axis=1)  # (Np,6,12,50)
    # conv1 LHS with the 3 kernel rows pre-concatenated along K:
    #   X1[n, a4, r, di*50+j] = xpad[n, 4r+a4+di, j]
    X1 = jnp.stack([jnp.concatenate([ph[:, a4 + di] for di in range(3)], axis=-1)
                    for a4 in range(4)], axis=1)                # (Np, 4, 12, 150)
    G = Np // BT
    # Interleave batch as the minor row index: row = r*BT + b.
    X1 = X1.reshape(G, BT, 4, 12, 150).transpose(0, 2, 3, 1, 4).reshape(G, 4, 12 * BT, 150)

    full2 = lambda g: (0, 0)
    full3 = lambda g: (0, 0, 0)

    out = pl.pallas_call(
        _fused_net_kernel,
        out_shape=jax.ShapeDtypeStruct((Np, 9), jnp.float32),
        grid=(G,),
        in_specs=[
            pl.BlockSpec((1, 4, 12 * BT, 150), lambda g: (g, 0, 0, 0)),  # per-step input
            pl.BlockSpec((150, 288), full2),                             # conv1 banded W
            pl.BlockSpec((1, 144), full2),                               # conv1 bias tile
            pl.BlockSpec((5, 144, 240), full3),                          # conv2 banded W
            pl.BlockSpec((1, 120), full2),                               # conv2 bias tile
            pl.BlockSpec((1280, 300), full2),                            # fc1 (permuted)
            pl.BlockSpec((1, 300), full2),
            pl.BlockSpec((300, 60), full2),                              # fc2
            pl.BlockSpec((1, 60), full2),
            pl.BlockSpec((60, 9), full2),                                # fc3
            pl.BlockSpec((1, 9), full2),
        ],
        out_specs=pl.BlockSpec((BT, 9), lambda g: (g, 0)),
        compiler_params=pltpu.CompilerParams(
            dimension_semantics=("parallel",)),
    )(X1, kp["B1"], kp["bias1"], kp["B2"], kp["bias2"],
      kp["Wf1"], kp["bf1"], kp["Wf2"], kp["bf2"], kp["Wf3"], kp["bf3"])

    return out[:N]


# -----------------------------------------------------------------------------
# Parameters: PyTorch-layout weights + one-time preprocessing into kernel layout
# -----------------------------------------------------------------------------
def init_torch_style_params(key):
    ks = jax.random.split(key, 10)

    def nrm(k, shape, scale):
        return (scale * jax.random.normal(k, shape)).astype(jnp.float32)

    return dict(
        conv1_w=nrm(ks[0], (6, 1, 3, 3), 0.25), conv1_b=nrm(ks[1], (6,), 0.1),
        conv2_w=nrm(ks[2], (12, 6, 5, 5), 0.08), conv2_b=nrm(ks[3], (12,), 0.1),
        fc1_w=nrm(ks[4], (300, 1200), 0.03), fc1_b=nrm(ks[5], (300,), 0.05),
        fc2_w=nrm(ks[6], (60, 300), 0.06), fc2_b=nrm(ks[7], (60,), 0.05),
        fc3_w=nrm(ks[8], (9, 60), 0.13), fc3_b=nrm(ks[9], (9,), 0.05),
    )


def build_kernel_params(tp):
    w1 = np.asarray(tp["conv1_w"]); b1 = np.asarray(tp["conv1_b"])
    w2 = np.asarray(tp["conv2_w"]); b2 = np.asarray(tp["conv2_b"])
    fw1 = np.asarray(tp["fc1_w"]); fb1 = np.asarray(tp["fc1_b"])
    fw2 = np.asarray(tp["fc2_w"]); fb2 = np.asarray(tp["fc2_b"])
    fw3 = np.asarray(tp["fc3_w"]); fb3 = np.asarray(tp["fc3_b"])

    # conv1: banded weight, kernel rows concatenated along K, column parities folded
    # along N:  B1[di*50 + jj, par*144 + s1*6 + c] = w1[c, 0, di, jj - (2*s1 + par)].
    B1 = np.zeros((3, 2, 50, 144), np.float32)
    for di in range(3):
        for par in range(2):
            for s1 in range(24):
                for dj in range(3):
                    jj = 2 * s1 + par + dj
                    B1[di, par, jj, s1 * 6:(s1 + 1) * 6] = w1[:, 0, di, dj]
    B1 = np.ascontiguousarray(B1.transpose(0, 2, 1, 3).reshape(150, 288))
    bias1 = np.tile(b1, 24)[None, :].astype(np.float32)

    # conv2: one (144, 240) banded matrix per kernel row di, parities folded along N:
    #   B2[di, s1*6 + ci, par*120 + s2*12 + co] = w2[co, ci, di, s1 - (2*s2 + par)].
    B2 = np.zeros((5, 2, 144, 120), np.float32)
    for di in range(5):
        for par in range(2):
            for s2 in range(10):
                for dj in range(5):
                    s1 = 2 * s2 + par + dj
                    B2[di, par, s1 * 6:(s1 + 1) * 6,
                       s2 * 12:(s2 + 1) * 12] = w2[:, :, di, dj].T
    B2 = np.ascontiguousarray(B2.transpose(0, 2, 1, 3).reshape(5, 144, 240))
    bias2 = np.tile(b2, 10)[None, :].astype(np.float32)

    # fc1 with the NCHW flatten permutation baked in; kernel feature index is
    # g = m*128 + s2*12 + co  <->  PyTorch index co*100 + m*10 + s2 (8 zero pad
    # lanes per 128-lane group keep the fc input lane-aligned).
    t = fw1.T.reshape(12, 10, 10, 300).transpose(1, 2, 0, 3).reshape(10, 120, 300)
    Wf1 = np.zeros((10, 128, 300), np.float32)
    Wf1[:, :120, :] = t
    Wf1 = Wf1.reshape(1280, 300)

    return dict(
        B1=jnp.asarray(B1), bias1=jnp.asarray(bias1),
        B2=jnp.asarray(B2), bias2=jnp.asarray(bias2),
        Wf1=jnp.asarray(Wf1), bf1=jnp.asarray(fb1[None, :]),
        Wf2=jnp.asarray(np.ascontiguousarray(fw2.T)), bf2=jnp.asarray(fb2[None, :]),
        Wf3=jnp.asarray(np.ascontiguousarray(fw3.T)), bf3=jnp.asarray(fb3[None, :]),
    )


# -----------------------------------------------------------------------------
# Pure-XLA reference (for correctness check only)
# -----------------------------------------------------------------------------
def reference_forward(x, tp):
    dn = ("NCHW", "OIHW", "NCHW")
    y = lax.conv_general_dilated(x, tp["conv1_w"], (1, 1), ((1, 1), (1, 1)),
                                 dimension_numbers=dn)
    y = jax.nn.relu(y + tp["conv1_b"][None, :, None, None])
    y = lax.reduce_window(y, -jnp.inf, lax.max, (1, 1, 2, 2), (1, 1, 2, 2), "VALID")
    y = lax.conv_general_dilated(y, tp["conv2_w"], (1, 1), ((0, 0), (0, 0)),
                                 dimension_numbers=dn)
    y = jax.nn.relu(y + tp["conv2_b"][None, :, None, None])
    y = lax.reduce_window(y, -jnp.inf, lax.max, (1, 1, 2, 2), (1, 1, 2, 2), "VALID")
    y = y.reshape(y.shape[0], -1)
    y = jax.nn.relu(y @ tp["fc1_w"].T + tp["fc1_b"])
    y = jax.nn.relu(y @ tp["fc2_w"].T + tp["fc2_b"])
    return y @ tp["fc3_w"].T + tp["fc3_b"]


if __name__ == "__main__":
    # fc1 expects 12*10*10 features => 48x48 single-channel input.
    # N = 16 with BT = 8 gives a 2-step "parallel" grid (both v7x TensorCores busy).
    key = jax.random.PRNGKey(0)
    x = jax.random.normal(key, (16, 1, 48, 48), dtype=jnp.float32)

    tparams = init_torch_style_params(jax.random.PRNGKey(42))
    kparams = build_kernel_params(tparams)

    fwd = jax.jit(net_forward)
    out = fwd(x, kparams)
    jax.block_until_ready(out)

    assert out.shape == (16, 9), out.shape
    assert out.dtype == jnp.float32, out.dtype

    ref = reference_forward(x, tparams)
    err = float(jnp.max(jnp.abs(out - ref)))
    assert err < 1e-3, f"max abs error vs XLA reference: {err}"

    print("KERNEL_OK")
</pallas_src>

<mosaic_0001>
module attributes {stable_mosaic.version = 11 : i64} {
  func.func @_fused_net_kernel(%arg0: i32, %arg1: memref<1x4x96x150xf32, #tpu.memory_space<vmem>>, %arg2: memref<150x288xf32, #tpu.memory_space<vmem>>, %arg3: memref<1x144xf32, #tpu.memory_space<vmem>>, %arg4: memref<5x144x240xf32, #tpu.memory_space<vmem>>, %arg5: memref<1x120xf32, #tpu.memory_space<vmem>>, %arg6: memref<1280x300xf32, #tpu.memory_space<vmem>>, %arg7: memref<1x300xf32, #tpu.memory_space<vmem>>, %arg8: memref<300x60xf32, #tpu.memory_space<vmem>>, %arg9: memref<1x60xf32, #tpu.memory_space<vmem>>, %arg10: memref<60x9xf32, #tpu.memory_space<vmem>>, %arg11: memref<1x9xf32, #tpu.memory_space<vmem>>, %arg12: memref<8x9xf32, #tpu.memory_space<vmem>>) attributes {dimension_semantics = [#tpu.dimension_semantics<parallel>], iteration_bounds = array<i64: 2>, scalar_prefetch = 0 : i64, scratch_operands = 0 : i64, tpu.core_type = #tpu.core_type<tc>, window_params = [{transform_indices = @transform_0, window_bounds = array<i64: 1, 4, 96, 150>}, {pipeline_mode = #tpu.pipeline_mode<synchronous>, transform_indices = @transform_1, window_bounds = array<i64: 150, 288>}, {pipeline_mode = #tpu.pipeline_mode<synchronous>, transform_indices = @transform_2, window_bounds = array<i64: 1, 144>}, {pipeline_mode = #tpu.pipeline_mode<synchronous>, transform_indices = @transform_3, window_bounds = array<i64: 5, 144, 240>}, {pipeline_mode = #tpu.pipeline_mode<synchronous>, transform_indices = @transform_4, window_bounds = array<i64: 1, 120>}, {pipeline_mode = #tpu.pipeline_mode<synchronous>, transform_indices = @transform_5, window_bounds = array<i64: 1280, 300>}, {pipeline_mode = #tpu.pipeline_mode<synchronous>, transform_indices = @transform_6, window_bounds = array<i64: 1, 300>}, {pipeline_mode = #tpu.pipeline_mode<synchronous>, transform_indices = @transform_7, window_bounds = array<i64: 300, 60>}, {pipeline_mode = #tpu.pipeline_mode<synchronous>, transform_indices = @transform_8, window_bounds = array<i64: 1, 60>}, {pipeline_mode = #tpu.pipeline_mode<synchronous>, transform_indices = @transform_9, window_bounds = array<i64: 60, 9>}, {pipeline_mode = #tpu.pipeline_mode<synchronous>, transform_indices = @transform_10, window_bounds = array<i64: 1, 9>}, {transform_indices = @transform_11, window_bounds = array<i64: 8, 9>}]} {
    %c0 = arith.constant 0 : index
    %c0_0 = arith.constant 0 : index
    %0 = vector.load %arg2[%c0, %c0_0] : memref<150x288xf32, #tpu.memory_space<vmem>>, vector<150x288xf32>
    %c0_1 = arith.constant 0 : index
    %c0_2 = arith.constant 0 : index
    %c0_3 = arith.constant 0 : index
    %c0_4 = arith.constant 0 : index
    %1 = vector.load %arg1[%c0_1, %c0_2, %c0_3, %c0_4] : memref<1x4x96x150xf32, #tpu.memory_space<vmem>>, vector<1x1x96x150xf32>
    %2 = vector.shape_cast %1 : vector<1x1x96x150xf32> to vector<96x150xf32>
    %cst = arith.constant dense<0.000000e+00> : vector<96x288xf32>
    %3 = tpu.matmul %2, %0, %cst {dimension_numbers = #tpu.dot_dimension_numbers<[1], [0], [0], [1], [0, 0, 1, 1], [], []>} : vector<96x150xf32>, vector<150x288xf32>, vector<96x288xf32> -> vector<96x288xf32>
    %c0_5 = arith.constant 0 : index
    %c1 = arith.constant 1 : index
    %c0_6 = arith.constant 0 : index
    %c0_7 = arith.constant 0 : index
    %4 = vector.load %arg1[%c0_5, %c1, %c0_6, %c0_7] : memref<1x4x96x150xf32, #tpu.memory_space<vmem>>, vector<1x1x96x150xf32>
    %5 = vector.shape_cast %4 : vector<1x1x96x150xf32> to vector<96x150xf32>
    %cst_8 = arith.constant dense<0.000000e+00> : vector<96x288xf32>
    %6 = tpu.matmul %5, %0, %cst_8 {dimension_numbers = #tpu.dot_dimension_numbers<[1], [0], [0], [1], [0, 0, 1, 1], [], []>} : vector<96x150xf32>, vector<150x288xf32>, vector<96x288xf32> -> vector<96x288xf32>
    %c0_9 = arith.constant 0 : index
    %c2 = arith.constant 2 : index
    %c0_10 = arith.constant 0 : index
    %c0_11 = arith.constant 0 : index
    %7 = vector.load %arg1[%c0_9, %c2, %c0_10, %c0_11] : memref<1x4x96x150xf32, #tpu.memory_space<vmem>>, vector<1x1x96x150xf32>
    %8 = vector.shape_cast %7 : vector<1x1x96x150xf32> to vector<96x150xf32>
    %cst_12 = arith.constant dense<0.000000e+00> : vector<96x288xf32>
    %9 = tpu.matmul %8, %0, %cst_12 {dimension_numbers = #tpu.dot_dimension_numbers<[1], [0], [0], [1], [0, 0, 1, 1], [], []>} : vector<96x150xf32>, vector<150x288xf32>, vector<96x288xf32> -> vector<96x288xf32>
    %c0_13 = arith.constant 0 : index
    %c3 = arith.constant 3 : index
    %c0_14 = arith.constant 0 : index
    %c0_15 = arith.constant 0 : index
    %10 = vector.load %arg1[%c0_13, %c3, %c0_14, %c0_15] : memref<1x4x96x150xf32, #tpu.memory_space<vmem>>, vector<1x1x96x150xf32>
    %11 = vector.shape_cast %10 : vector<1x1x96x150xf32> to vector<96x150xf32>
    %cst_16 = arith.constant dense<0.000000e+00> : vector<96x288xf32>
    %12 = tpu.matmul %11, %0, %cst_16 {dimension_numbers = #tpu.dot_dimension_numbers<[1], [0], [0], [1], [0, 0, 1, 1], [], []>} : vector<96x150xf32>, vector<150x288xf32>, vector<96x288xf32> -> vector<96x288xf32>
    %c0_17 = arith.constant 0 : index
    %c0_18 = arith.constant 0 : index
    %13 = vector.load %arg3[%c0_17, %c0_18] : memref<1x144xf32, #tpu.memory_space<vmem>>, vector<1x144xf32>
    %14 = vector.extract_strided_slice %3 {offsets = [0, 0], sizes = [96, 144], strides = [1, 1]} : vector<96x288xf32> to vector<96x144xf32>
    %15 = vector.extract_strided_slice %3 {offsets = [0, 144], sizes = [96, 144], strides = [1, 1]} : vector<96x288xf32> to vector<96x144xf32>
    %16 = arith.maximumf %14, %15 : vector<96x144xf32>
    %17 = vector.extract_strided_slice %6 {offsets = [0, 0], sizes = [96, 144], strides = [1, 1]} : vector<96x288xf32> to vector<96x144xf32>
    %18 = vector.extract_strided_slice %6 {offsets = [0, 144], sizes = [96, 144], strides = [1, 1]} : vector<96x288xf32> to vector<96x144xf32>
    %19 = arith.maximumf %17, %18 : vector<96x144xf32>
    %20 = arith.maximumf %16, %19 : vector<96x144xf32>
    %21 = vector.broadcast %13 : vector<1x144xf32> to vector<96x144xf32>
    %22 = arith.addf %20, %21 : vector<96x144xf32>
    %cst_19 = arith.constant 0.000000e+00 : f32
    %23 = vector.broadcast %cst_19 : f32 to vector<96x144xf32>
    %24 = arith.maximumf %22, %23 : vector<96x144xf32>
    %25 = vector.extract_strided_slice %9 {offsets = [0, 0], sizes = [96, 144], strides = [1, 1]} : vector<96x288xf32> to vector<96x144xf32>
    %26 = vector.extract_strided_slice %9 {offsets = [0, 144], sizes = [96, 144], strides = [1, 1]} : vector<96x288xf32> to vector<96x144xf32>
    %27 = arith.maximumf %25, %26 : vector<96x144xf32>
    %28 = vector.extract_strided_slice %12 {offsets = [0, 0], sizes = [96, 144], strides = [1, 1]} : vector<96x288xf32> to vector<96x144xf32>
    %29 = vector.extract_strided_slice %12 {offsets = [0, 144], sizes = [96, 144], strides = [1, 1]} : vector<96x288xf32> to vector<96x144xf32>
    %30 = arith.maximumf %28, %29 : vector<96x144xf32>
    %31 = arith.maximumf %27, %30 : vector<96x144xf32>
    %32 = vector.broadcast %13 : vector<1x144xf32> to vector<96x144xf32>
    %33 = arith.addf %31, %32 : vector<96x144xf32>
    %cst_20 = arith.constant 0.000000e+00 : f32
    %34 = vector.broadcast %cst_20 : f32 to vector<96x144xf32>
    %35 = arith.maximumf %33, %34 : vector<96x144xf32>
    %c0_21 = arith.constant 0 : index
    %c0_22 = arith.constant 0 : index
    %c0_23 = arith.constant 0 : index
    %36 = vector.load %arg4[%c0_21, %c0_22, %c0_23] : memref<5x144x240xf32, #tpu.memory_space<vmem>>, vector<1x144x240xf32>
    %37 = vector.shape_cast %36 : vector<1x144x240xf32> to vector<144x240xf32>
    %c1_24 = arith.constant 1 : index
    %c0_25 = arith.constant 0 : index
    %c0_26 = arith.constant 0 : index
    %38 = vector.load %arg4[%c1_24, %c0_25, %c0_26] : memref<5x144x240xf32, #tpu.memory_space<vmem>>, vector<1x144x240xf32>
    %39 = vector.shape_cast %38 : vector<1x144x240xf32> to vector<144x240xf32>
    %c2_27 = arith.constant 2 : index
    %c0_28 = arith.constant 0 : index
    %c0_29 = arith.constant 0 : index
    %40 = vector.load %arg4[%c2_27, %c0_28, %c0_29] : memref<5x144x240xf32, #tpu.memory_space<vmem>>, vector<1x144x240xf32>
    %41 = vector.shape_cast %40 : vector<1x144x240xf32> to vector<144x240xf32>
    %c3_30 = arith.constant 3 : index
    %c0_31 = arith.constant 0 : index
    %c0_32 = arith.constant 0 : index
    %42 = vector.load %arg4[%c3_30, %c0_31, %c0_32] : memref<5x144x240xf32, #tpu.memory_space<vmem>>, vector<1x144x240xf32>
    %43 = vector.shape_cast %42 : vector<1x144x240xf32> to vector<144x240xf32>
    %c4 = arith.constant 4 : index
    %c0_33 = arith.constant 0 : index
    %c0_34 = arith.constant 0 : index
    %44 = vector.load %arg4[%c4, %c0_33, %c0_34] : memref<5x144x240xf32, #tpu.memory_space<vmem>>, vector<1x144x240xf32>
    %45 = vector.shape_cast %44 : vector<1x144x240xf32> to vector<144x240xf32>
    %46 = vector.extract_strided_slice %24 {offsets = [0, 0], sizes = [80, 144], strides = [1, 1]} : vector<96x144xf32> to vector<80x144xf32>
    %cst_35 = arith.constant dense<0.000000e+00> : vector<80x240xf32>
    %47 = tpu.matmul %46, %37, %cst_35 {dimension_numbers = #tpu.dot_dimension_numbers<[1], [0], [0], [1], [0, 0, 1, 1], [], []>} : vector<80x144xf32>, vector<144x240xf32>, vector<80x240xf32> -> vector<80x240xf32>
    %48 = vector.extract_strided_slice %35 {offsets = [0, 0], sizes = [80, 144], strides = [1, 1]} : vector<96x144xf32> to vector<80x144xf32>
    %cst_36 = arith.constant dense<0.000000e+00> : vector<80x240xf32>
    %49 = tpu.matmul %48, %39, %cst_36 {dimension_numbers = #tpu.dot_dimension_numbers<[1], [0], [0], [1], [0, 0, 1, 1], [], []>} : vector<80x144xf32>, vector<144x240xf32>, vector<80x240xf32> -> vector<80x240xf32>
    %50 = arith.addf %47, %49 : vector<80x240xf32>
    %51 = vector.extract_strided_slice %24 {offsets = [8, 0], sizes = [80, 144], strides = [1, 1]} : vector<96x144xf32> to vector<80x144xf32>
    %cst_37 = arith.constant dense<0.000000e+00> : vector<80x240xf32>
    %52 = tpu.matmul %51, %41, %cst_37 {dimension_numbers = #tpu.dot_dimension_numbers<[1], [0], [0], [1], [0, 0, 1, 1], [], []>} : vector<80x144xf32>, vector<144x240xf32>, vector<80x240xf32> -> vector<80x240xf32>
    %53 = arith.addf %50, %52 : vector<80x240xf32>
    %54 = vector.extract_strided_slice %35 {offsets = [8, 0], sizes = [80, 144], strides = [1, 1]} : vector<96x144xf32> to vector<80x144xf32>
    %cst_38 = arith.constant dense<0.000000e+00> : vector<80x240xf32>
    %55 = tpu.matmul %54, %43, %cst_38 {dimension_numbers = #tpu.dot_dimension_numbers<[1], [0], [0], [1], [0, 0, 1, 1], [], []>} : vector<80x144xf32>, vector<144x240xf32>, vector<80x240xf32> -> vector<80x240xf32>
    %56 = arith.addf %53, %55 : vector<80x240xf32>
    %57 = vector.extract_strided_slice %24 {offsets = [16, 0], sizes = [80, 144], strides = [1, 1]} : vector<96x144xf32> to vector<80x144xf32>
    %cst_39 = arith.constant dense<0.000000e+00> : vector<80x240xf32>
    %58 = tpu.matmul %57, %45, %cst_39 {dimension_numbers = #tpu.dot_dimension_numbers<[1], [0], [0], [1], [0, 0, 1, 1], [], []>} : vector<80x144xf32>, vector<144x240xf32>, vector<80x240xf32> -> vector<80x240xf32>
    %59 = arith.addf %56, %58 : vector<80x240xf32>
    %60 = vector.extract_strided_slice %35 {offsets = [0, 0], sizes = [80, 144], strides = [1, 1]} : vector<96x144xf32> to vector<80x144xf32>
    %cst_40 = arith.constant dense<0.000000e+00> : vector<80x240xf32>
    %61 = tpu.matmul %60, %37, %cst_40 {dimension_numbers = #tpu.dot_dimension_numbers<[1], [0], [0], [1], [0, 0, 1, 1], [], []>} : vector<80x144xf32>, vector<144x240xf32>, vector<80x240xf32> -> vector<80x240xf32>
    %62 = vector.extract_strided_slice %24 {offsets = [8, 0], sizes = [80, 144], strides = [1, 1]} : vector<96x144xf32> to vector<80x144xf32>
    %cst_41 = arith.constant dense<0.000000e+00> : vector<80x240xf32>
    %63 = tpu.matmul %62, %39, %cst_41 {dimension_numbers = #tpu.dot_dimension_numbers<[1], [0], [0], [1], [0, 0, 1, 1], [], []>} : vector<80x144xf32>, vector<144x240xf32>, vector<80x240xf32> -> vector<80x240xf32>
    %64 = arith.addf %61, %63 : vector<80x240xf32>
    %65 = vector.extract_strided_slice %35 {offsets = [8, 0], sizes = [80, 144], strides = [1, 1]} : vector<96x144xf32> to vector<80x144xf32>
    %cst_42 = arith.constant dense<0.000000e+00> : vector<80x240xf32>
    %66 = tpu.matmul %65, %41, %cst_42 {dimension_numbers = #tpu.dot_dimension_numbers<[1], [0], [0], [1], [0, 0, 1, 1], [], []>} : vector<80x144xf32>, vector<144x240xf32>, vector<80x240xf32> -> vector<80x240xf32>
    %67 = arith.addf %64, %66 : vector<80x240xf32>
    %68 = vector.extract_strided_slice %24 {offsets = [16, 0], sizes = [80, 144], strides = [1, 1]} : vector<96x144xf32> to vector<80x144xf32>
    %cst_43 = arith.constant dense<0.000000e+00> : vector<80x240xf32>
    %69 = tpu.matmul %68, %43, %cst_43 {dimension_numbers = #tpu.dot_dimension_numbers<[1], [0], [0], [1], [0, 0, 1, 1], [], []>} : vector<80x144xf32>, vector<144x240xf32>, vector<80x240xf32> -> vector<80x240xf32>
    %70 = arith.addf %67, %69 : vector<80x240xf32>
    %71 = vector.extract_strided_slice %35 {offsets = [16, 0], sizes = [80, 144], strides = [1, 1]} : vector<96x144xf32> to vector<80x144xf32>
    %cst_44 = arith.constant dense<0.000000e+00> : vector<80x240xf32>
    %72 = tpu.matmul %71, %45, %cst_44 {dimension_numbers = #tpu.dot_dimension_numbers<[1], [0], [0], [1], [0, 0, 1, 1], [], []>} : vector<80x144xf32>, vector<144x240xf32>, vector<80x240xf32> -> vector<80x240xf32>
    %73 = arith.addf %70, %72 : vector<80x240xf32>
    %c0_45 = arith.constant 0 : index
    %c0_46 = arith.constant 0 : index
    %74 = vector.load %arg5[%c0_45, %c0_46] : memref<1x120xf32, #tpu.memory_space<vmem>>, vector<1x120xf32>
    %75 = vector.extract_strided_slice %59 {offsets = [0, 0], sizes = [80, 120], strides = [1, 1]} : vector<80x240xf32> to vector<80x120xf32>
    %76 = vector.extract_strided_slice %59 {offsets = [0, 120], sizes = [80, 120], strides = [1, 1]} : vector<80x240xf32> to vector<80x120xf32>
    %77 = arith.maximumf %75, %76 : vector<80x120xf32>
    %78 = vector.extract_strided_slice %73 {offsets = [0, 0], sizes = [80, 120], strides = [1, 1]} : vector<80x240xf32> to vector<80x120xf32>
    %79 = vector.extract_strided_slice %73 {offsets = [0, 120], sizes = [80, 120], strides = [1, 1]} : vector<80x240xf32> to vector<80x120xf32>
    %80 = arith.maximumf %78, %79 : vector<80x120xf32>
    %81 = arith.maximumf %77, %80 : vector<80x120xf32>
    %82 = vector.broadcast %74 : vector<1x120xf32> to vector<80x120xf32>
    %83 = arith.addf %81, %82 : vector<80x120xf32>
    %cst_47 = arith.constant 0.000000e+00 : f32
    %84 = vector.broadcast %cst_47 : f32 to vector<80x120xf32>
    %85 = arith.maximumf %83, %84 : vector<80x120xf32>
    %cst_48 = arith.constant 0.000000e+00 : f32
    %86 = vector.broadcast %cst_48 : f32 to vector<80x8xf32>
    %87 = tpu.concatenate %85, %86 in 1 : vector<80x120xf32>, vector<80x8xf32> -> vector<80x128xf32>
    %88 = vector.extract_strided_slice %87 {offsets = [0, 0], sizes = [8, 128], strides = [1, 1]} : vector<80x128xf32> to vector<8x128xf32>
    %89 = vector.extract_strided_slice %87 {offsets = [8, 0], sizes = [8, 128], strides = [1, 1]} : vector<80x128xf32> to vector<8x128xf32>
    %90 = vector.extract_strided_slice %87 {offsets = [16, 0], sizes = [8, 128], strides = [1, 1]} : vector<80x128xf32> to vector<8x128xf32>
    %91 = vector.extract_strided_slice %87 {offsets = [24, 0], sizes = [8, 128], strides = [1, 1]} : vector<80x128xf32> to vector<8x128xf32>
    %92 = vector.extract_strided_slice %87 {offsets = [32, 0], sizes = [8, 128], strides = [1, 1]} : vector<80x128xf32> to vector<8x128xf32>
    %93 = vector.extract_strided_slice %87 {offsets = [40, 0], sizes = [8, 128], strides = [1, 1]} : vector<80x128xf32> to vector<8x128xf32>
    %94 = vector.extract_strided_slice %87 {offsets = [48, 0], sizes = [8, 128], strides = [1, 1]} : vector<80x128xf32> to vector<8x128xf32>
    %95 = vector.extract_strided_slice %87 {offsets = [56, 0], sizes = [8, 128], strides = [1, 1]} : vector<80x128xf32> to vector<8x128xf32>
    %96 = vector.extract_strided_slice %87 {offsets = [64, 0], sizes = [8, 128], strides = [1, 1]} : vector<80x128xf32> to vector<8x128xf32>
    %97 = vector.extract_strided_slice %87 {offsets = [72, 0], sizes = [8, 128], strides = [1, 1]} : vector<80x128xf32> to vector<8x128xf32>
    %98 = tpu.concatenate %88, %89, %90, %91, %92, %93, %94, %95, %96, %97 in 1 : vector<8x128xf32>, vector<8x128xf32>, vector<8x128xf32>, vector<8x128xf32>, vector<8x128xf32>, vector<8x128xf32>, vector<8x128xf32>, vector<8x128xf32>, vector<8x128xf32>, vector<8x128xf32> -> vector<8x1280xf32>
    %c0_49 = arith.constant 0 : index
    %c0_50 = arith.constant 0 : index
    %99 = vector.load %arg6[%c0_49, %c0_50] : memref<1280x300xf32, #tpu.memory_space<vmem>>, vector<1280x300xf32>
    %cst_51 = arith.constant dense<0.000000e+00> : vector<8x300xf32>
    %100 = tpu.matmul %98, %99, %cst_51 {dimension_numbers = #tpu.dot_dimension_numbers<[1], [0], [0], [1], [0, 0, 1, 1], [], []>} : vector<8x1280xf32>, vector<1280x300xf32>, vector<8x300xf32> -> vector<8x300xf32>
    %c0_52 = arith.constant 0 : index
    %c0_53 = arith.constant 0 : index
    %101 = vector.load %arg7[%c0_52, %c0_53] : memref<1x300xf32, #tpu.memory_space<vmem>>, vector<1x300xf32>
    %102 = vector.broadcast %101 : vector<1x300xf32> to vector<8x300xf32>
    %103 = arith.addf %100, %102 : vector<8x300xf32>
    %cst_54 = arith.constant 0.000000e+00 : f32
    %104 = vector.broadcast %cst_54 : f32 to vector<8x300xf32>
    %105 = arith.maximumf %103, %104 : vector<8x300xf32>
    %c0_55 = arith.constant 0 : index
    %c0_56 = arith.constant 0 : index
    %106 = vector.load %arg8[%c0_55, %c0_56] : memref<300x60xf32, #tpu.memory_space<vmem>>, vector<300x60xf32>
    %cst_57 = arith.constant dense<0.000000e+00> : vector<8x60xf32>
    %107 = tpu.matmul %105, %106, %cst_57 {dimension_numbers = #tpu.dot_dimension_numbers<[1], [0], [0], [1], [0, 0, 1, 1], [], []>} : vector<8x300xf32>, vector<300x60xf32>, vector<8x60xf32> -> vector<8x60xf32>
    %c0_58 = arith.constant 0 : index
    %c0_59 = arith.constant 0 : index
    %108 = vector.load %arg9[%c0_58, %c0_59] : memref<1x60xf32, #tpu.memory_space<vmem>>, vector<1x60xf32>
    %109 = vector.broadcast %108 : vector<1x60xf32> to vector<8x60xf32>
    %110 = arith.addf %107, %109 : vector<8x60xf32>
    %cst_60 = arith.constant 0.000000e+00 : f32
    %111 = vector.broadcast %cst_60 : f32 to vector<8x60xf32>
    %112 = arith.maximumf %110, %111 : vector<8x60xf32>
    %c0_61 = arith.constant 0 : index
    %c0_62 = arith.constant 0 : index
    %113 = vector.load %arg10[%c0_61, %c0_62] : memref<60x9xf32, #tpu.memory_space<vmem>>, vector<60x9xf32>
    %cst_63 = arith.constant dense<0.000000e+00> : vector<8x9xf32>
    %114 = tpu.matmul %112, %113, %cst_63 {dimension_numbers = #tpu.dot_dimension_numbers<[1], [0], [0], [1], [0, 0, 1, 1], [], []>} : vector<8x60xf32>, vector<60x9xf32>, vector<8x9xf32> -> vector<8x9xf32>
    %c0_64 = arith.constant 0 : index
    %c0_65 = arith.constant 0 : index
    %115 = vector.load %arg11[%c0_64, %c0_65] : memref<1x9xf32, #tpu.memory_space<vmem>>, vector<1x9xf32>
    %116 = vector.broadcast %115 : vector<1x9xf32> to vector<8x9xf32>
    %117 = arith.addf %114, %116 : vector<8x9xf32>
    %c0_66 = arith.constant 0 : index
    %c0_67 = arith.constant 0 : index
    %118 = vector.load %arg12[%c0_66, %c0_67] : memref<8x9xf32, #tpu.memory_space<vmem>>, vector<8x9xf32>
    tpu.vector_store %arg12[%c0_66, %c0_67], %117 {strides = array<i32>} : memref<8x9xf32, #tpu.memory_space<vmem>>, vector<8x9xf32>,
    return
  }
  func.func @transform_0(%arg0: i32) -> (i32, i32, i32, i32) {
    %c0_i32 = arith.constant 0 : i32
    %c0_i32_0 = arith.constant 0 : i32
    %c0_i32_1 = arith.constant 0 : i32
    %c0_i32_2 = arith.constant 0 : i32
    return %arg0, %c0_i32, %c0_i32_0, %c0_i32_1 : i32, i32, i32, i32
  }
  func.func @transform_1(%arg0: i32) -> (i32, i32) {
    %c0_i32 = arith.constant 0 : i32
    %c0_i32_0 = arith.constant 0 : i32
    %c0_i32_1 = arith.constant 0 : i32
    return %c0_i32, %c0_i32_0 : i32, i32
  }
  func.func @transform_2(%arg0: i32) -> (i32, i32) {
    %c0_i32 = arith.constant 0 : i32
    %c0_i32_0 = arith.constant 0 : i32
    %c0_i32_1 = arith.constant 0 : i32
    return %c0_i32, %c0_i32_0 : i32, i32
  }
  func.func @transform_3(%arg0: i32) -> (i32, i32, i32) {
    %c0_i32 = arith.constant 0 : i32
    %c0_i32_0 = arith.constant 0 : i32
    %c0_i32_1 = arith.constant 0 : i32
    %c0_i32_2 = arith.constant 0 : i32
    return %c0_i32, %c0_i32_0, %c0_i32_1 : i32, i32, i32
  }
  func.func @transform_4(%arg0: i32) -> (i32, i32) {
    %c0_i32 = arith.constant 0 : i32
    %c0_i32_0 = arith.constant 0 : i32
    %c0_i32_1 = arith.constant 0 : i32
    return %c0_i32, %c0_i32_0 : i32, i32
  }
  func.func @transform_5(%arg0: i32) -> (i32, i32) {
    %c0_i32 = arith.constant 0 : i32
    %c0_i32_0 = arith.constant 0 : i32
    %c0_i32_1 = arith.constant 0 : i32
    return %c0_i32, %c0_i32_0 : i32, i32
  }
  func.func @transform_6(%arg0: i32) -> (i32, i32) {
    %c0_i32 = arith.constant 0 : i32
    %c0_i32_0 = arith.constant 0 : i32
    %c0_i32_1 = arith.constant 0 : i32
    return %c0_i32, %c0_i32_0 : i32, i32
  }
  func.func @transform_7(%arg0: i32) -> (i32, i32) {
    %c0_i32 = arith.constant 0 : i32
    %c0_i32_0 = arith.constant 0 : i32
    %c0_i32_1 = arith.constant 0 : i32
    return %c0_i32, %c0_i32_0 : i32, i32
  }
  func.func @transform_8(%arg0: i32) -> (i32, i32) {
    %c0_i32 = arith.constant 0 : i32
    %c0_i32_0 = arith.constant 0 : i32
    %c0_i32_1 = arith.constant 0 : i32
    return %c0_i32, %c0_i32_0 : i32, i32
  }
  func.func @transform_9(%arg0: i32) -> (i32, i32) {
    %c0_i32 = arith.constant 0 : i32
    %c0_i32_0 = arith.constant 0 : i32
    %c0_i32_1 = arith.constant 0 : i32
    return %c0_i32, %c0_i32_0 : i32, i32
  }
  func.func @transform_10(%arg0: i32) -> (i32, i32) {
    %c0_i32 = arith.constant 0 : i32
    %c0_i32_0 = arith.constant 0 : i32
    %c0_i32_1 = arith.constant 0 : i32
    return %c0_i32, %c0_i32_0 : i32, i32
  }
  func.func @transform_11(%arg0: i32) -> (i32, i32) {
    %c0_i32 = arith.constant 0 : i32
    %c0_i32_0 = arith.constant 0 : i32
    return %arg0, %c0_i32 : i32, i32
  }
}

</mosaic_0001>

<bundles_post_ra>
// kernel: net_forward.1
= control target key start
LH: loop header
LB: loop body
LE: loop exit
PB: predicated region body
PF: predicated region fallthrough
CT: control target
= control target key end

     0   :  { %16 = vsyncpa [#allocation3], 0  ;;  %s13014_s0 = inlined_call_operand.vmem [shape: f32[2,4,96,150], index: 0, kind: input, shape index: {}]   ;;  %s13015_s1 = inlined_call_operand.vmem [shape: f32[150,288], index: 1, kind: input, shape index: {}]   ;;  %s13016_s2 = inlined_call_operand.vmem [shape: f32[1,144], index: 2, kind: input, shape index: {}]   ;;  %s13017_s3 = inlined_call_operand.vmem [shape: f32[5,144,240], index: 3, kind: input, shape index: {}]   ;;  %s13018_s4 = inlined_call_operand.vmem [shape: f32[1,120], index: 4, kind: input, shape index: {}]   ;;  %s13019_s5 = inlined_call_operand.vmem [shape: f32[1280,300], index: 5, kind: input, shape index: {}]   ;;  %s13020_s6 = inlined_call_operand.vmem [shape: f32[1,300], index: 6, kind: input, shape index: {}]   ;;  %s13021_s7 = inlined_call_operand.vmem [shape: f32[300,60], index: 7, kind: input, shape index: {}]   ;;  %s13022_s8 = inlined_call_operand.vmem [shape: f32[1,60], index: 8, kind: input, shape index: {}]   ;;  %s13023_s9 = inlined_call_operand.vmem [shape: f32[60,9], index: 9, kind: input, shape index: {}]   ;;  %s13024_s10 = inlined_call_operand.vmem [shape: f32[1,9], index: 10, kind: input, shape index: {}]   ;;  %s13025_s11 = inlined_call_operand.hbm [shape: f32[16,9], index: 11, kind: output, shape index: {}]  }
   0x1   :  { %18 = vsyncpa [#allocation3 + $0x1], 0  ;;  %s8067_s17 = smov 0   ;;  %s8069_s18 = smov 0  }
   0x2   :  { %s8071_s19 = smov 0   ;;  %s8073_s20 = smov 0  }
   0x3 LB: > { %13143 = sst [smem:[#allocation5_spill]] %s7994_s19  ;;  %s8088_s21 = sadd.s32 4294967295, %s7998_s20   ;;  %s7998_s20 = sphi %s8073_s20, %s13420_s20   ;;  %s7994_s19 = sphi %s8071_s19, %s13417_s19   ;;  %s7990_s18 = sphi %s8069_s18, %s13419_s18   ;;  %s7986_s17 = sphi %s8067_s17, %s13418_s17  }
   0x4   : > { %s5851_s22 = sadd.s32 4294967294, %s7998_s20   ;;  %s8092_s23 = sadd.s32 1, %s7998_s20  }
   0x5   : > { %s267_s24 = sadd.s32 1, %s7994_s19  ;;  %s264_s25 = ssub.s32 %s7998_s20, %s8092_s23 }
   0x6   : > { %p277_p0 = scmp.ne.s32.totalorder %s7994_s19, %s7990_s18  ;;  %p265_p1 = scmp.eq.s32.totalorder %s264_s25, 0 }
   0x7   : > { %p278_p2 = scmp.eq.s32.totalorder %s8088_s21, 1  ;;  %p283_p3 = scmp.ne.s32.totalorder %s7990_s18, %s7986_s17 }
   0x8   : > { %p284_p4 = scmp.eq.s32.totalorder %s5851_s22, 1  ;;  %p5854_p7 = scmp.ge.s32.totalorder %s7998_s20, 1 }
   0x9   : > { %s8103_s26 = scalar_select %p265_p1, %s7994_s19, %s267_s24  }
   0xa   : > { %p8105_p5 = por %p278_p2, %p277_p0  ;;  %p8109_p6 = por %p284_p4, %p283_p3 }
   0xb   : > { %13144 = sst [smem:[#allocation6_spill]] %s8103_s26  ;;  %p340_p8 = scmp.lt.s32.totalorder %s7998_s20, 3 }
   0xd   : > { %p341_p9 = pnand %p5854_p7, %p340_p8 }
   0xf   : > { %344 = sbr.rel (%p341_p9) target bundleno = 2026 (0x7ea), region = 64 }
  0x16   : > { %v386_v0 = vld [vmem:[%s13015_s1 + $0x8] sm:$0xff]  ;;  %v389_v1 = vld [vmem:[%s13015_s1 + $0x20] sm:$0xff]  ;;  %p380_p10 = scmp.lt.s32.totalorder %s8088_s21, 1  ;;  %v388_v4 = vld [vmem:[%s13015_s1 + $0x18] sm:$0xff]  ;;  %vm466_vm0 = vcmask 179200   ;;  %vm503_vm1 = vcmask 1045504  }
  0x17   : > { %v385_v2 = vld [vmem:[%s13015_s1] sm:$0xff]  ;;  %v8125_v3 = vpack.c.bf16 %v389_v1, %v386_v0  ;;  %v392_v5 = vld [vmem:[%s13015_s1 + $0x38] sm:$0xff]  ;;  %v395_v6 = vld [vmem:[%s13015_s1 + $0x50] sm:$0xff]  ;;  %vm1817_vm2 = vcmask 916480   ;;  %vm2613_vm3 = vcmask 130048   ;;  %s8003_s19 = smov 8  }
  0x18   : > { %v8136_v7 = vpack.c.bf16 %v388_v4, %v385_v2  ;;  %v8138_v8 = vpack.c.bf16 %v395_v6, %v392_v5  ;;  %v391_v9 = vld [vmem:[%s13015_s1 + $0x30] sm:$0xff]  ;;  %v394_v10 = vld [vmem:[%s13015_s1 + $0x48] sm:$0xff]  ;;  %s381_s24 = scalar_select %p380_p10, %s8088_s21, 1  ;;  %v401_v12 = vld [vmem:[%s13015_s1 + $0x80] sm:$0xff]  ;;  %v13028_v2 = vmov 0.0|0.0   ;;  %vm4117_vm4 = vcmask 64512  }
  0x19   : > { %v398_v11 = vld [vmem:[%s13015_s1 + $0x68] sm:$0xff]  ;;  %6573 = vmatprep.subr.bf16.mxu1 %v8125_v3  ;;  %6636 = vmatprep.subr.bf16.mxu0 %v8125_v3  ;;  %v8156_v13 = vpack.c.bf16 %v394_v10, %v391_v9  ;;  %v397_v15 = vld [vmem:[%s13015_s1 + $0x60] sm:$0xff]  ;;  %v400_v16 = vld [vmem:[%s13015_s1 + $0x78] sm:$0xff]  ;;  %vm4274_vm5 = vcmask 982016   ;;  %vm8004_vm6 = vmmov 0   ;;  %vm5539_vm7 = vcmask 1043456  }
  0x1a   : > { %6575 = vmatpush1.bf16.msra.mxu1 %v8136_v7  ;;  %6638 = vmatpush1.bf16.msra.mxu0 %v8136_v7  ;;  %v8160_v14 = vpack.c.bf16 %v401_v12, %v398_v11  ;;  %s7889_s15 = smul.u32 768, %s381_s24  ;;  %v404_v17 = vld [vmem:[%s13015_s1 + $0x98] sm:$0xff]  ;;  %v407_v18 = vld [vmem:[%s13015_s1 + $0xb0] sm:$0xff]  ;;  %v8176_v19 = vpack.c.bf16 %v400_v16, %v397_v15  ;;  %v406_v22 = vld [vmem:[%s13015_s1 + $0xa8] sm:$0xff]  ;;  %vm8005_vm8 = vmmov 1   ;;  %vm5535_vm10 = vcmask 359424  }
  0x1b   : > { %6577 = vmatprep.subr.bf16.mxu1 %v8138_v8  ;;  %6640 = vmatprep.subr.bf16.mxu0 %v8138_v8  ;;  %v8180_v20 = vpack.c.bf16 %v407_v18, %v404_v17  ;;  %v403_v21 = vld [vmem:[%s13015_s1 + $0x90] sm:$0xff]  ;;  %v410_v23 = vld [vmem:[%s13015_s1 + $0xc8] sm:$0xff]  ;;  %v413_v24 = vld [vmem:[%s13015_s1 + $0xe0] sm:$0xff]  ;;  %vm5699_vm11 = vcmask 490496   ;;  %s377_s14 = sand.u32 1, %s7990_s18   ;;  %s6309_s29 = sshll.u32 %s8088_s21, 7 }
  0x1c   : > { %s8192_s22 = scalar_lea.vmem %s13014_s0, %s7889_s15  ;;  %v8201_v25 = vpack.c.bf16 %v406_v22, %v403_v21  ;;  %v8208_v27 = vpack.c.bf16 %v413_v24, %v410_v23  ;;  %v409_v28 = vld [vmem:[%s13015_s1 + $0xc0] sm:$0xff]  ;;  %v412_v29 = vld [vmem:[%s13015_s1 + $0xd8] sm:$0xff]  ;;  %v419_v31 = vld [vmem:[%s13015_s1 + $0x110] sm:$0xff]  ;;  %vm5776_vm12 = vcmask 72704   ;;  %s12972_s30 = scalar_lea.hbm %s13025_s11, %s6309_s29 }
  0x1d   : > { %v8205_v26 = vld [vmem:[%s8192_s22 + $0x8] sm:$0xff]  ;;  %v416_v30 = vld [vmem:[%s13015_s1 + $0xf8] sm:$0xff]  ;;  %v8231_v33 = vpack.c.bf16 %v412_v29, %v409_v28  ;;  %v415_v35 = vld [vmem:[%s13015_s1 + $0xf0] sm:$0xff]  ;;  %s5779_s12 = scalar_lea.sflag [#allocation3], %s377_s14  ;;  %s8006_s21 = smov [#allocation2]  }
  0x1e   : > { %6579 = vmatpush1.bf16.msra.mxu1 %v8156_v13  ;;  %6642 = vmatpush1.bf16.msra.mxu0 %v8156_v13  ;;  %v8226_v32 = vld [vmem:[%s8192_s22 + $0xc8] sm:$0xff]  ;;  %v8235_v34 = vpack.c.bf16 %v419_v31, %v416_v30  ;;  %v425_v38 = vld [vmem:[%s13015_s1 + $0x140] sm:$0xff]  ;;  %v424_v42 = vld [vmem:[%s13015_s1 + $0x138] sm:$0xff] }
  0x1f   : > { %6581 = vmatprep.subr.bf16.mxu1 %v8160_v14  ;;  %6644 = vmatprep.subr.bf16.mxu0 %v8160_v14  ;;  %v418_v36 = vld [vmem:[%s13015_s1 + $0x108] sm:$0xff]  ;;  %v421_v41 = vld [vmem:[%s13015_s1 + $0x120] sm:$0xff]  ;;  %v428_v43 = vld [vmem:[%s13015_s1 + $0x158] sm:$0xff] }
  0x20   : > { %5859 = vmatprep.mubr.msk.f32.mxu1 %vm466_vm0, %v8205_v26  ;;  %5910 = vmatprep.mubr.msk.f32.mxu0 %vm466_vm0, %v8226_v32  ;;  %v422_v37 = vld [vmem:[%s13015_s1 + $0x128] sm:$0xff]  ;;  %v8251_v39 = vpack.c.bf16 %v418_v36, %v415_v35  ;;  %v431_v44 = vld [vmem:[%s13015_s1 + $0x170] sm:$0xff]  ;;  %v8271_v45 = vpack.c.bf16 %v424_v42, %v421_v41  ;;  %v437_v50 = vld [vmem:[%s13015_s1 + $0x1a0] sm:$0xff] }
  0x21   : > { %v8255_v40 = vpack.c.bf16 %v425_v38, %v422_v37  ;;  %v8275_v46 = vpack.c.bf16 %v431_v44, %v428_v43  ;;  %v427_v47 = vld [vmem:[%s13015_s1 + $0x150] sm:$0xff]  ;;  %v430_v48 = vld [vmem:[%s13015_s1 + $0x168] sm:$0xff]  ;;  %v433_v53 = vld [vmem:[%s13015_s1 + $0x180] sm:$0xff] }
  0x22   : > { %6583 = vmatpush1.bf16.msra.mxu1 %v8176_v19  ;;  %6646 = vmatpush1.bf16.msra.mxu0 %v8176_v19  ;;  %v434_v49 = vld [vmem:[%s13015_s1 + $0x188] sm:$0xff]  ;;  %v8291_v51 = vpack.c.bf16 %v430_v48, %v427_v47  ;;  %v436_v54 = vld [vmem:[%s13015_s1 + $0x198] sm:$0xff]  ;;  %v387_v57 = vld [vmem:[%s13015_s1 + $0x10] sm:$0xff] }
  0x23   : > { %6585 = vmatprep.subr.bf16.mxu1 %v8180_v20  ;;  %6648 = vmatprep.subr.bf16.mxu0 %v8180_v20  ;;  %v8295_v52 = vpack.c.bf16 %v437_v50, %v434_v49  ;;  %v8305_v55 = vpack.c.bf16 %v436_v54, %v433_v53  ;;  %v8313_v56 = vld [vmem:[%s13015_s1 + $0x1b8] sm:$0x3f]  ;;  %v390_v58 = vld [vmem:[%s13015_s1 + $0x28] sm:$0xff]  ;;  %v8328_v59 = vld [vmem:[%s13015_s1 + $0x1b0] sm:$0x3f] }
  0x24   : > { %v8333_v60 = vld [vmem:[%s8192_s22] sm:$0xff]  ;;  %v8335_v61 = vpack.c.bf16 %v390_v58, %v387_v57  ;;  %v8338_v62 = vld [vmem:[%s8192_s22 + $0x18] sm:$0xff]  ;;  %v8362_v5 = vld [vmem:[%s8192_s22 + $0x10] sm:$0xff] }
  0x25   : > { %v393_v63 = vld [vmem:[%s13015_s1 + $0x40] sm:$0xff]  ;;  %v396_v0 = vld [vmem:[%s13015_s1 + $0x58] sm:$0xff]  ;;  %v8369_v9 = vld [vmem:[%s8192_s22 + $0x28] sm:$0xff] }
  0x26   : > { %6587 = vmatpush1.bf16.msra.mxu1 %v8201_v25  ;;  %6650 = vmatpush1.bf16.msra.mxu0 %v8201_v25  ;;  %v8351_v1 = vld [vmem:[%s8192_s22 + $0xc0] sm:$0xff]  ;;  %v8356_v4 = vld [vmem:[%s8192_s22 + $0xd8] sm:$0xff]  ;;  %v8364_v6 = vpack.c.bf16 %v396_v0, %v393_v63  ;;  %v399_v10 = vld [vmem:[%s13015_s1 + $0x70] sm:$0xff] }
  0x27   : > { %6589 = vmatprep.subr.bf16.mxu1 %v8208_v27  ;;  %6652 = vmatprep.subr.bf16.mxu0 %v8208_v27  ;;  %v402_v11 = vld [vmem:[%s13015_s1 + $0x88] sm:$0xff]  ;;  %v8380_v12 = vld [vmem:[%s8192_s22 + $0xd0] sm:$0xff]  ;;  %v8392_v16 = vld [vmem:[%s8192_s22 + $0x20] sm:$0xff] }
  0x28   : > { %v8385_v15 = vld [vmem:[%s8192_s22 + $0xe8] sm:$0xff]  ;;  %v8394_v17 = vpack.c.bf16 %v402_v11, %v399_v10  ;;  %v8399_v18 = vld [vmem:[%s8192_s22 + $0x38] sm:$0xff]  ;;  %v405_v21 = vld [vmem:[%s13015_s1 + $0xa0] sm:$0xff] }
  0x29   : > { %v408_v22 = vld [vmem:[%s13015_s1 + $0xb8] sm:$0xff]  ;;  %v8410_v23 = vld [vmem:[%s8192_s22 + $0xe0] sm:$0xff]  ;;  %v8422_v28 = vld [vmem:[%s8192_s22 + $0x30] sm:$0xff] }
  0x2a   : > { %6591 = vmatpush1.bf16.msra.mxu1 %v8231_v33  ;;  %6654 = vmatpush1.bf16.msra.mxu0 %v8231_v33  ;;  %13147 = vst [vmem:[#allocation7_spill] sm:$0xff] %v8410_v23  ;;  %v8415_v24 = vld [vmem:[%s8192_s22 + $0xf8] sm:$0xff]  ;;  %v8424_v29 = vpack.c.bf16 %v408_v22, %v405_v21  ;;  %v8428_v30 = vld [vmem:[%s8192_s22 + $0x48] sm:$0xff]  ;;  %v411_v31 = vld [vmem:[%s13015_s1 + $0xd0] sm:$0xff] }
  0x2b   : > { %6593 = vmatprep.subr.bf16.mxu1 %v8235_v34  ;;  %6656 = vmatprep.subr.bf16.mxu0 %v8235_v34  ;;  %13148 = vst [vmem:[#allocation8_spill] sm:$0xff] %v8415_v24  ;;  %v414_v35 = vld [vmem:[%s13015_s1 + $0xe8] sm:$0xff]  ;;  %v8440_v36 = vld [vmem:[%s8192_s22 + $0xf0] sm:$0xff]  ;;  %v8451_v38 = vld [vmem:[%s8192_s22 + $0x40] sm:$0xff] }
  0x2c   : > { %13149 = vst [vmem:[#allocation9_spill] sm:$0xff] %v8440_v36  ;;  %v8445_v37 = vld [vmem:[%s8192_s22 + $0x108] sm:$0xff]  ;;  %v8454_v41 = vpack.c.bf16 %v414_v35, %v411_v31  ;;  %v8457_v42 = vld [vmem:[%s8192_s22 + $0x58] sm:$0xff]  ;;  %v417_v43 = vld [vmem:[%s13015_s1 + $0x100] sm:$0xff] }
  0x2d   : > { %13150 = vst [vmem:[#allocation10_spill] sm:$0xff] %v8445_v37  ;;  %v420_v44 = vld [vmem:[%s13015_s1 + $0x118] sm:$0xff]  ;;  %v8470_v47 = vld [vmem:[%s8192_s22 + $0x100] sm:$0xff]  ;;  %v8481_v49 = vld [vmem:[%s8192_s22 + $0x50] sm:$0xff] }
  0x2e   : > { %6595 = vmatpush1.bf16.msra.mxu1 %v8251_v39  ;;  %6658 = vmatpush1.bf16.msra.mxu0 %v8251_v39  ;;  %13151 = vst [vmem:[#allocation11_spill] sm:$0xff] %v8470_v47  ;;  %v8475_v48 = vld [vmem:[%s8192_s22 + $0x118] sm:$0xff]  ;;  %v8484_v50 = vpack.c.bf16 %v420_v44, %v417_v43  ;;  %v8487_v53 = vld [vmem:[%s8192_s22 + $0x68] sm:$0xff]  ;;  %v423_v54 = vld [vmem:[%s13015_s1 + $0x130] sm:$0xff] }
  0x2f   : > { %6597 = vmatprep.subr.bf16.mxu1 %v8255_v40  ;;  %6660 = vmatprep.subr.bf16.mxu0 %v8255_v40  ;;  %13152 = vst [vmem:[#allocation12_spill] sm:$0xff] %v8475_v48  ;;  %v426_v57 = vld [vmem:[%s13015_s1 + $0x148] sm:$0xff]  ;;  %v8500_v58 = vld [vmem:[%s8192_s22 + $0x110] sm:$0xff]  ;;  %v8511_v0 = vld [vmem:[%s8192_s22 + $0x60] sm:$0xff] }
  0x30   : > { %13153 = vst [vmem:[#allocation13_spill] sm:$0xff] %v8500_v58  ;;  %v8505_v63 = vld [vmem:[%s8192_s22 + $0x128] sm:$0xff]  ;;  %v8514_v10 = vpack.c.bf16 %v426_v57, %v423_v54  ;;  %v8517_v11 = vld [vmem:[%s8192_s22 + $0x78] sm:$0xff]  ;;  %v429_v21 = vld [vmem:[%s13015_s1 + $0x160] sm:$0xff] }
  0x31   : > { %13154 = vst [vmem:[#allocation14_spill] sm:$0xff] %v8505_v63  ;;  %v432_v22 = vld [vmem:[%s13015_s1 + $0x178] sm:$0xff]  ;;  %v8530_v31 = vld [vmem:[%s8192_s22 + $0x120] sm:$0xff]  ;;  %v8541_v43 = vld [vmem:[%s8192_s22 + $0x70] sm:$0xff] }
  0x32   : > { %6599 = vmatpush1.bf16.msra.mxu1 %v8271_v45  ;;  %6662 = vmatpush1.bf16.msra.mxu0 %v8271_v45  ;;  %13155 = vst [vmem:[#allocation15_spill] sm:$0xff] %v8530_v31  ;;  %v8535_v35 = vld [vmem:[%s8192_s22 + $0x138] sm:$0xff]  ;;  %v8544_v44 = vpack.c.bf16 %v432_v22, %v429_v21  ;;  %v8547_v54 = vld [vmem:[%s8192_s22 + $0x88] sm:$0xff]  ;;  %v435_v57 = vld [vmem:[%s13015_s1 + $0x190] sm:$0xff] }
  0x33   : > { %6601 = vmatprep.subr.bf16.mxu1 %v8275_v46  ;;  %6664 = vmatprep.subr.bf16.mxu0 %v8275_v46  ;;  %13156 = vst [vmem:[#allocation16_spill] sm:$0xff] %v8535_v35  ;;  %v8560_v21 = vld [vmem:[%s8192_s22 + $0x130] sm:$0xff]  ;;  %v8565_v22 = vld [vmem:[%s8192_s22 + $0x148] sm:$0xff]  ;;  %vm12923_vm9 = vmpackc.low %vm5539_vm7, %vm8005_vm8 }
  0x34   : > { %13157 = vst [vmem:[#allocation17_spill] sm:$0xff] %v8560_v21  ;;  %13158 = vst [vmem:[#allocation18_spill] sm:$0xff] %v8565_v22 }
  0x36   : > { %6603 = vmatpush1.bf16.msra.mxu1 %v8291_v51  ;;  %6666 = vmatpush1.bf16.msra.mxu0 %v8291_v51 }
  0x37   : > { %6605 = vmatprep.subr.bf16.mxu1 %v8295_v52  ;;  %6668 = vmatprep.subr.bf16.mxu0 %v8295_v52 }
  0x3a   : > { %6607 = vmatpush1.bf16.msra.mxu1 %v8305_v55  ;;  %6670 = vmatpush1.bf16.msra.mxu0 %v8305_v55 }
  0x3b   : > { %5857 = vmatprep.subr.msk.mxu1 %vm503_vm1, %v8313_v56  ;;  %5908 = vmatprep.subr.msk.mxu0 %vm503_vm1, %v8313_v56 }
  0x3e   : > { %5858 = vmatpush1.msk.msra.mxu1 %vm503_vm1, %v8328_v59  ;;  %5909 = vmatpush1.msk.msra.mxu0 %vm503_vm1, %v8328_v59 }
  0x3f   : > { %578 = vmatmul.mubr.f32.vlgmr.msra.gmra.mrb[0].mxu1 %v8333_v60  ;;  %6608 = vmatprep.subr.bf16.mxu1 %v13028_v2 }
  0x40   : > { %6610 = vmatpush1.bf16.msra.mxu1 %v8335_v61  ;;  %5860 = vmatprep.mubr.msk.f32.mxu1 %vm466_vm0, %v8338_v62 }
  0x41   : > { %901 = vmatmul.mubr.f32.vlgmr.msra.gmra.mrb[0].mxu0 %v8351_v1  ;;  %6611 = vmatprep.subr.bf16.mxu1 %v13028_v2 }
  0x42   : > { %5911 = vmatprep.mubr.msk.f32.mxu0 %vm466_vm0, %v8356_v4  ;;  %6699 = vmatprep.subr.bf16.mxu0 %v8125_v3 }
  0x43   : > { %584 = vmatmul.mubr.f32.gmra.mrb[2].mxu1 %v8362_v5  ;;  %6701 = vmatpush1.bf16.msra.mxu0 %v8136_v7 }
  0x44   : > { %6613 = vmatpush1.bf16.msra.mxu1 %v8364_v6  ;;  %5861 = vmatprep.mubr.msk.f32.mxu1 %vm466_vm0, %v8369_v9 }
  0x45   : > { %907 = vmatmul.mubr.f32.gmra.mrb[2].mxu0 %v8380_v12  ;;  %6614 = vmatprep.subr.bf16.mxu1 %v13028_v2 }
  0x46   : > { %5912 = vmatprep.mubr.msk.f32.mxu0 %vm466_vm0, %v8385_v15  ;;  %6703 = vmatprep.subr.bf16.mxu0 %v8138_v8 }
  0x47   : > { %590 = vmatmul.mubr.f32.gmra.mrb[4].mxu1 %v8392_v16  ;;  %6705 = vmatpush1.bf16.msra.mxu0 %v8156_v13 }
  0x48   : > { %5862 = vmatprep.mubr.msk.f32.mxu1 %vm466_vm0, %v8399_v18  ;;  %6616 = vmatpush1.bf16.msra.mxu1 %v8394_v17 }
  0x49   : > { %913 = vmatmul.mubr.f32.gmra.mrb[4].mxu0 %v8410_v23  ;;  %6617 = vmatprep.subr.bf16.mxu1 %v13028_v2  ;;  %v8658_v23 = vld [vmem:[%s8192_s22 + $0x188] sm:$0xff] }
  0x4a   : > { %5913 = vmatprep.mubr.msk.f32.mxu0 %vm466_vm0, %v8415_v24  ;;  %6707 = vmatprep.subr.bf16.mxu0 %v8160_v14  ;;  %v8640_v24 = vld [vmem:[%s8192_s22 + $0x178] sm:$0xff] }
  0x4b   : > { %596 = vmatmul.mubr.f32.gmra.mrb[6].mxu1 %v8422_v28  ;;  %6709 = vmatpush1.bf16.msra.mxu0 %v8176_v19  ;;  %13164 = vst [vmem:[#allocation23_spill] sm:$0xff] %v8640_v24 }
  0x4c   : > { %5863 = vmatprep.mubr.msk.f32.mxu1 %vm466_vm0, %v8428_v30  ;;  %6619 = vmatpush1.bf16.msra.mxu1 %v8424_v29 }
  0x4d   : > { %6620 = vmatprep.subr.bf16.mxu1 %v13028_v2  ;;  %919 = vmatmul.mubr.f32.gmra.mrb[6].mxu0 %v8440_v36  ;;  %v8622_v36 = vld [vmem:[%s8192_s22 + $0xa0] sm:$0xff] }
  0x4e   : > { %5914 = vmatprep.mubr.msk.f32.mxu0 %vm466_vm0, %v8445_v37  ;;  %6711 = vmatprep.subr.bf16.mxu0 %v8180_v20  ;;  %v8611_v37 = vld [vmem:[%s8192_s22 + $0x150] sm:$0xff] }
  0x4f   : > { %602 = vmatmul.mubr.f32.gmra.mrb[8].mxu1 %v8451_v38  ;;  %6713 = vmatpush1.bf16.msra.mxu0 %v8201_v25  ;;  %13162 = vst [vmem:[#allocation21_spill] sm:$0xff] %v8611_v37 }
  0x50   : > { %5864 = vmatprep.mubr.msk.f32.mxu1 %vm466_vm0, %v8457_v42  ;;  %6622 = vmatpush1.bf16.msra.mxu1 %v8454_v41 }
  0x51   : > { %6623 = vmatprep.subr.bf16.mxu1 %v13028_v2  ;;  %925 = vmatmul.mubr.f32.gmra.mrb[8].mxu0 %v8470_v47  ;;  %v8589_v47 = vld [vmem:[%s8192_s22 + $0x158] sm:$0xff] }
  0x52   : > { %5915 = vmatprep.mubr.msk.f32.mxu0 %vm466_vm0, %v8475_v48  ;;  %6715 = vmatprep.subr.bf16.mxu0 %v8208_v27  ;;  %v8584_v48 = vld [vmem:[%s8192_s22 + $0x140] sm:$0xff]  ;;  %13161 = vst [vmem:[#allocation20_spill] sm:$0xff] %v8589_v47 }
  0x53   : > { %608 = vmatmul.mubr.f32.gmra.mrb[10].mxu1 %v8481_v49  ;;  %6717 = vmatpush1.bf16.msra.mxu0 %v8231_v33  ;;  %13160 = vst [vmem:[#allocation19_spill] sm:$0xff] %v8584_v48 }
  0x54   : > { %5865 = vmatprep.mubr.msk.f32.mxu1 %vm466_vm0, %v8487_v53  ;;  %6625 = vmatpush1.bf16.msra.mxu1 %v8484_v50 }
  0x55   : > { %6626 = vmatprep.subr.bf16.mxu1 %v13028_v2  ;;  %931 = vmatmul.mubr.f32.gmra.mrb[10].mxu0 %v8500_v58  ;;  %v13159_v58 = vmov 0.0|0.0  }
  0x56   : > { %5916 = vmatprep.mubr.msk.f32.mxu0 %vm466_vm0, %v8505_v63  ;;  %6719 = vmatprep.subr.bf16.mxu0 %v8235_v34  ;;  %v438_v63 = vld [vmem:[%s13015_s1 + $0x1a8] sm:$0xff] }
  0x57   : > { %614 = vmatmul.mubr.f32.gmra.mrb[12].mxu1 %v8511_v0  ;;  %6721 = vmatpush1.bf16.msra.mxu0 %v8251_v39 }
  0x58   : > { %5866 = vmatprep.mubr.msk.f32.mxu1 %vm466_vm0, %v8517_v11  ;;  %6628 = vmatpush1.bf16.msra.mxu1 %v8514_v10 }
  0x59   : > { %6629 = vmatprep.subr.bf16.mxu1 %v13028_v2  ;;  %937 = vmatmul.mubr.f32.gmra.mrb[12].mxu0 %v8530_v31  ;;  %v8571_v2 = vld [vmem:[%s8192_s22 + $0x80] sm:$0xff]  ;;  %v8577_v31 = vld [vmem:[%s8192_s22 + $0x98] sm:$0xff] }
  0x5a   : > { %5917 = vmatprep.mubr.msk.f32.mxu0 %vm466_vm0, %v8535_v35  ;;  %6723 = vmatprep.subr.bf16.mxu0 %v8255_v40  ;;  %v8574_v35 = vpack.c.bf16 %v438_v63, %v435_v57  ;;  %v8595_v63 = vld [vmem:[%s8192_s22 + $0x90] sm:$0xff]  ;;  %v8599_v57 = vld [vmem:[%s8192_s22 + $0xa8] sm:$0xff] }
  0x5b   : > { %620 = vmatmul.mubr.f32.gmra.mrb[14].mxu1 %v8541_v43  ;;  %6725 = vmatpush1.bf16.msra.mxu0 %v8271_v45 }
  0x5c   : > { %5867 = vmatprep.mubr.msk.f32.mxu1 %vm466_vm0, %v8547_v54  ;;  %6631 = vmatpush1.bf16.msra.mxu1 %v8544_v44 }
  0x5d   : > { %6632 = vmatprep.subr.bf16.mxu1 %v13159_v58  ;;  %943 = vmatmul.mubr.f32.gmra.mrb[14].mxu0 %v8560_v21  ;;  %v8605_v21 = vld [vmem:[%s13015_s1 + $0x1c0] sm:$0x3f] }
  0x5e   : > { %5918 = vmatprep.mubr.msk.f32.mxu0 %vm466_vm0, %v8565_v22  ;;  %6727 = vmatprep.subr.bf16.mxu0 %v8275_v46  ;;  %v13038_v22 = vmov 0.0  }
  0x5f   : > { %626 = vmatmul.mubr.f32.gmra.mrb[16].mxu1 %v8571_v2  ;;  %6729 = vmatpush1.bf16.msra.mxu0 %v8291_v51 }
  0x60   : > { %5868 = vmatprep.mubr.msk.f32.mxu1 %vm466_vm0, %v8577_v31  ;;  %6634 = vmatpush1.bf16.msra.mxu1 %v8574_v35 }
  0x61   : > { %686 = vmatprep.subr.mxu1 %v13038_v22  ;;  %949 = vmatmul.mubr.f32.gmra.mrb[16].mxu0 %v8584_v48  ;;  %v8616_v22 = vld [vmem:[%s8192_s22 + $0x168] sm:$0xff]  ;;  %v8634_v48 = vld [vmem:[%s8192_s22 + $0x160] sm:$0xff] }
  0x62   : > { %5919 = vmatprep.mubr.msk.f32.mxu0 %vm466_vm0, %v8589_v47  ;;  %6731 = vmatprep.subr.bf16.mxu0 %v8295_v52  ;;  %13163 = vst [vmem:[#allocation22_spill] sm:$0xff] %v8616_v22  ;;  %v8627_v47 = vld [vmem:[%s8192_s22 + $0xb8] sm:$0xff] }
  0x63   : > { %632 = vmatmul.mubr.f32.gmra.mrb[18].mxu1 %v8595_v63  ;;  %6733 = vmatpush1.bf16.msra.mxu0 %v8305_v55 }
  0x64   : > { %5869 = vmatprep.mubr.msk.f32.mxu1 %vm466_vm0, %v8599_v57  ;;  %5871 = vmatpush1.msk.msra.mxu1 %vm503_vm1, %v8605_v21 }
  0x65   : > { %6671 = vmatprep.subr.bf16.mxu1 %v13159_v58  ;;  %955 = vmatmul.mubr.f32.gmra.mrb[18].mxu0 %v8611_v37  ;;  %v8647_v37 = vld [vmem:[%s8192_s22 + $0xb0] sm:$0xff] }
  0x66   : > { %5920 = vmatprep.mubr.msk.f32.mxu0 %vm466_vm0, %v8616_v22  ;;  %5959 = vmatprep.subr.msk.mxu0 %vm503_vm1, %v8313_v56  ;;  %v8654_v22 = vld [vmem:[%s8192_s22 + $0x170] sm:$0xff] }
  0x67   : > { %638 = vmatmul.mubr.f32.gmra.mrb[20].mxu1 %v8622_v36  ;;  %5960 = vmatpush1.msk.msra.mxu0 %vm503_vm1, %v8328_v59 }
  0x68   : > { %5870 = vmatprep.mubr.msk.f32.mxu1 %vm466_vm0, %v8627_v47  ;;  %6762 = vmatprep.subr.bf16.mxu0 %v8125_v3  ;;  %v8666_v3 = vld [vmem:[%s8192_s22 + $0x180] sm:$0xff] }
  0x69   : > { %961 = vmatmul.mubr.f32.gmra.mrb[20].mxu0 %v8634_v48 }
  0x6a   : > { %5921 = vmatprep.mubr.msk.f32.mxu0 %vm466_vm0, %v8640_v24  ;;  %v8670_v24 = vld [vmem:[%s8192_s22 + $0x198] sm:$0xff] }
  0x6b   : > { %644 = vmatmul.mubr.f32.gmra.mrb[22].mxu1 %v8647_v37 }
  0x6c   : > { %5872 = vmatprep.mubr.msk.f32.mxu1 %vm466_vm0, %v8205_v26  ;;  %v8680_v26 = vld [vmem:[%s8192_s22 + $0x190] sm:$0xff] }
  0x6d   : > { %967 = vmatmul.mubr.f32.gmra.mrb[22].mxu0 %v8654_v22 }
  0x6e   : > { %5961 = vmatprep.mubr.msk.f32.mxu0 %vm466_vm0, %v8658_v23 }
  0x6f   : > { %715 = vmatmul.mubr.f32.vlgmr.msra.gmra.mrb[24].mxu1 %v8333_v60  ;;  %v8685_v60 = vld [vmem:[%s8192_s22 + $0x1a8] sm:$0xff] }
  0x70   : > { %6673 = vmatpush1.bf16.msra.mxu1 %v8335_v61  ;;  %5873 = vmatprep.mubr.msk.f32.mxu1 %vm466_vm0, %v8338_v62  ;;  %v13165_v62 = vmov 0.0  }
  0x71   : > { %6674 = vmatprep.subr.bf16.mxu1 %v13159_v58  ;;  %1224 = vmatmul.mubr.f32.vlgmr.msra.gmra.mrb[24].mxu0 %v8666_v3 }
  0x72   : > { %5962 = vmatprep.mubr.msk.f32.mxu0 %vm466_vm0, %v8670_v24  ;;  %6764 = vmatpush1.bf16.msra.mxu0 %v8136_v7  ;;  %v8696_v7 = vld [vmem:[%s8192_s22 + $0x1a0] sm:$0xff] }
  0x73   : > { %720 = vmatmul.mubr.f32.gmra.mrb[26].mxu1 %v8362_v5  ;;  %6766 = vmatprep.subr.bf16.mxu0 %v8138_v8  ;;  %v8701_v8 = vld [vmem:[%s8192_s22 + $0x1b8] sm:$0xff]  ;;  %v8844_v5 = vld [vmem:[%s8192_s22 + $0x248] sm:$0xff] }
  0x74   : > { %6676 = vmatpush1.bf16.msra.mxu1 %v8364_v6  ;;  %5874 = vmatprep.mubr.msk.f32.mxu1 %vm466_vm0, %v8369_v9  ;;  %v8856_v9 = vld [vmem:[%s8192_s22 + $0x258] sm:$0xff] }
  0x75   : > { %6677 = vmatprep.subr.bf16.mxu1 %v13159_v58  ;;  %1230 = vmatmul.mubr.f32.gmra.mrb[26].mxu0 %v8680_v26 }
  0x76   : > { %5963 = vmatprep.mubr.msk.f32.mxu0 %vm466_vm0, %v8685_v60  ;;  %6768 = vmatpush1.bf16.msra.mxu0 %v8156_v13  ;;  %v8712_v13 = vld [vmem:[%s8192_s22 + $0x1b0] sm:$0xff] }
  0x77   : > { %725 = vmatmul.mubr.f32.gmra.mrb[28].mxu1 %v8392_v16  ;;  %6770 = vmatprep.subr.bf16.mxu0 %v8160_v14  ;;  %v8717_v14 = vld [vmem:[%s8192_s22 + $0x1c8] sm:$0xff]  ;;  %v13166_v16 = vld [vmem:[#allocation7_spill] sm:$0xff] }
  0x78   : > { %5875 = vmatprep.mubr.msk.f32.mxu1 %vm466_vm0, %v8399_v18  ;;  %6679 = vmatpush1.bf16.msra.mxu1 %v8394_v17  ;;  %v13167_v18 = vld [vmem:[#allocation8_spill] sm:$0xff] }
  0x79   : > { %6680 = vmatprep.subr.bf16.mxu1 %v13159_v58  ;;  %1236 = vmatmul.mubr.f32.gmra.mrb[28].mxu0 %v8696_v7 }
  0x7a   : > { %5964 = vmatprep.mubr.msk.f32.mxu0 %vm466_vm0, %v8701_v8  ;;  %6772 = vmatpush1.bf16.msra.mxu0 %v8176_v19  ;;  %v8728_v19 = vld [vmem:[%s8192_s22 + $0x1c0] sm:$0xff] }
  0x7b   : > { %730 = vmatmul.mubr.f32.gmra.mrb[30].mxu1 %v8422_v28  ;;  %6774 = vmatprep.subr.bf16.mxu0 %v8180_v20  ;;  %v8733_v20 = vld [vmem:[%s8192_s22 + $0x1d8] sm:$0xff]  ;;  %v13168_v28 = vld [vmem:[#allocation9_spill] sm:$0xff] }
  0x7c   : > { %5876 = vmatprep.mubr.msk.f32.mxu1 %vm466_vm0, %v8428_v30  ;;  %6682 = vmatpush1.bf16.msra.mxu1 %v8424_v29  ;;  %v8898_v30 = vld [vmem:[%s8192_s22 + $0x288] sm:$0xff] }
  0x7d   : > { %6683 = vmatprep.subr.bf16.mxu1 %v13159_v58  ;;  %1242 = vmatmul.mubr.f32.gmra.mrb[30].mxu0 %v8712_v13 }
  0x7e   : > { %5965 = vmatprep.mubr.msk.f32.mxu0 %vm466_vm0, %v8717_v14  ;;  %6776 = vmatpush1.bf16.msra.mxu0 %v8201_v25  ;;  %v8744_v25 = vld [vmem:[%s8192_s22 + $0x1d0] sm:$0xff] }
  0x7f   : > { %735 = vmatmul.mubr.f32.gmra.mrb[32].mxu1 %v8451_v38  ;;  %6778 = vmatprep.subr.bf16.mxu0 %v8208_v27  ;;  %v8749_v27 = vld [vmem:[%s8192_s22 + $0x1e8] sm:$0xff]  ;;  %v13170_v38 = vld [vmem:[#allocation11_spill] sm:$0xff] }
  0x80   : > { %5877 = vmatprep.mubr.msk.f32.mxu1 %vm466_vm0, %v8457_v42  ;;  %6685 = vmatpush1.bf16.msra.mxu1 %v8454_v41  ;;  %v8912_v42 = vld [vmem:[%s8192_s22 + $0x298] sm:$0xff] }
  0x81   : > { %6686 = vmatprep.subr.bf16.mxu1 %v13159_v58  ;;  %1248 = vmatmul.mubr.f32.gmra.mrb[32].mxu0 %v8728_v19 }
  0x82   : > { %5966 = vmatprep.mubr.msk.f32.mxu0 %vm466_vm0, %v8733_v20  ;;  %6780 = vmatpush1.bf16.msra.mxu0 %v8231_v33  ;;  %v8760_v33 = vld [vmem:[%s8192_s22 + $0x1e0] sm:$0xff] }
  0x83   : > { %740 = vmatmul.mubr.f32.gmra.mrb[34].mxu1 %v8481_v49  ;;  %6782 = vmatprep.subr.bf16.mxu0 %v8235_v34  ;;  %v8765_v34 = vld [vmem:[%s8192_s22 + $0x1f8] sm:$0xff]  ;;  %v8922_v49 = vld [vmem:[%s8192_s22 + $0x290] sm:$0xff] }
  0x84   : > { %5878 = vmatprep.mubr.msk.f32.mxu1 %vm466_vm0, %v8487_v53  ;;  %6688 = vmatpush1.bf16.msra.mxu1 %v8484_v50  ;;  %v13172_v53 = vld [vmem:[#allocation13_spill] sm:$0xff] }
  0x85   : > { %6689 = vmatprep.subr.bf16.mxu1 %v13159_v58  ;;  %1254 = vmatmul.mubr.f32.gmra.mrb[34].mxu0 %v8744_v25 }
  0x86   : > { %5967 = vmatprep.mubr.msk.f32.mxu0 %vm466_vm0, %v8749_v27  ;;  %6784 = vmatpush1.bf16.msra.mxu0 %v8251_v39  ;;  %v8776_v39 = vld [vmem:[%s8192_s22 + $0x1f0] sm:$0xff] }
  0x87   : > { %745 = vmatmul.mubr.f32.gmra.mrb[36].mxu1 %v8511_v0  ;;  %6786 = vmatprep.subr.bf16.mxu0 %v8255_v40  ;;  %v8781_v40 = vld [vmem:[%s8192_s22 + $0x208] sm:$0xff] }
  0x88   : > { %5879 = vmatprep.mubr.msk.f32.mxu1 %vm466_vm0, %v8517_v11  ;;  %6691 = vmatpush1.bf16.msra.mxu1 %v8514_v10  ;;  %v8926_v0 = vld [vmem:[%s8192_s22 + $0x2a8] sm:$0xff] }
  0x89   : > { %6692 = vmatprep.subr.bf16.mxu1 %v13159_v58  ;;  %1260 = vmatmul.mubr.f32.gmra.mrb[36].mxu0 %v8760_v33  ;;  %v13173_v11 = vld [vmem:[#allocation14_spill] sm:$0xff] }
  0x8a   : > { %5968 = vmatprep.mubr.msk.f32.mxu0 %vm466_vm0, %v8765_v34  ;;  %6788 = vmatpush1.bf16.msra.mxu0 %v8271_v45  ;;  %v8792_v45 = vld [vmem:[%s8192_s22 + $0x200] sm:$0xff] }
  0x8b   : > { %750 = vmatmul.mubr.f32.gmra.mrb[38].mxu1 %v8541_v43  ;;  %6790 = vmatprep.subr.bf16.mxu0 %v8275_v46  ;;  %v8797_v46 = vld [vmem:[%s8192_s22 + $0x218] sm:$0xff]  ;;  %v13174_v43 = vld [vmem:[#allocation15_spill] sm:$0xff] }
  0x8c   : > { %5880 = vmatprep.mubr.msk.f32.mxu1 %vm466_vm0, %v8547_v54  ;;  %6694 = vmatpush1.bf16.msra.mxu1 %v8544_v44  ;;  %v8940_v54 = vld [vmem:[%s8192_s22 + $0x2b8] sm:$0xff] }
  0x8d   : > { %6695 = vmatprep.subr.bf16.mxu1 %v13159_v58  ;;  %1266 = vmatmul.mubr.f32.gmra.mrb[38].mxu0 %v8776_v39 }
  0x8e   : > { %5969 = vmatprep.mubr.msk.f32.mxu0 %vm466_vm0, %v8781_v40  ;;  %6792 = vmatpush1.bf16.msra.mxu0 %v8291_v51  ;;  %v8808_v51 = vld [vmem:[%s8192_s22 + $0x210] sm:$0xff] }
  0x8f   : > { %755 = vmatmul.mubr.f32.gmra.mrb[40].mxu1 %v8571_v2  ;;  %6794 = vmatprep.subr.bf16.mxu0 %v8295_v52  ;;  %v8813_v52 = vld [vmem:[%s8192_s22 + $0x228] sm:$0xff]  ;;  %v8840_v2 = vld [vmem:[%s8192_s22 + $0x230] sm:$0xff] }
  0x90   : > { %5881 = vmatprep.mubr.msk.f32.mxu1 %vm466_vm0, %v8577_v31  ;;  %6697 = vmatpush1.bf16.msra.mxu1 %v8574_v35  ;;  %v8936_v31 = vld [vmem:[%s8192_s22 + $0x2a0] sm:$0xff] }
  0x91   : > { %1009 = vmatprep.subr.mxu1 %v13165_v62  ;;  %1272 = vmatmul.mubr.f32.gmra.mrb[40].mxu0 %v8792_v45 }
  0x92   : > { %5970 = vmatprep.mubr.msk.f32.mxu0 %vm466_vm0, %v8797_v46  ;;  %6796 = vmatpush1.bf16.msra.mxu0 %v8305_v55  ;;  %v8826_v55 = vld [vmem:[%s8192_s22 + $0x220] sm:$0xff] }
  0x93   : > { %760 = vmatmul.mubr.f32.gmra.mrb[42].mxu1 %v8595_v63  ;;  %6010 = vmatprep.subr.msk.mxu0 %vm503_vm1, %v8313_v56  ;;  %v8832_v56 = vld [vmem:[%s8192_s22 + $0x238] sm:$0xff] }
  0x94   : > { %5882 = vmatprep.mubr.msk.f32.mxu1 %vm466_vm0, %v8599_v57  ;;  %5922 = vmatpush1.msk.msra.mxu1 %vm503_vm1, %v8605_v21  ;;  %v13175_v63 = vld [vmem:[#allocation16_spill] sm:$0xff]  ;;  %v8950_v57 = vld [vmem:[%s8192_s22 + $0x2b0] sm:$0xff] }
  0x95   : > { %6734 = vmatprep.subr.bf16.mxu1 %v13159_v58  ;;  %1278 = vmatmul.mubr.f32.gmra.mrb[42].mxu0 %v8808_v51 }
  0x96   : > { %5971 = vmatprep.mubr.msk.f32.mxu0 %vm466_vm0, %v8813_v52  ;;  %6011 = vmatpush1.msk.msra.mxu0 %vm503_vm1, %v8328_v59  ;;  %v8852_v59 = vld [vmem:[%s8192_s22 + $0x240] sm:$0xff] }
  0x97   : > { %765 = vmatmul.mubr.f32.gmra.mrb[44].mxu1 %v8622_v36  ;;  %v13169_v36 = vld [vmem:[#allocation10_spill] sm:$0xff] }
  0x98   : > { %5883 = vmatprep.mubr.msk.f32.mxu1 %vm466_vm0, %v8627_v47  ;;  %v13171_v47 = vld [vmem:[#allocation12_spill] sm:$0xff] }
  0x99   : > { %1284 = vmatmul.mubr.f32.gmra.mrb[44].mxu0 %v8826_v55 }
  0x9a   : > { %5972 = vmatprep.mubr.msk.f32.mxu0 %vm466_vm0, %v8832_v56 }
  0x9b   : > { %770 = vmatmul.mubr.f32.gmra.mrb[46].mxu1 %v8647_v37  ;;  %v8908_v37 = vld [vmem:[%s8192_s22 + $0x280] sm:$0xff] }
  0x9c   : > { %5923 = vmatprep.mubr.msk.f32.mxu1 %vm466_vm0, %v8226_v32  ;;  %v8866_v32 = vld [vmem:[%s8192_s22 + $0x250] sm:$0xff] }
  0x9d   : > { %1290 = vmatmul.mubr.f32.gmra.mrb[46].mxu0 %v8840_v2 }
  0x9e   : > { %6012 = vmatprep.mubr.msk.f32.mxu0 %vm466_vm0, %v8844_v5 }
  0x9f   : > { %1038 = vmatmul.mubr.f32.vlgmr.msra.gmra.mrb[48].mxu1 %v8351_v1  ;;  %v8870_v1 = vld [vmem:[%s8192_s22 + $0x268] sm:$0xff] }
  0xa0   : > { %6736 = vmatpush1.bf16.msra.mxu1 %v8335_v61  ;;  %5924 = vmatprep.mubr.msk.f32.mxu1 %vm466_vm0, %v8356_v4  ;;  %v8880_v4 = vld [vmem:[%s8192_s22 + $0x260] sm:$0xff] }
  0xa1   : > { %6737 = vmatprep.subr.bf16.mxu1 %v13159_v58  ;;  %1547 = vmatmul.mubr.f32.vlgmr.msra.gmra.mrb[48].mxu0 %v8852_v59 }
  0xa2   : > { %6013 = vmatprep.mubr.msk.f32.mxu0 %vm466_vm0, %v8856_v9 }
  0xa3   : > { %1043 = vmatmul.mubr.f32.gmra.mrb[50].mxu1 %v8380_v12  ;;  %v8884_v12 = vld [vmem:[%s8192_s22 + $0x278] sm:$0xff] }
  0xa4   : > { %6739 = vmatpush1.bf16.msra.mxu1 %v8364_v6  ;;  %5925 = vmatprep.mubr.msk.f32.mxu1 %vm466_vm0, %v8385_v15  ;;  %v8894_v15 = vld [vmem:[%s8192_s22 + $0x270] sm:$0xff] }
  0xa5   : > { %6740 = vmatprep.subr.bf16.mxu1 %v13159_v58  ;;  %1553 = vmatmul.mubr.f32.gmra.mrb[50].mxu0 %v8866_v32 }
  0xa6   : > { %6014 = vmatprep.mubr.msk.f32.mxu0 %vm466_vm0, %v8870_v1 }
  0xa7   : > { %1048 = vmatmul.mubr.f32.gmra.mrb[52].mxu1 %v13166_v16  ;;  %v13176_v16 = vld [vmem:[#allocation17_spill] sm:$0xff] }
  0xa8   : > { %5926 = vmatprep.mubr.msk.f32.mxu1 %vm466_vm0, %v13167_v18  ;;  %6742 = vmatpush1.bf16.msra.mxu1 %v8394_v17  ;;  %v8954_v18 = vld [vmem:[%s8192_s22 + $0x2c8] sm:$0xff] }
  0xa9   : > { %6743 = vmatprep.subr.bf16.mxu1 %v13159_v58  ;;  %1559 = vmatmul.mubr.f32.gmra.mrb[52].mxu0 %v8880_v4 }
  0xaa   : > { %6015 = vmatprep.mubr.msk.f32.mxu0 %vm466_vm0, %v8884_v12 }
  0xab   : > { %1053 = vmatmul.mubr.f32.gmra.mrb[54].mxu1 %v13168_v28  ;;  %v13177_v28 = vld [vmem:[#allocation18_spill] sm:$0xff] }
  0xac   : > { %5927 = vmatprep.mubr.msk.f32.mxu1 %vm466_vm0, %v13169_v36  ;;  %6745 = vmatpush1.bf16.msra.mxu1 %v8424_v29  ;;  %v8964_v36 = vld [vmem:[%s8192_s22 + $0x2c0] sm:$0xff] }
  0xad   : > { %6746 = vmatprep.subr.bf16.mxu1 %v13159_v58  ;;  %1565 = vmatmul.mubr.f32.gmra.mrb[54].mxu0 %v8894_v15 }
  0xae   : > { %6016 = vmatprep.mubr.msk.f32.mxu0 %vm466_vm0, %v8898_v30 }
  0xaf   : > { %1058 = vmatmul.mubr.f32.gmra.mrb[56].mxu1 %v13170_v38  ;;  %v13178_v38 = vld [vmem:[#allocation19_spill] sm:$0xff] }
  0xb0   : > { %5928 = vmatprep.mubr.msk.f32.mxu1 %vm466_vm0, %v13171_v47  ;;  %6748 = vmatpush1.bf16.msra.mxu1 %v8454_v41  ;;  %v8968_v47 = vld [vmem:[%s8192_s22 + $0x2d8] sm:$0xff] }
  0xb1   : > { %6749 = vmatprep.subr.bf16.mxu1 %v13159_v58  ;;  %1571 = vmatmul.mubr.f32.gmra.mrb[56].mxu0 %v8908_v37 }
  0xb2   : > { %6017 = vmatprep.mubr.msk.f32.mxu0 %vm466_vm0, %v8912_v42 }
  0xb3   : > { %1063 = vmatmul.mubr.f32.gmra.mrb[58].mxu1 %v13172_v53  ;;  %v13179_v53 = vld [vmem:[#allocation20_spill] sm:$0xff] }
  0xb4   : > { %5929 = vmatprep.mubr.msk.f32.mxu1 %vm466_vm0, %v13173_v11  ;;  %6751 = vmatpush1.bf16.msra.mxu1 %v8484_v50  ;;  %v8978_v11 = vld [vmem:[%s8192_s22 + $0x2d0] sm:$0xff] }
  0xb5   : > { %6752 = vmatprep.subr.bf16.mxu1 %v13159_v58  ;;  %1577 = vmatmul.mubr.f32.gmra.mrb[58].mxu0 %v8922_v49 }
  0xb6   : > { %6018 = vmatprep.mubr.msk.f32.mxu0 %vm466_vm0, %v8926_v0 }
  0xb7   : > { %1068 = vmatmul.mubr.f32.gmra.mrb[60].mxu1 %v13174_v43  ;;  %v13180_v43 = vld [vmem:[#allocation21_spill] sm:$0xff] }
  0xb8   : > { %5930 = vmatprep.mubr.msk.f32.mxu1 %vm466_vm0, %v13175_v63  ;;  %6754 = vmatpush1.bf16.msra.mxu1 %v8514_v10  ;;  %v8982_v63 = vld [vmem:[%s8192_s22 + $0x2e8] sm:$0xff] }
  0xb9   : > { %6755 = vmatprep.subr.bf16.mxu1 %v13159_v58  ;;  %1583 = vmatmul.mubr.f32.gmra.mrb[60].mxu0 %v8936_v31 }
  0xba   : > { %6019 = vmatprep.mubr.msk.f32.mxu0 %vm466_vm0, %v8940_v54 }
  0xbb   : > { %1073 = vmatmul.mubr.f32.gmra.mrb[62].mxu1 %v13176_v16  ;;  %v13181_v16 = vld [vmem:[#allocation22_spill] sm:$0xff] }
  0xbc   : > { %5931 = vmatprep.mubr.msk.f32.mxu1 %vm466_vm0, %v13177_v28  ;;  %6757 = vmatpush1.bf16.msra.mxu1 %v8544_v44  ;;  %v8993_v28 = vld [vmem:[%s8192_s22 + $0x2e0] sm:$0xff] }
  0xbd   : > { %6758 = vmatprep.subr.bf16.mxu1 %v13159_v58  ;;  %1589 = vmatmul.mubr.f32.gmra.mrb[62].mxu0 %v8950_v57 }
  0xbe   : > { %6020 = vmatprep.mubr.msk.f32.mxu0 %vm466_vm0, %v8954_v18 }
  0xbf   : > { %1078 = vmatmul.mubr.f32.gmra.mrb[64].mxu1 %v13178_v38  ;;  %v8997_v38 = vld [vmem:[%s8192_s22 + $0x2f8] sm:$0xff] }
  0xc0   : > { %5932 = vmatprep.mubr.msk.f32.mxu1 %vm466_vm0, %v13179_v53  ;;  %6760 = vmatpush1.bf16.msra.mxu1 %v8574_v35  ;;  %v13182_v53 = vld [vmem:[#allocation23_spill] sm:$0xff] }
  0xc1   : > { %1332 = vmatprep.subr.mxu1 %v13165_v62  ;;  %1595 = vmatmul.mubr.f32.gmra.mrb[64].mxu0 %v8964_v36 }
  0xc2   : > { %6021 = vmatprep.mubr.msk.f32.mxu0 %vm466_vm0, %v8968_v47 }
  0xc3   : > { %1083 = vmatmul.mubr.f32.gmra.mrb[66].mxu1 %v13180_v43  ;;  %v9005_v43 = vld [vmem:[%s8192_s22 + $0x2f0] sm:$0xff]  ;;  %s8002_s22 = smov 112  }
  0xc4   : > { %5933 = vmatprep.mubr.msk.f32.mxu1 %vm466_vm0, %v13181_v16  ;;  %5973 = vmatpush1.msk.msra.mxu1 %vm503_vm1, %v8605_v21 }
  0xc5   : > { %6797 = vmatprep.subr.bf16.mxu1 %v13159_v58  ;;  %1601 = vmatmul.mubr.f32.gmra.mrb[66].mxu0 %v8978_v11 }
  0xc6   : > { %6022 = vmatprep.mubr.msk.f32.mxu0 %vm466_vm0, %v8982_v63 }
  0xc7   : > { %1088 = vmatmul.mubr.f32.gmra.mrb[68].mxu1 %v8634_v48 }
  0xc8   : > { %5934 = vmatprep.mubr.msk.f32.mxu1 %vm466_vm0, %v13182_v53  ;;  %v6040_v53 = vld [vmem:[%s13017_s3 + $0x138] sm:$0xff] }
  0xc9   : > { %1607 = vmatmul.mubr.f32.gmra.mrb[68].mxu0 %v8993_v28 }
  0xca   : > { %6023 = vmatprep.mubr.msk.f32.mxu0 %vm466_vm0, %v8997_v38 }
  0xcb   : > { %1093 = vmatmul.mubr.f32.gmra.mrb[70].mxu1 %v8654_v22 }
  0xcc   : > { %5974 = vmatprep.mubr.msk.f32.mxu1 %vm466_vm0, %v8658_v23 }
  0xcd   : > { %1613 = vmatmul.mubr.f32.gmra.mrb[70].mxu0 %v9005_v43 }
  0xcf   : > { %1361 = vmatmul.mubr.f32.vlgmr.msra.gmra.mrb[72].mxu1 %v8666_v3 }
  0xd0   : > { %6799 = vmatpush1.bf16.msra.mxu1 %v8335_v61  ;;  %5975 = vmatprep.mubr.msk.f32.mxu1 %vm466_vm0, %v8670_v24 }
  0xd1   : > { %6800 = vmatprep.subr.bf16.mxu1 %v13159_v58 }
  0xd3   : > { %1366 = vmatmul.mubr.f32.gmra.mrb[74].mxu1 %v8680_v26 }
  0xd4   : > { %6802 = vmatpush1.bf16.msra.mxu1 %v8364_v6  ;;  %5976 = vmatprep.mubr.msk.f32.mxu1 %vm466_vm0, %v8685_v60 }
  0xd5   : > { %6803 = vmatprep.subr.bf16.mxu1 %v13159_v58 }
  0xd7   : > { %1371 = vmatmul.mubr.f32.gmra.mrb[76].mxu1 %v8696_v7 }
  0xd8   : > { %5977 = vmatprep.mubr.msk.f32.mxu1 %vm466_vm0, %v8701_v8  ;;  %6805 = vmatpush1.bf16.msra.mxu1 %v8394_v17 }
  0xd9   : > { %6806 = vmatprep.subr.bf16.mxu1 %v13159_v58 }
  0xdb   : > { %1376 = vmatmul.mubr.f32.gmra.mrb[78].mxu1 %v8712_v13 }
  0xdc   : > { %5978 = vmatprep.mubr.msk.f32.mxu1 %vm466_vm0, %v8717_v14  ;;  %6808 = vmatpush1.bf16.msra.mxu1 %v8424_v29 }
  0xdd   : > { %6809 = vmatprep.subr.bf16.mxu1 %v13159_v58 }
  0xdf   : > { %1381 = vmatmul.mubr.f32.gmra.mrb[80].mxu1 %v8728_v19 }
  0xe0   : > { %5979 = vmatprep.mubr.msk.f32.mxu1 %vm466_vm0, %v8733_v20  ;;  %6811 = vmatpush1.bf16.msra.mxu1 %v8454_v41 }
  0xe1   : > { %6812 = vmatprep.subr.bf16.mxu1 %v13159_v58 }
  0xe3   : > { %1386 = vmatmul.mubr.f32.gmra.mrb[82].mxu1 %v8744_v25 }
  0xe4   : > { %5980 = vmatprep.mubr.msk.f32.mxu1 %vm466_vm0, %v8749_v27  ;;  %6814 = vmatpush1.bf16.msra.mxu1 %v8484_v50 }
  0xe5   : > { %6815 = vmatprep.subr.bf16.mxu1 %v13159_v58 }
  0xe7   : > { %1391 = vmatmul.mubr.f32.gmra.mrb[84].mxu1 %v8760_v33 }
  0xe8   : > { %5981 = vmatprep.mubr.msk.f32.mxu1 %vm466_vm0, %v8765_v34  ;;  %6817 = vmatpush1.bf16.msra.mxu1 %v8514_v10 }
  0xe9   : > { %6818 = vmatprep.subr.bf16.mxu1 %v13159_v58 }
  0xeb   : > { %1396 = vmatmul.mubr.f32.gmra.mrb[86].mxu1 %v8776_v39 }
  0xec   : > { %5982 = vmatprep.mubr.msk.f32.mxu1 %vm466_vm0, %v8781_v40  ;;  %6820 = vmatpush1.bf16.msra.mxu1 %v8544_v44 }
  0xed   : > { %6821 = vmatprep.subr.bf16.mxu1 %v13159_v58 }
  0xef   : > { %1401 = vmatmul.mubr.f32.gmra.mrb[88].mxu1 %v8792_v45 }
  0xf0   : > { %5983 = vmatprep.mubr.msk.f32.mxu1 %vm466_vm0, %v8797_v46  ;;  %6823 = vmatpush1.bf16.msra.mxu1 %v8574_v35 }
  0xf1   : > { %1655 = vmatprep.subr.mxu1 %v13165_v62 }
  0xf3   : > { %1406 = vmatmul.mubr.f32.gmra.mrb[90].mxu1 %v8808_v51 }
  0xf4   : > { %5984 = vmatprep.mubr.msk.f32.mxu1 %vm466_vm0, %v8813_v52  ;;  %6024 = vmatpush1.msk.msra.mxu1 %vm503_vm1, %v8605_v21 }
  0xf7   : > { %1411 = vmatmul.mubr.f32.gmra.mrb[92].mxu1 %v8826_v55 }
  0xf8   : > { %5985 = vmatprep.mubr.msk.f32.mxu1 %vm466_vm0, %v8832_v56 }
  0xfb   : > { %1416 = vmatmul.mubr.f32.gmra.mrb[94].mxu1 %v8840_v2 }
  0xfc   : > { %6025 = vmatprep.mubr.msk.f32.mxu1 %vm466_vm0, %v8844_v5 }
  0xff   : > { %1684 = vmatmul.mubr.f32.vlgmr.msra.gmra.mrb[96].mxu1 %v8852_v59 }
 0x100   : > { %6026 = vmatprep.mubr.msk.f32.mxu1 %vm466_vm0, %v8856_v9 }
 0x103   : > { %1689 = vmatmul.mubr.f32.gmra.mrb[98].mxu1 %v8866_v32 }
 0x104   : > { %6027 = vmatprep.mubr.msk.f32.mxu1 %vm466_vm0, %v8870_v1 }
 0x107   : > { %1694 = vmatmul.mubr.f32.gmra.mrb[100].mxu1 %v8880_v4 }
 0x108   : > { %6028 = vmatprep.mubr.msk.f32.mxu1 %vm466_vm0, %v8884_v12 }
 0x10b   : > { %1699 = vmatmul.mubr.f32.gmra.mrb[102].mxu1 %v8894_v15 }
 0x10c   : > { %6029 = vmatprep.mubr.msk.f32.mxu1 %vm466_vm0, %v8898_v30 }
 0x10f   : > { %1704 = vmatmul.mubr.f32.gmra.mrb[104].mxu1 %v8908_v37 }
 0x110   : > { %6030 = vmatprep.mubr.msk.f32.mxu1 %vm466_vm0, %v8912_v42 }
 0x112   : > { %v9082_v61 = vpop.f32.mrb[0].mxu1 }
 0x113   : > { %13183 = vst [vmem:[#allocation7_spill] sm:$0xff] %v9082_v61  ;;  %v9084_v6 = vpop.f32.mrb[1].mxu1  ;;  %1709 = vmatmul.mubr.f32.gmra.mrb[106].mxu1 %v8922_v49 }
 0x114   : > { %13184 = vst [vmem:[#allocation8_spill] sm:$0xff] %v9084_v6  ;;  %1769 = vrot.lane.b32.xlu0 %v9084_v6, %s8002_s22  ;;  %6031 = vmatprep.mubr.msk.f32.mxu1 %vm466_vm0, %v8926_v0  ;;  %v9091_v17 = vpop.f32.mrb[0].mxu0 }
 0x115   : > { %13185 = vst [vmem:[#allocation9_spill] sm:$0xff] %v9091_v17  ;;  %v9093_v23 = vpop.f32.mrb[1].mxu0 }
 0x116   : > { %13186 = vst [vmem:[#allocation10_spill] sm:$0xff] %v9093_v23  ;;  %v9095_v24 = vpop.f32.mrb[2].mxu1 }
 0x117   : > { %v9097_v29 = vpop.f32.mrb[3].mxu1  ;;  %1714 = vmatmul.mubr.f32.gmra.mrb[108].mxu1 %v8936_v31 }
 0x118   : > { %1773 = vrot.lane.b32.xlu0 %v9097_v29, %s8002_s22  ;;  %6032 = vmatprep.mubr.msk.f32.mxu1 %vm466_vm0, %v8940_v54  ;;  %v9104_v41 = vpop.f32.mrb[2].mxu0 }
 0x119   : > { %v9106_v48 = vpop.f32.mrb[3].mxu0 }
 0x11a   : > { %v9108_v50 = vpop.f32.mrb[4].mxu1  ;;  %1906 = vrot.lane.b32.xlu1 %v9106_v48, %s8002_s22 }
 0x11b   : > { %v9112_v10 = vpop.f32.mrb[5].mxu1  ;;  %1719 = vmatmul.mubr.f32.gmra.mrb[110].mxu1 %v8950_v57 }
 0x11c   : > { %1777 = vrot.lane.b32.xlu0 %v9112_v10, %s8002_s22  ;;  %v9117_v35 = vpop.f32.mrb[4].mxu0  ;;  %6033 = vmatprep.mubr.msk.f32.mxu1 %vm466_vm0, %v8954_v18 }
 0x11d   : > { %v9121_v44 = vpop.f32.mrb[5].mxu0 }
 0x11e   : > { %v9123_v21 = vpop.f32.mrb[6].mxu1 }
 0x11f   : > { %v9125_v22 = vpop.f32.mrb[7].mxu1  ;;  %1724 = vmatmul.mubr.f32.gmra.mrb[112].mxu1 %v8964_v36 }
 0x120   : > { %1910 = vrot.lane.b32.xlu0 %v9121_v44, %s8002_s22  ;;  %6034 = vmatprep.mubr.msk.f32.mxu1 %vm466_vm0, %v8968_v47  ;;  %v9132_v3 = vpop.f32.mrb[6].mxu0 }
 0x121   : > { %v9134_v26 = vpop.f32.mrb[7].mxu0 }
 0x122   : > { %v9136_v60 = vpop.f32.mrb[8].mxu1 }
 0x123   : > { %v9138_v7 = vpop.f32.mrb[9].mxu1  ;;  %1729 = vmatmul.mubr.f32.gmra.mrb[114].mxu1 %v8978_v11 }
 0x124   : > { %1781 = vrot.lane.b32.xlu0 %v9125_v22, %s8002_s22  ;;  %v9143_v8 = vpop.f32.mrb[8].mxu0  ;;  %6035 = vmatprep.mubr.msk.f32.mxu1 %vm466_vm0, %v8982_v63 }
 0x125   : > { %v9147_v13 = vpop.f32.mrb[9].mxu0 }
 0x126   : > { %v9149_v14 = vpop.f32.mrb[10].mxu1 }
 0x127   : > { %v9151_v19 = vpop.f32.mrb[11].mxu1  ;;  %1734 = vmatmul.mubr.f32.gmra.mrb[116].mxu1 %v8993_v28 }
 0x128   : > { %1914 = vrot.lane.b32.xlu0 %v9134_v26, %s8002_s22  ;;  %v9156_v20 = vpop.f32.mrb[10].mxu0  ;;  %6036 = vmatprep.mubr.msk.f32.mxu1 %vm466_vm0, %v8997_v38  ;;  %v6038_v38 = vld [vmem:[%s13017_s3 + $0x128] sm:$0xff] }
 0x129   : > { %v9160_v25 = vpop.f32.mrb[11].mxu0 }
 0x12a   : > { %v9162_v27 = vpop.f32.mrb[12].mxu1 }
 0x12b   : > { %v9164_v33 = vpop.f32.mrb[13].mxu1  ;;  %1739 = vmatmul.mubr.f32.gmra.mrb[118].mxu1 %v9005_v43 }
 0x12c   : > { %1785 = vrot.lane.b32.xlu0 %v9138_v7, %s8002_s22  ;;  %v9169_v34 = vpop.f32.mrb[12].mxu0 }
 0x12d   : > { %v9171_v39 = vpop.f32.mrb[13].mxu0 }
 0x12e   : > { %v9173_v40 = vpop.f32.mrb[14].mxu1 }
 0x12f   : > { %v9175_v45 = vpop.f32.mrb[15].mxu1 }
 0x130   : > { %1918 = vrot.lane.b32.xlu0 %v9147_v13, %s8002_s22  ;;  %v9179_v46 = vpop.f32.mrb[14].mxu0 }
 0x131   : > { %13187 = vst [vmem:[#allocation11_spill] sm:$0xff] %v9179_v46  ;;  %v9181_v51 = vpop.f32.mrb[15].mxu0 }
 0x132   : > { %v9183_v52 = vpop.f32.mrb[16].mxu1 }
 0x133   : > { %13188 = vst [vmem:[#allocation12_spill] sm:$0xff] %v9183_v52  ;;  %v9185_v55 = vpop.f32.mrb[17].mxu1 }
 0x134   : > { %13189 = vst [vmem:[#allocation13_spill] sm:$0xff] %v9185_v55  ;;  %1789 = vrot.lane.b32.xlu0 %v9151_v19, %s8002_s22  ;;  %v9189_v56 = vpop.f32.mrb[16].mxu0 }
 0x135   : > { %13190 = vst [vmem:[#allocation14_spill] sm:$0xff] %v9189_v56  ;;  %v9191_v2 = vpop.f32.mrb[17].mxu0 }
 0x136   : > { %13191 = vst [vmem:[#allocation15_spill] sm:$0xff] %v9191_v2  ;;  %v9193_v5 = vpop.f32.mrb[18].mxu1 }
 0x137   : > { %13192 = vst [vmem:[#allocation16_spill] sm:$0xff] %v9193_v5  ;;  %v9195_v59 = vpop.f32.mrb[19].mxu1 }
 0x138   : > { %13193 = vst [vmem:[#allocation17_spill] sm:$0xff] %v9195_v59  ;;  %1922 = vrot.lane.b32.xlu0 %v9160_v25, %s8002_s22  ;;  %v9199_v9 = vpop.f32.mrb[18].mxu0 }
 0x139   : > { %13194 = vst [vmem:[#allocation18_spill] sm:$0xff] %v9199_v9  ;;  %v9201_v32 = vpop.f32.mrb[19].mxu0 }
 0x13a   : > { %13195 = vst [vmem:[#allocation19_spill] sm:$0xff] %v9201_v32  ;;  %v9203_v1 = vpop.f32.mrb[20].mxu1 }
 0x13b   : > { %13196 = vst [vmem:[#allocation20_spill] sm:$0xff] %v9203_v1  ;;  %v9205_v4 = vpop.f32.mrb[21].mxu1 }
 0x13c   : > { %13197 = vst [vmem:[#allocation21_spill] sm:$0xff] %v9205_v4  ;;  %1793 = vrot.lane.b32.xlu0 %v9164_v33, %s8002_s22  ;;  %v9209_v12 = vpop.f32.mrb[20].mxu0 }
 0x13d   : > { %13198 = vst [vmem:[#allocation22_spill] sm:$0xff] %v9209_v12  ;;  %v9211_v15 = vpop.f32.mrb[21].mxu0 }
 0x13e   : > { %13199 = vst [vmem:[#allocation23_spill] sm:$0xff] %v9211_v15  ;;  %v9213_v30 = vpop.f32.mrb[22].mxu1 }
 0x13f   : > { %13200 = vst [vmem:[#allocation24_spill] sm:$0xff] %v9213_v30  ;;  %v9215_v37 = vpop.f32.mrb[23].mxu1 }
 0x140   : > { %13201 = vst [vmem:[#allocation25_spill] sm:$0xff] %v9215_v37  ;;  %1926 = vrot.lane.b32.xlu0 %v9171_v39, %s8002_s22  ;;  %v9219_v42 = vpop.f32.mrb[22].mxu0 }
 0x141   : > { %13202 = vst [vmem:[#allocation26_spill] sm:$0xff] %v9219_v42  ;;  %v9221_v49 = vpop.f32.mrb[23].mxu0 }
 0x142   : > { %13203 = vst [vmem:[#allocation27_spill] sm:$0xff] %v9221_v49  ;;  %v716_v0 = vpop.f32.mrb[24].mxu1 }
 0x143   : > { %1771 = vrot.lane.b32.xlu1 %v716_v0, %s8002_s22  ;;  %v718_v31 = vpop.f32.mrb[25].mxu1  ;;  %v6824_v0 = vpack.c.bf16 %v6040_v53, %v6038_v38  ;;  %v6042_v38 = vld [vmem:[%s13017_s3 + $0x148] sm:$0xff]  ;;  %v6044_v53 = vld [vmem:[%s13017_s3 + $0x158] sm:$0xff] }
 0x144   : > { %1797 = vrot.lane.b32.xlu0 %v9175_v45, %s8002_s22  ;;  %v9226_v54 = vpop.f32.mrb[24].mxu0  ;;  %v6037_v31 = vld [vmem:[%s13017_s3 + $0x120] sm:$0xff] }
 0x145   : > { %13204 = vst [vmem:[#allocation28_spill] sm:$0xff] %v9226_v54  ;;  %v9228_v57 = vpop.f32.mrb[25].mxu0  ;;  %7005 = vmatprep.subr.bf16.mxu1 %v6824_v0  ;;  %6825 = vmatprep.subr.bf16.mxu0 %v6824_v0  ;;  %v6048_v0 = vld [vmem:[%s13017_s3 + $0x178] sm:$0xff] }
 0x146   : > { %13205 = vst [vmem:[#allocation29_spill] sm:$0xff] %v9228_v57  ;;  %v9230_v18 = vpop.f32.mrb[26].mxu1 }
 0x147   : > { %v723_v36 = vpop.f32.mrb[27].mxu1 }
 0x148   : > { %1930 = vrot.lane.b32.xlu0 %v9181_v51, %s8002_s22  ;;  %v9234_v47 = vpop.f32.mrb[26].mxu0  ;;  %v6039_v36 = vld [vmem:[%s13017_s3 + $0x130] sm:$0xff] }
 0x149   : > { %13206 = vst [vmem:[#allocation30_spill] sm:$0xff] %v9234_v47  ;;  %v9236_v11 = vpop.f32.mrb[27].mxu0 }
 0x14a   : > { %13207 = vst [vmem:[#allocation31_spill] sm:$0xff] %v9236_v11  ;;  %v726_v63 = vpop.f32.mrb[28].mxu1 }
 0x14b   : > { %1779 = vrot.lane.b32.xlu1 %v726_v63, %s8002_s22  ;;  %v728_v16 = vpop.f32.mrb[29].mxu1 }
 0x14c   : > { %1801 = vrot.lane.b32.xlu0 %v9185_v55, %s8002_s22  ;;  %v9241_v28 = vpop.f32.mrb[28].mxu0  ;;  %v6826_v16 = vpack.c.bf16 %v6039_v36, %v6037_v31  ;;  %v6828_v31 = vpack.c.bf16 %v6044_v53, %v6042_v38  ;;  %v6043_v36 = vld [vmem:[%s13017_s3 + $0x150] sm:$0xff]  ;;  %v6046_v53 = vld [vmem:[%s13017_s3 + $0x168] sm:$0xff] }
 0x14d   : > { %13208 = vst [vmem:[#allocation32_spill] sm:$0xff] %v9241_v28  ;;  %v9249_v43 = vpop.f32.mrb[29].mxu0 }
 0x14e   : > { %13209 = vst [vmem:[#allocation33_spill] sm:$0xff] %v9249_v43  ;;  %v731_v63 = vpop.f32.mrb[30].mxu1  ;;  %7007 = vmatpush1.bf16.msra.mxu1 %v6826_v16  ;;  %6827 = vmatpush1.bf16.msra.mxu0 %v6826_v16  ;;  %v6832_v16 = vpack.c.bf16 %v6048_v0, %v6046_v53  ;;  %v6050_v0 = vld [vmem:[%s13017_s3 + $0x188] sm:$0xff] }
 0x14f   : > { %1783 = vrot.lane.b32.xlu1 %v731_v63, %s8002_s22  ;;  %v733_v62 = vpop.f32.mrb[31].mxu1  ;;  %7009 = vmatprep.subr.bf16.mxu1 %v6828_v31 }
 0x150   : > { %1934 = vrot.lane.b32.xlu0 %v9191_v2, %s8002_s22  ;;  %v9260_v58 = vpop.f32.mrb[30].mxu0  ;;  %v6041_v62 = vld [vmem:[%s13017_s3 + $0x140] sm:$0xff]  ;;  %6829 = vmatprep.subr.bf16.mxu0 %v6828_v31  ;;  %v6052_v31 = vld [vmem:[%s13017_s3 + $0x198] sm:$0xff]  ;;  %v2035_v2 = vlaneseq }
 0x151   : > { %13210 = vst [vmem:[#allocation34_spill] sm:$0xff] %v9260_v58  ;;  %v9268_v42 = vpop.f32.mrb[31].mxu0  ;;  %v6830_v30 = vpack.c.bf16 %v6043_v36, %v6041_v62  ;;  %v6047_v36 = vld [vmem:[%s13017_s3 + $0x170] sm:$0xff] }
 0x152   : > { %13211 = vst [vmem:[#allocation35_spill] sm:$0xff] %v9268_v42  ;;  %v736_v63 = vpop.f32.mrb[32].mxu1 }
 0x153   : > { %1787 = vrot.lane.b32.xlu1 %v736_v63, %s8002_s22  ;;  %v738_v17 = vpop.f32.mrb[33].mxu1  ;;  %7011 = vmatpush1.bf16.msra.mxu1 %v6830_v30 }
 0x154   : > { %1805 = vrot.lane.b32.xlu0 %v9195_v59, %s8002_s22  ;;  %v9279_v38 = vpop.f32.mrb[32].mxu0  ;;  %v6045_v17 = vld [vmem:[%s13017_s3 + $0x160] sm:$0xff]  ;;  %6831 = vmatpush1.bf16.msra.mxu0 %v6830_v30  ;;  %v6836_v30 = vpack.c.bf16 %v6052_v31, %v6050_v0  ;;  %v6054_v31 = vld [vmem:[%s13017_s3 + $0x1a8] sm:$0xff] }
 0x155   : > { %13212 = vst [vmem:[#allocation36_spill] sm:$0xff] %v9279_v38  ;;  %v9287_v62 = vpop.f32.mrb[33].mxu0  ;;  %v6834_v61 = vpack.c.bf16 %v6047_v36, %v6045_v17  ;;  %7013 = vmatprep.subr.bf16.mxu1 %v6832_v16  ;;  %v6051_v36 = vld [vmem:[%s13017_s3 + $0x190] sm:$0xff]  ;;  %6833 = vmatprep.subr.bf16.mxu0 %v6832_v16  ;;  %v6056_v16 = vld [vmem:[%s13017_s3 + $0x1b8] sm:$0xff] }
 0x156   : > { %13213 = vst [vmem:[#allocation37_spill] sm:$0xff] %v9287_v62  ;;  %v741_v63 = vpop.f32.mrb[34].mxu1 }
 0x157   : > { %1791 = vrot.lane.b32.xlu1 %v741_v63, %s8002_s22  ;;  %v743_v6 = vpop.f32.mrb[35].mxu1  ;;  %7015 = vmatpush1.bf16.msra.mxu1 %v6834_v61 }
 0x158   : > { %1938 = vrot.lane.b32.xlu0 %v9201_v32, %s8002_s22  ;;  %v9298_v53 = vpop.f32.mrb[34].mxu0  ;;  %v6049_v6 = vld [vmem:[%s13017_s3 + $0x180] sm:$0xff]  ;;  %6835 = vmatpush1.bf16.msra.mxu0 %v6834_v61  ;;  %v6840_v61 = vpack.c.bf16 %v6056_v16, %v6054_v31  ;;  %v6058_v16 = vld [vmem:[%s13017_s3 + $0x1c8] sm:$0xff] }
 0x159   : > { %13214 = vst [vmem:[#allocation38_spill] sm:$0xff] %v9298_v53  ;;  %v9306_v17 = vpop.f32.mrb[35].mxu0  ;;  %v6838_v53 = vpack.c.bf16 %v6051_v36, %v6049_v6  ;;  %7017 = vmatprep.subr.bf16.mxu1 %v6836_v30  ;;  %v6055_v36 = vld [vmem:[%s13017_s3 + $0x1b0] sm:$0xff]  ;;  %6837 = vmatprep.subr.bf16.mxu0 %v6836_v30  ;;  %v6060_v30 = vld [vmem:[%s13017_s3 + $0x1d8] sm:$0xff] }
 0x15a   : > { %13215 = vst [vmem:[#allocation39_spill] sm:$0xff] %v9306_v17  ;;  %v746_v63 = vpop.f32.mrb[36].mxu1 }
 0x15b   : > { %1795 = vrot.lane.b32.xlu1 %v746_v63, %s8002_s22  ;;  %v748_v38 = vpop.f32.mrb[37].mxu1  ;;  %7019 = vmatpush1.bf16.msra.mxu1 %v6838_v53 }
 0x15c   : > { %1809 = vrot.lane.b32.xlu0 %v9205_v4, %s8002_s22  ;;  %v9317_v0 = vpop.f32.mrb[36].mxu0  ;;  %v6053_v38 = vld [vmem:[%s13017_s3 + $0x1a0] sm:$0xff]  ;;  %6839 = vmatpush1.bf16.msra.mxu0 %v6838_v53  ;;  %v6844_v53 = vpack.c.bf16 %v6060_v30, %v6058_v16  ;;  %v6062_v30 = vld [vmem:[%s13017_s3 + $0x1e8] sm:$0xff] }
 0x15d   : > { %13216 = vst [vmem:[#allocation40_spill] sm:$0xff] %v9317_v0  ;;  %v9325_v6 = vpop.f32.mrb[37].mxu0  ;;  %v6842_v0 = vpack.c.bf16 %v6055_v36, %v6053_v38  ;;  %7021 = vmatprep.subr.bf16.mxu1 %v6840_v61  ;;  %v6059_v36 = vld [vmem:[%s13017_s3 + $0x1d0] sm:$0xff]  ;;  %6841 = vmatprep.subr.bf16.mxu0 %v6840_v61  ;;  %v6064_v61 = vld [vmem:[%s13017_s3 + $0x1f8] sm:$0xff] }
 0x15e   : > { %13217 = vst [vmem:[#allocation41_spill] sm:$0xff] %v9325_v6  ;;  %v751_v63 = vpop.f32.mrb[38].mxu1 }
 0x15f   : > { %1799 = vrot.lane.b32.xlu1 %v751_v63, %s8002_s22  ;;  %v753_v58 = vpop.f32.mrb[39].mxu1  ;;  %7023 = vmatpush1.bf16.msra.mxu1 %v6842_v0 }
 0x160   : > { %1942 = vrot.lane.b32.xlu0 %v9211_v15, %s8002_s22  ;;  %v9336_v31 = vpop.f32.mrb[38].mxu0  ;;  %v6057_v58 = vld [vmem:[%s13017_s3 + $0x1c0] sm:$0xff]  ;;  %6843 = vmatpush1.bf16.msra.mxu0 %v6842_v0  ;;  %v6848_v0 = vpack.c.bf16 %v6064_v61, %v6062_v30  ;;  %v6066_v61 = vld [vmem:[%s13017_s3 + $0x208] sm:$0xff] }
 0x161   : > { %13218 = vst [vmem:[#allocation42_spill] sm:$0xff] %v9336_v31  ;;  %v9344_v38 = vpop.f32.mrb[39].mxu0  ;;  %v6846_v31 = vpack.c.bf16 %v6059_v36, %v6057_v58  ;;  %7025 = vmatprep.subr.bf16.mxu1 %v6844_v53  ;;  %v6063_v36 = vld [vmem:[%s13017_s3 + $0x1f0] sm:$0xff]  ;;  %6845 = vmatprep.subr.bf16.mxu0 %v6844_v53  ;;  %v6068_v53 = vld [vmem:[%s13017_s3 + $0x218] sm:$0xff] }
 0x162   : > { %13219 = vst [vmem:[#allocation43_spill] sm:$0xff] %v9344_v38  ;;  %v756_v63 = vpop.f32.mrb[40].mxu1 }
 0x163   : > { %1803 = vrot.lane.b32.xlu1 %v756_v63, %s8002_s22  ;;  %v758_v28 = vpop.f32.mrb[41].mxu1  ;;  %7027 = vmatpush1.bf16.msra.mxu1 %v6846_v31 }
 0x164   : > { %2117 = vrot.lane.b32.xlu0 %v9228_v57, %s8002_s22  ;;  %v9355_v16 = vpop.f32.mrb[40].mxu0  ;;  %v6061_v28 = vld [vmem:[%s13017_s3 + $0x1e0] sm:$0xff]  ;;  %6847 = vmatpush1.bf16.msra.mxu0 %v6846_v31  ;;  %v6852_v31 = vpack.c.bf16 %v6068_v53, %v6066_v61  ;;  %v6070_v53 = vld [vmem:[%s13017_s3 + $0x228] sm:$0xff] }
 0x165   : > { %13220 = vst [vmem:[#allocation44_spill] sm:$0xff] %v9355_v16  ;;  %v9363_v58 = vpop.f32.mrb[41].mxu0  ;;  %v6850_v16 = vpack.c.bf16 %v6063_v36, %v6061_v28  ;;  %7029 = vmatprep.subr.bf16.mxu1 %v6848_v0  ;;  %6849 = vmatprep.subr.bf16.mxu0 %v6848_v0  ;;  %v6072_v0 = vld [vmem:[%s13017_s3 + $0x238] sm:$0xff] }
 0x166   : > { %13221 = vst [vmem:[#allocation45_spill] sm:$0xff] %v9363_v58  ;;  %v761_v63 = vpop.f32.mrb[42].mxu1 }
 0x167   : > { %1807 = vrot.lane.b32.xlu1 %v761_v63, %s8002_s22  ;;  %v763_v47 = vpop.f32.mrb[43].mxu1  ;;  %7031 = vmatpush1.bf16.msra.mxu1 %v6850_v16 }
 0x168   : > { %1775 = vrot.lane.b32.xlu0 %v9230_v18, %s8002_s22  ;;  %v9374_v30 = vpop.f32.mrb[42].mxu0  ;;  %v6065_v47 = vld [vmem:[%s13017_s3 + $0x200] sm:$0xff]  ;;  %v6067_v18 = vld [vmem:[%s13017_s3 + $0x210] sm:$0xff]  ;;  %6851 = vmatpush1.bf16.msra.mxu0 %v6850_v16  ;;  %v6856_v16 = vpack.c.bf16 %v6072_v0, %v6070_v53 }
 0x169   : > { %13222 = vst [vmem:[#allocation46_spill] sm:$0xff] %v9374_v30  ;;  %v9382_v28 = vpop.f32.mrb[43].mxu0  ;;  %v6854_v63 = vpack.c.bf16 %v6067_v18, %v6065_v47  ;;  %7033 = vmatprep.subr.bf16.mxu1 %v6852_v31  ;;  %v6071_v18 = vld [vmem:[%s13017_s3 + $0x230] sm:$0xff]  ;;  %6853 = vmatprep.subr.bf16.mxu0 %v6852_v31 }
 0x16a   : > { %13223 = vst [vmem:[#allocation47_spill] sm:$0xff] %v9382_v28  ;;  %v766_v36 = vpop.f32.mrb[44].mxu1 }
 0x16b   : > { %1811 = vrot.lane.b32.xlu1 %v766_v36, %s8002_s22  ;;  %v768_v30 = vpop.f32.mrb[45].mxu1  ;;  %7035 = vmatpush1.bf16.msra.mxu1 %v6854_v63 }
 0x16c   : > { %2121 = vrot.lane.b32.xlu0 %v9236_v11, %s8002_s22  ;;  %v9393_v61 = vpop.f32.mrb[44].mxu0  ;;  %v6069_v30 = vld [vmem:[%s13017_s3 + $0x220] sm:$0xff]  ;;  %6855 = vmatpush1.bf16.msra.mxu0 %v6854_v63 }
 0x16d   : > { %13224 = vst [vmem:[#allocation48_spill] sm:$0xff] %v9393_v61  ;;  %v9401_v47 = vpop.f32.mrb[45].mxu0  ;;  %v6858_v61 = vpack.c.bf16 %v6071_v18, %v6069_v30  ;;  %7037 = vmatprep.subr.bf16.mxu1 %v6856_v16  ;;  %6857 = vmatprep.subr.bf16.mxu0 %v6856_v16 }
 0x16e   : > { %13225 = vst [vmem:[#allocation49_spill] sm:$0xff] %v9401_v47  ;;  %v9409_v36 = vpop.f32.mrb[46].mxu1 }
 0x16f   : > { %13226 = vst [vmem:[#allocation50_spill] sm:$0xff] %v9409_v36  ;;  %v773_v11 = vpop.f32.mrb[47].mxu1  ;;  %7039 = vmatpush1.bf16.msra.mxu1 %v6858_v61 }
 0x170   : > { %2125 = vrot.lane.b32.xlu0 %v9249_v43, %s8002_s22  ;;  %v9413_v53 = vpop.f32.mrb[46].mxu0  ;;  %6859 = vmatpush1.bf16.msra.mxu0 %v6858_v61 }
 0x171   : > { %13227 = vst [vmem:[#allocation51_spill] sm:$0xff] %v9413_v53  ;;  %v9415_v0 = vpop.f32.mrb[47].mxu0 }
 0x172   : > { %13228 = vst [vmem:[#allocation52_spill] sm:$0xff] %v9415_v0  ;;  %v9417_v57 = vpop.f32.mrb[48].mxu1 }
 0x173   : > { %v1041_v54 = vpop.f32.mrb[49].mxu1 }
 0x174   : > { %2129 = vrot.lane.b32.xlu0 %v9268_v42, %s8002_s22  ;;  %v9421_v31 = vpop.f32.mrb[48].mxu0 }
 0x175   : > { %13229 = vst [vmem:[#allocation53_spill] sm:$0xff] %v9421_v31  ;;  %v9423_v11 = vpop.f32.mrb[49].mxu0 }
 0x176   : > { %13230 = vst [vmem:[#allocation54_spill] sm:$0xff] %v9423_v11  ;;  %v1044_v63 = vpop.f32.mrb[50].mxu1 }
 0x177   : > { %1908 = vrot.lane.b32.xlu1 %v1044_v63, %s8002_s22  ;;  %v1046_v16 = vpop.f32.mrb[51].mxu1 }
 0x178   : > { %2133 = vrot.lane.b32.xlu0 %v9287_v62, %s8002_s22  ;;  %v9428_v30 = vpop.f32.mrb[50].mxu0 }
 0x179   : > { %13231 = vst [vmem:[#allocation55_spill] sm:$0xff] %v9428_v30  ;;  %v9430_v18 = vpop.f32.mrb[51].mxu0 }
 0x17a   : > { %13232 = vst [vmem:[#allocation56_spill] sm:$0xff] %v9430_v18  ;;  %v1049_v61 = vpop.f32.mrb[52].mxu1 }
 0x17b   : > { %1912 = vrot.lane.b32.xlu1 %v1049_v61, %s8002_s22  ;;  %v1051_v54 = vpop.f32.mrb[53].mxu1 }
 0x17c   : > { %2137 = vrot.lane.b32.xlu0 %v9306_v17, %s8002_s22  ;;  %v9435_v53 = vpop.f32.mrb[52].mxu0 }
 0x17d   : > { %13233 = vst [vmem:[#allocation57_spill] sm:$0xff] %v9435_v53  ;;  %v9437_v42 = vpop.f32.mrb[53].mxu0 }
 0x17e   : > { %13234 = vst [vmem:[#allocation58_spill] sm:$0xff] %v9437_v42  ;;  %v1054_v63 = vpop.f32.mrb[54].mxu1 }
 0x17f   : > { %1916 = vrot.lane.b32.xlu1 %v1054_v63, %s8002_s22  ;;  %v1056_v16 = vpop.f32.mrb[55].mxu1 }
 0x180   : > { %2141 = vrot.lane.b32.xlu0 %v9325_v6, %s8002_s22  ;;  %v9442_v62 = vpop.f32.mrb[54].mxu0 }
 0x181   : > { %13235 = vst [vmem:[#allocation59_spill] sm:$0xff] %v9442_v62  ;;  %v9444_v43 = vpop.f32.mrb[55].mxu0 }
 0x182   : > { %13236 = vst [vmem:[#allocation60_spill] sm:$0xff] %v9444_v43  ;;  %v1059_v61 = vpop.f32.mrb[56].mxu1 }
 0x183   : > { %1920 = vrot.lane.b32.xlu1 %v1059_v61, %s8002_s22  ;;  %v1061_v54 = vpop.f32.mrb[57].mxu1 }
 0x184   : > { %2145 = vrot.lane.b32.xlu0 %v9344_v38, %s8002_s22  ;;  %v9449_v17 = vpop.f32.mrb[56].mxu0 }
 0x185   : > { %13237 = vst [vmem:[#allocation61_spill] sm:$0xff] %v9449_v17  ;;  %v9451_v53 = vpop.f32.mrb[57].mxu0 }
 0x186   : > { %13238 = vst [vmem:[#allocation62_spill] sm:$0xff] %v9451_v53  ;;  %v9453_v63 = vpop.permute.xlu0 %1769  ;;  %v1064_v16 = vpop.f32.mrb[58].mxu1 }
 0x187   : > { %13239 = vst [vmem:[#allocation63_spill] sm:$0xff] %v9453_v63  ;;  %1924 = vrot.lane.b32.xlu1 %v1064_v16, %s8002_s22  ;;  %v1066_v6 = vpop.f32.mrb[59].mxu1 }
 0x188   : > { %2149 = vrot.lane.b32.xlu0 %v9363_v58, %s8002_s22  ;;  %v9458_v62 = vpop.f32.mrb[58].mxu0 }
 0x189   : > { %13240 = vst [vmem:[#allocation64_spill] sm:$0xff] %v9458_v62  ;;  %v9460_v61 = vpop.f32.mrb[59].mxu0 }
 0x18a   : > { %13241 = vst [vmem:[#allocation65_spill] sm:$0xff] %v9460_v61  ;;  %v9462_v54 = vpop.permute.xlu0 %1773  ;;  %v1069_v38 = vpop.f32.mrb[60].mxu1 }
 0x18b   : > { %1928 = vrot.lane.b32.xlu1 %v1069_v38, %s8002_s22  ;;  %v1071_v17 = vpop.f32.mrb[61].mxu1 }
 0x18c   : > { %2153 = vrot.lane.b32.xlu0 %v9382_v28, %s8002_s22  ;;  %v9467_v63 = vpop.f32.mrb[60].mxu0  ;;  %v9545_v5 = vpop.permute.xlu1 %1906 }
 0x18d   : > { %13242 = vst [vmem:[#allocation66_spill] sm:$0xff] %v9467_v63  ;;  %v9469_v16 = vpop.f32.mrb[61].mxu0 }
 0x18e   : > { %13243 = vst [vmem:[#allocation67_spill] sm:$0xff] %v9469_v16  ;;  %v9471_v6 = vpop.permute.xlu0 %1777  ;;  %v1074_v58 = vpop.f32.mrb[62].mxu1 }
 0x18f   : > { %1932 = vrot.lane.b32.xlu1 %v1074_v58, %s8002_s22  ;;  %v1076_v62 = vpop.f32.mrb[63].mxu1 }
 0x190   : > { %2249 = vrot.lane.b32.xlu0 %v9423_v11, %s8002_s22  ;;  %v9476_v30 = vpop.f32.mrb[62].mxu0 }
 0x191   : > { %13244 = vst [vmem:[#allocation68_spill] sm:$0xff] %v9476_v30  ;;  %v9478_v38 = vpop.f32.mrb[63].mxu0 }
 0x192   : > { %13245 = vst [vmem:[#allocation69_spill] sm:$0xff] %v9478_v38  ;;  %v9480_v17 = vpop.permute.xlu0 %1910  ;;  %v1079_v28 = vpop.f32.mrb[64].mxu1 }
 0x193   : > { %1936 = vrot.lane.b32.xlu1 %v1079_v28, %s8002_s22  ;;  %v1081_v63 = vpop.f32.mrb[65].mxu1 }
 0x194   : > { %2253 = vrot.lane.b32.xlu0 %v9430_v18, %s8002_s22  ;;  %v9485_v31 = vpop.f32.mrb[64].mxu0 }
 0x195   : > { %13246 = vst [vmem:[#allocation70_spill] sm:$0xff] %v9485_v31  ;;  %v9487_v58 = vpop.f32.mrb[65].mxu0 }
 0x196   : > { %13247 = vst [vmem:[#allocation71_spill] sm:$0xff] %v9487_v58  ;;  %v9489_v62 = vpop.permute.xlu0 %1781  ;;  %v1084_v11 = vpop.f32.mrb[66].mxu1 }
 0x197   : > { %1940 = vrot.lane.b32.xlu1 %v1084_v11, %s8002_s22  ;;  %v1086_v30 = vpop.f32.mrb[67].mxu1 }
 0x198   : > { %2257 = vrot.lane.b32.xlu0 %v9437_v42, %s8002_s22  ;;  %v9494_v12 = vpop.f32.mrb[66].mxu0 }
 0x199   : > { %13248 = vst [vmem:[#allocation72_spill] sm:$0xff] %v9494_v12  ;;  %v9496_v28 = vpop.f32.mrb[67].mxu0 }
 0x19a   : > { %13249 = vst [vmem:[#allocation73_spill] sm:$0xff] %v9496_v28  ;;  %v9498_v63 = vpop.permute.xlu0 %1914  ;;  %v1089_v18 = vpop.f32.mrb[68].mxu1 }
 0x19b   : > { %1944 = vrot.lane.b32.xlu1 %v1089_v18, %s8002_s22  ;;  %v1091_v31 = vpop.f32.mrb[69].mxu1 }
 0x19c   : > { %2261 = vrot.lane.b32.xlu0 %v9444_v43, %s8002_s22  ;;  %v9503_v1 = vpop.f32.mrb[68].mxu0 }
 0x19d   : > { %13250 = vst [vmem:[#allocation74_spill] sm:$0xff] %v9503_v1  ;;  %v9505_v11 = vpop.f32.mrb[69].mxu0 }
 0x19e   : > { %13251 = vst [vmem:[#allocation75_spill] sm:$0xff] %v9505_v11  ;;  %v9507_v30 = vpop.permute.xlu0 %1785  ;;  %v9509_v42 = vpop.f32.mrb[70].mxu1 }
 0x19f   : > { %13252 = vst [vmem:[#allocation76_spill] sm:$0xff] %v9509_v42  ;;  %v1096_v12 = vpop.f32.mrb[71].mxu1 }
 0x1a0   : > { %2265 = vrot.lane.b32.xlu0 %v9451_v53, %s8002_s22  ;;  %v9513_v15 = vpop.f32.mrb[70].mxu0 }
 0x1a1   : > { %13253 = vst [vmem:[#allocation77_spill] sm:$0xff] %v9513_v15  ;;  %v9515_v4 = vpop.f32.mrb[71].mxu0  ;;  %v2430_v15 = vld [vmem:[%s13017_s3 + $0x8] sm:$0xff] }
 0x1a2   : > { %13254 = vst [vmem:[#allocation78_spill] sm:$0xff] %v9515_v4  ;;  %v9517_v31 = vpop.permute.xlu0 %1918  ;;  %v1362_v18 = vpop.f32.mrb[72].mxu1 }
 0x1a3   : > { %2119 = vrot.lane.b32.xlu1 %v1362_v18, %s8002_s22  ;;  %v1364_v1 = vpop.f32.mrb[73].mxu1 }
 0x1a4   : > { %2269 = vrot.lane.b32.xlu0 %v9460_v61, %s8002_s22  ;;  %v2432_v1 = vld [vmem:[%s13017_s3 + $0x18] sm:$0xff] }
 0x1a5   : > { %v6860_v18 = vpack.c.bf16 %v2432_v1, %v2430_v15 }
 0x1a6   : > { %v9522_v43 = vpop.permute.xlu0 %1789  ;;  %v1367_v42 = vpop.f32.mrb[74].mxu1 }
 0x1a7   : > { %2123 = vrot.lane.b32.xlu1 %v1367_v42, %s8002_s22  ;;  %v1369_v12 = vpop.f32.mrb[75].mxu1  ;;  %7041 = vmatprep.subr.bf16.mxu1 %v6860_v18 }
 0x1a8   : > { %2273 = vrot.lane.b32.xlu0 %v9469_v16, %s8002_s22  ;;  %6861 = vmatprep.subr.bf16.mxu0 %v6860_v18 }
 0x1aa   : > { %v9533_v53 = vpop.permute.xlu0 %1922  ;;  %v1372_v61 = vpop.f32.mrb[76].mxu1 }
 0x1ab   : > { %2127 = vrot.lane.b32.xlu1 %v1372_v61, %s8002_s22  ;;  %v1374_v9 = vpop.f32.mrb[77].mxu1 }
 0x1ac   : > { %2277 = vrot.lane.b32.xlu0 %v9478_v38, %s8002_s22 }
 0x1ae   : > { %v9538_v42 = vpop.permute.xlu0 %1793  ;;  %v1377_v12 = vpop.f32.mrb[78].mxu1 }
 0x1af   : > { %2131 = vrot.lane.b32.xlu1 %v1377_v12, %s8002_s22  ;;  %v1379_v16 = vpop.f32.mrb[79].mxu1 }
 0x1b0   : > { %2281 = vrot.lane.b32.xlu0 %v9487_v58, %s8002_s22 }
 0x1b2   : > { %v9543_v15 = vpop.permute.xlu0 %1926  ;;  %v1382_v1 = vpop.f32.mrb[80].mxu1 }
 0x1b3   : > { %2135 = vrot.lane.b32.xlu1 %v1382_v1, %s8002_s22  ;;  %v1384_v9 = vpop.f32.mrb[81].mxu1 }
 0x1b4   : > { %2285 = vrot.lane.b32.xlu0 %v9496_v28, %s8002_s22 }
 0x1b5   : > { %v9555_v12 = vpop.permute.xlu1 %1771 }
 0x1b6   : > { %v9550_v61 = vpop.permute.xlu0 %1797  ;;  %v1387_v18 = vpop.f32.mrb[82].mxu1  ;;  %13255 = vst [vmem:[#allocation79_spill] sm:$0xff] %v9555_v12 }
 0x1b7   : > { %2139 = vrot.lane.b32.xlu1 %v1387_v18, %s8002_s22  ;;  %v1389_v16 = vpop.f32.mrb[83].mxu1 }
 0x1b8   : > { %1902 = vrot.lane.b32.xlu0 %v9093_v23, %s8002_s22 }
 0x1ba   : > { %v9557_v58 = vpop.permute.xlu0 %1930  ;;  %v1392_v38 = vpop.f32.mrb[84].mxu1 }
 0x1bb   : > { %2143 = vrot.lane.b32.xlu1 %v1392_v38, %s8002_s22  ;;  %v1394_v1 = vpop.f32.mrb[85].mxu1 }
 0x1bc   : > { %2157 = vrot.lane.b32.xlu0 %v9401_v47, %s8002_s22 }
 0x1bd   : > { %v9562_v9 = vpop.permute.xlu1 %1779 }
 0x1be   : > { %v9564_v28 = vpop.permute.xlu0 %1801  ;;  %v1397_v18 = vpop.f32.mrb[86].mxu1 }
 0x1bf   : > { %13256 = vst [vmem:[#allocation80_spill] sm:$0xff] %v9564_v28  ;;  %2147 = vrot.lane.b32.xlu1 %v1397_v18, %s8002_s22  ;;  %v1399_v16 = vpop.f32.mrb[87].mxu1 }
 0x1c0   : > { %2289 = vrot.lane.b32.xlu0 %v9505_v11, %s8002_s22 }
 0x1c1   : > { %v9569_v23 = vpop.permute.xlu1 %1783 }
 0x1c2   : > { %v9571_v12 = vpop.permute.xlu0 %1934  ;;  %v1402_v38 = vpop.f32.mrb[88].mxu1 }
 0x1c3   : > { %13257 = vst [vmem:[#allocation81_spill] sm:$0xff] %v9571_v12  ;;  %2151 = vrot.lane.b32.xlu1 %v1402_v38, %s8002_s22  ;;  %v1404_v1 = vpop.f32.mrb[89].mxu1 }
 0x1c4   : > { %1813 = vrot.lane.b32.xlu0 %v9215_v37, %s8002_s22 }
 0x1c5   : > { %v9576_v47 = vpop.permute.xlu1 %1787 }
 0x1c6   : > { %v9578_v32 = vpop.permute.xlu0 %1805  ;;  %v1407_v18 = vpop.f32.mrb[90].mxu1 }
 0x1c7   : > { %13258 = vst [vmem:[#allocation82_spill] sm:$0xff] %v9578_v32  ;;  %2155 = vrot.lane.b32.xlu1 %v1407_v18, %s8002_s22  ;;  %v1409_v16 = vpop.f32.mrb[91].mxu1 }
 0x1c8   : > { %1946 = vrot.lane.b32.xlu0 %v9221_v49, %s8002_s22 }
 0x1c9   : > { %v9583_v11 = vpop.permute.xlu1 %1791 }
 0x1ca   : > { %v9585_v59 = vpop.f32.mrb[92].mxu1  ;;  %v9587_v1 = vpop.permute.xlu0 %1938 }
 0x1cb   : > { %v1414_v38 = vpop.f32.mrb[93].mxu1  ;;  %13259 = vst [vmem:[#allocation83_spill] sm:$0xff] %v9587_v1 }
 0x1cc   : > { %2161 = vrot.lane.b32.xlu0 %v9415_v0, %s8002_s22 }
 0x1cd   : > { %v9591_v37 = vpop.permute.xlu1 %1795 }
 0x1ce   : > { %v9593_v32 = vpop.f32.mrb[94].mxu1  ;;  %v9597_v18 = vpop.permute.xlu0 %1809 }
 0x1cf   : > { %13260 = vst [vmem:[#allocation84_spill] sm:$0xff] %v9593_v32  ;;  %v1419_v36 = vpop.f32.mrb[95].mxu1  ;;  %13261 = vst [vmem:[#allocation85_spill] sm:$0xff] %v9597_v18 }
 0x1d0   : > { %2293 = vrot.lane.b32.xlu0 %v9515_v4, %s8002_s22 }
 0x1d1   : > { %v9599_v49 = vpop.permute.xlu1 %1799 }
 0x1d2   : > { %v1685_v16 = vpop.f32.mrb[96].mxu1  ;;  %v9603_v56 = vpop.permute.xlu0 %1942 }
 0x1d3   : > { %2251 = vrot.lane.b32.xlu1 %v1685_v16, %s8002_s22  ;;  %v1687_v38 = vpop.f32.mrb[97].mxu1  ;;  %13262 = vst [vmem:[#allocation86_spill] sm:$0xff] %v9603_v56 }
 0x1d5   : > { %v9605_v52 = vpop.permute.xlu1 %1803 }
 0x1d6   : > { %v1690_v1 = vpop.f32.mrb[98].mxu1  ;;  %13263 = vst [vmem:[#allocation87_spill] sm:$0xff] %v9605_v52  ;;  %v9608_v32 = vpop.permute.xlu0 %2117 }
 0x1d7   : > { %2255 = vrot.lane.b32.xlu1 %v1690_v1, %s8002_s22  ;;  %v1692_v0 = vpop.f32.mrb[99].mxu1  ;;  %13264 = vst [vmem:[#allocation88_spill] sm:$0xff] %v9608_v32  ;;  %v9613_v1 = vshrl.u32 %v2035_v2, 7 }
 0x1d9   : > { %v9610_v12 = vpop.permute.xlu1 %1807  ;;  %13266 = vst [vmem:[#allocation90_spill] sm:$0xff] %v9613_v1  ;;  %v13089_v2 = vsub.s32 0, %v9613_v1 }
 0x1da   : > { %v1695_v36 = vpop.f32.mrb[100].mxu1  ;;  %13265 = vst [vmem:[#allocation89_spill] sm:$0xff] %v9610_v12  ;;  %v1776_v56 = vpop.permute.xlu0 %1775 }
 0x1db   : > { %2259 = vrot.lane.b32.xlu1 %v1695_v36, %s8002_s22  ;;  %v1697_v4 = vpop.f32.mrb[101].mxu1 }
 0x1dc   : > { %v13088_v4 = vsub.s32 1, %v9613_v1 }
 0x1dd   : > { %v9616_v55 = vpop.permute.xlu1 %1811 }
 0x1de   : > { %v1700_v18 = vpop.f32.mrb[102].mxu1  ;;  %13267 = vst [vmem:[#allocation91_spill] sm:$0xff] %v9616_v55 }
 0x1df   : > { %2263 = vrot.lane.b32.xlu1 %v1700_v18, %s8002_s22  ;;  %v1702_v16 = vpop.f32.mrb[103].mxu1  ;;  %v1744_v18 = vld [vmem:[%s13016_s2] sm:$0x3] }
 0x1e0   : > { %v1819_v16 = vsel %vm1817_vm2, %v9462_v54, %v1776_v56  ;;  %v9629_v55 = vrot.slane %v1744_v18, %v13088_v4  ;;  %v9637_v52 = vrot.slane %v1744_v18, %v13089_v2 }
 0x1e1   : > { %v1856_v28 = vmax.f32 %v9095_v24, %v1819_v16  ;;  %v2429_v24 = vld [vmem:[%s13017_s3] sm:$0xff]  ;;  %v2434_v16 = vld [vmem:[%s13017_s3 + $0x28] sm:$0xff] }
 0x1e2   : > { %v1705_v38 = vpop.f32.mrb[104].mxu1 }
 0x1e3   : > { %2267 = vrot.lane.b32.xlu1 %v1705_v38, %s8002_s22  ;;  %v1707_v0 = vpop.f32.mrb[105].mxu1 }
 0x1e4   : > { %v1857_v0 = vmax.f32 %v9097_v29, %v1776_v56  ;;  %v1820_v56 = vsel %vm1817_vm2, %v9471_v6, %v9562_v9 }
 0x1e6   : > { %v1710_v36 = vpop.f32.mrb[106].mxu1 }
 0x1e7   : > { %2271 = vrot.lane.b32.xlu1 %v1710_v36, %s8002_s22  ;;  %v1712_v32 = vpop.f32.mrb[107].mxu1 }
 0x1e9   : > { %v1909_v38 = vpop.permute.xlu1 %1908 }
 0x1ea   : > { %v1951_v36 = vsel %vm1817_vm2, %v9545_v5, %v1909_v38  ;;  %v1989_v32 = vmax.f32 %v9106_v48, %v1909_v38  ;;  %v1715_v12 = vpop.f32.mrb[108].mxu1  ;;  %v2431_v48 = vld [vmem:[%s13017_s3 + $0x10] sm:$0xff]  ;;  %v2436_v38 = vld [vmem:[%s13017_s3 + $0x38] sm:$0xff] }
 0x1eb   : > { %v1988_v54 = vmax.f32 %v9104_v41, %v1951_v36  ;;  %2275 = vrot.lane.b32.xlu1 %v1715_v12, %s8002_s22  ;;  %v1717_v29 = vpop.f32.mrb[109].mxu1  ;;  %v1859_v41 = vmax.f32 %v9112_v10, %v9562_v9  ;;  %v9671_v36 = vpack.c.bf16 %v2431_v48, %v2429_v24 }
 0x1ec   : > { %v2013_v4 = vmax.f32 %v1857_v0, %v1989_v32  ;;  %v1858_v0 = vmax.f32 %v9108_v50, %v1820_v56  ;;  %v9673_v32 = vpop.permute.xlu0 %2121  ;;  %v2433_v56 = vld [vmem:[%s13017_s3 + $0x20] sm:$0xff] }
 0x1ed   : > { %v2012_v5 = vmax.f32 %v1856_v28, %v1988_v54  ;;  %v1913_v46 = vpop.permute.xlu1 %1912 }
 0x1ee   : > { %v2048_v12 = vadd.f32 %v9629_v55, %v2013_v4  ;;  %v1952_v18 = vsel %vm1817_vm2, %v9480_v17, %v1913_v46  ;;  %v1991_v6 = vmax.f32 %v9121_v44, %v1913_v46  ;;  %v1720_v28 = vpop.f32.mrb[110].mxu1  ;;  %v1821_v44 = vsel %vm1817_vm2, %v9489_v62, %v9569_v23  ;;  %v2435_v62 = vld [vmem:[%s13017_s3 + $0x30] sm:$0xff] }
 0x1ef   : > { %v2047_v10 = vadd.f32 %v9637_v52, %v2012_v5  ;;  %v1990_v9 = vmax.f32 %v9117_v35, %v1952_v18  ;;  %2279 = vrot.lane.b32.xlu1 %v1720_v28, %s8002_s22  ;;  %v1722_v17 = vpop.f32.mrb[111].mxu1  ;;  %v9677_v35 = vpack.c.bf16 %v2436_v38, %v2434_v16  ;;  %v1861_v5 = vmax.f32 %v9125_v22, %v9569_v23  ;;  %v2438_v18 = vld [vmem:[%s13017_s3 + $0x48] sm:$0xff] }
 0x1f0   : > { %v2015_v46 = vmax.f32 %v1859_v41, %v1991_v6  ;;  %v9669_v4 = vmax.f32 %v2048_v12, 0.0  ;;  %v2440_v6 = vld [vmem:[%s13017_s3 + $0x58] sm:$0xff]  ;;  %v1860_v23 = vmax.f32 %v9123_v21, %v1821_v44  ;;  %v1822_v28 = vsel %vm1817_vm2, %v9507_v30, %v9576_v47  ;;  %v2437_v17 = vld [vmem:[%s13017_s3 + $0x40] sm:$0xff]  ;;  %v2439_v30 = vld [vmem:[%s13017_s3 + $0x50] sm:$0xff] }
 0x1f1   : > { %v9675_v50 = vmax.f32 %v2047_v10, 0.0  ;;  %v2014_v54 = vmax.f32 %v1858_v0, %v1990_v9  ;;  %v1917_v29 = vpop.permute.xlu1 %1916  ;;  %v9710_v0 = vpack.c.bf16 %v2435_v62, %v2433_v56  ;;  %v9715_v9 = vpack.c.bf16 %v2440_v6, %v2438_v18  ;;  %v2442_v62 = vld [vmem:[%s13017_s3 + $0x68] sm:$0xff] }
 0x1f2   : > { %13268 = vst [vmem:[#allocation92_spill] sm:$0xff] %v9669_v4  ;;  %v2050_v24 = vadd.f32 %v9629_v55, %v2015_v46  ;;  %v1953_v48 = vsel %vm1817_vm2, %v9498_v63, %v1917_v29  ;;  %v1993_v41 = vmax.f32 %v9134_v26, %v1917_v29  ;;  %v1725_v12 = vpop.f32.mrb[112].mxu1  ;;  %6231 = vmatprep.mubr.msk.f32.mxu1 %vm2613_vm3, %v9669_v4 }
 0x1f3   : > { %13269 = vst [vmem:[#allocation93_spill] sm:$0xff] %v9675_v50  ;;  %v2049_v22 = vadd.f32 %v9637_v52, %v2014_v54  ;;  %v1992_v63 = vmax.f32 %v9132_v3, %v1953_v48  ;;  %3433 = vmatmul.mubr.f32.vlgmr.msra.gmra.mrb[120].mxu1 %v9675_v50  ;;  %2283 = vrot.lane.b32.xlu1 %v1725_v12, %s8002_s22  ;;  %v1727_v26 = vpop.f32.mrb[113].mxu1 }
 0x1f4   : > { %v9707_v16 = vmax.f32 %v2050_v24, 0.0  ;;  %v2017_v38 = vmax.f32 %v1861_v5, %v1993_v41  ;;  %7043 = vmatpush1.bf16.msra.mxu1 %v9671_v36  ;;  %v1863_v44 = vmax.f32 %v9138_v7, %v9576_v47  ;;  %v2444_v5 = vld [vmem:[%s13017_s3 + $0x78] sm:$0xff]  ;;  %v1862_v7 = vmax.f32 %v9136_v60, %v1822_v28  ;;  %v9738_v47 = vpop.permute.xlu0 %2125 }
 0x1f5   : > { %v9712_v21 = vmax.f32 %v2049_v22, 0.0  ;;  %v2016_v10 = vmax.f32 %v1860_v23, %v1992_v63  ;;  %v1921_v3 = vpop.permute.xlu1 %1920  ;;  %7045 = vmatprep.subr.bf16.mxu1 %v9677_v35  ;;  %v1823_v48 = vsel %vm1817_vm2, %v9522_v43, %v9583_v11  ;;  %v9750_v60 = vpack.c.bf16 %v2439_v30, %v2437_v17  ;;  %v2441_v22 = vld [vmem:[%s13017_s3 + $0x60] sm:$0xff]  ;;  %v2443_v43 = vld [vmem:[%s13017_s3 + $0x70] sm:$0xff]  ;;  %v2448_v17 = vld [vmem:[%s13017_s3 + $0x98] sm:$0xff] }
 0x1f6   : > { %13270 = vst [vmem:[#allocation94_spill] sm:$0xff] %v9707_v16  ;;  %v2052_v46 = vadd.f32 %v9629_v55, %v2017_v38  ;;  %v1954_v54 = vsel %vm1817_vm2, %v9517_v31, %v1921_v3  ;;  %v1995_v29 = vmax.f32 %v9147_v13, %v1921_v3  ;;  %v1730_v56 = vpop.f32.mrb[114].mxu1  ;;  %6232 = vmatprep.mubr.msk.f32.mxu1 %vm2613_vm3, %v9707_v16  ;;  %v2446_v3 = vld [vmem:[%s13017_s3 + $0x88] sm:$0xff] }
 0x1f7   : > { %13271 = vst [vmem:[#allocation95_spill] sm:$0xff] %v9712_v21  ;;  %v2051_v31 = vadd.f32 %v9637_v52, %v2016_v10  ;;  %v1994_v13 = vmax.f32 %v9143_v8, %v1954_v54  ;;  %3439 = vmatmul.mubr.f32.gmra.mrb[122].mxu1 %v9712_v21  ;;  %2287 = vrot.lane.b32.xlu1 %v1730_v56, %s8002_s22  ;;  %v1732_v24 = vpop.f32.mrb[115].mxu1  ;;  %v13324_v21 = vld [vmem:[#allocation33_spill] sm:$0xff] }
 0x1f8   : > { %v9747_v41 = vmax.f32 %v2052_v46, 0.0  ;;  %v2019_v12 = vmax.f32 %v1863_v44, %v1995_v29  ;;  %7047 = vmatpush1.bf16.msra.mxu1 %v9710_v0  ;;  %v9755_v23 = vpack.c.bf16 %v2444_v5, %v2442_v62  ;;  %v1865_v63 = vmax.f32 %v9151_v19, %v9583_v11  ;;  %v9791_v54 = vpop.permute.xlu0 %2129  ;;  %v2447_v62 = vld [vmem:[%s13017_s3 + $0x90] sm:$0xff] }
 0x1f9   : > { %v9752_v18 = vmax.f32 %v2051_v31, 0.0  ;;  %v2018_v6 = vmax.f32 %v1862_v7, %v1994_v13  ;;  %v1925_v8 = vpop.permute.xlu1 %1924  ;;  %7049 = vmatprep.subr.bf16.mxu1 %v9715_v9  ;;  %v1864_v19 = vmax.f32 %v9149_v14, %v1823_v48  ;;  %v1824_v30 = vsel %vm1817_vm2, %v9538_v42, %v9591_v37  ;;  %v2445_v42 = vld [vmem:[%s13017_s3 + $0x80] sm:$0xff]  ;;  %v2450_v48 = vld [vmem:[%s13017_s3 + $0xa8] sm:$0xff] }
 0x1fa   : > { %13272 = vst [vmem:[#allocation96_spill] sm:$0xff] %v9747_v41  ;;  %v2054_v26 = vadd.f32 %v9629_v55, %v2019_v12  ;;  %v1955_v28 = vsel %vm1817_vm2, %v9533_v53, %v1925_v8  ;;  %v1997_v38 = vmax.f32 %v9160_v25, %v1925_v8  ;;  %6233 = vmatprep.mubr.msk.f32.mxu1 %vm2613_vm3, %v9747_v41  ;;  %v1735_v10 = vpop.f32.mrb[116].mxu1 }
 0x1fb   : > { %13273 = vst [vmem:[#allocation97_spill] sm:$0xff] %v9752_v18  ;;  %v2053_v11 = vadd.f32 %v9637_v52, %v2018_v6  ;;  %v1996_v53 = vmax.f32 %v9156_v20, %v1955_v28  ;;  %3445 = vmatmul.mubr.f32.gmra.mrb[124].mxu1 %v9752_v18  ;;  %1904 = vrot.lane.b32.xlu1 %v9417_v57, %s8002_s22  ;;  %v1737_v25 = vpop.f32.mrb[117].mxu1  ;;  %v6073_v18 = vld [vmem:[%s13017_s3 + $0x240] sm:$0xff] }
 0x1fc   : > { %v9786_v44 = vmax.f32 %v2054_v26, 0.0  ;;  %v2021_v46 = vmax.f32 %v1865_v63, %v1997_v38  ;;  %7051 = vmatpush1.bf16.msra.mxu1 %v9750_v60  ;;  %v9789_v14 = vpack.c.bf16 %v2443_v43, %v2441_v22  ;;  %v9796_v57 = vpack.c.bf16 %v2448_v17, %v2446_v3 }
 0x1fd   : > { %v9793_v20 = vmax.f32 %v2053_v11, 0.0  ;;  %v2020_v29 = vmax.f32 %v1864_v19, %v1996_v53  ;;  %v1929_v56 = vpop.permute.xlu1 %1928  ;;  %7053 = vmatprep.subr.bf16.mxu1 %v9755_v23  ;;  %v1867_v5 = vmax.f32 %v9164_v33, %v9591_v37  ;;  %v2452_v33 = vld [vmem:[%s13017_s3 + $0xb8] sm:$0xff]  ;;  %v1866_v37 = vmax.f32 %v9162_v27, %v1824_v30  ;;  %v2454_v19 = vld [vmem:[%s13017_s3 + $0xc8] sm:$0xff] }
 0x1fe   : > { %13274 = vst [vmem:[#allocation98_spill] sm:$0xff] %v9786_v44  ;;  %v2056_v7 = vadd.f32 %v9629_v55, %v2021_v46  ;;  %v1956_v31 = vsel %vm1817_vm2, %v9543_v15, %v1929_v56  ;;  %v1999_v13 = vmax.f32 %v9171_v39, %v1929_v56  ;;  %6234 = vmatprep.mubr.msk.f32.mxu1 %vm2613_vm3, %v9786_v44  ;;  %v9812_v24 = vpop.f32.mrb[118].mxu1  ;;  %v2456_v11 = vld [vmem:[%s13017_s3 + $0xd8] sm:$0xff] }
 0x1ff   : > { %13275 = vst [vmem:[#allocation99_spill] sm:$0xff] %v9793_v20  ;;  %v2055_v12 = vadd.f32 %v9637_v52, %v2020_v29  ;;  %v1998_v15 = vmax.f32 %v9169_v34, %v1956_v31  ;;  %3451 = vmatmul.mubr.f32.gmra.mrb[126].mxu1 %v9793_v20  ;;  %2159 = vrot.lane.b32.xlu1 %v9585_v59, %s8002_s22  ;;  %v1742_v39 = vpop.f32.mrb[119].mxu1  ;;  %v2449_v59 = vld [vmem:[%s13017_s3 + $0xa0] sm:$0xff]  ;;  %v13280_v30 = vld [vmem:[#allocation80_spill] sm:$0xff]  ;;  %v2455_v31 = vld [vmem:[%s13017_s3 + $0xd0] sm:$0xff] }
 0x200   : > { %v1825_v6 = vsel %vm1817_vm2, %v9550_v61, %v9599_v49  ;;  %v9829_v8 = vmax.f32 %v2056_v7, 0.0  ;;  %v2023_v22 = vmax.f32 %v1867_v5, %v1999_v13  ;;  %7055 = vmatpush1.bf16.msra.mxu1 %v9789_v14  ;;  %v9832_v27 = vpack.c.bf16 %v2447_v62, %v2445_v42  ;;  %v2451_v61 = vld [vmem:[%s13017_s3 + $0xb0] sm:$0xff]  ;;  %v13283_v13 = vld [vmem:[#allocation13_spill] sm:$0xff] }
 0x201   : > { %v9834_v43 = vmax.f32 %v2055_v12, 0.0  ;;  %v2022_v34 = vmax.f32 %v1866_v37, %v1998_v15  ;;  %v1933_v63 = vpop.permute.xlu1 %1932  ;;  %7057 = vmatprep.subr.bf16.mxu1 %v9796_v57  ;;  %v9837_v26 = vpack.c.bf16 %v2452_v33, %v2450_v48  ;;  %v1869_v28 = vmax.f32 %v9175_v45, %v9599_v49  ;;  %v9860_v49 = vpop.permute.xlu0 %2133  ;;  %v13284_v37 = vld [vmem:[#allocation81_spill] sm:$0xff]  ;;  %v13285_v15 = vld [vmem:[#allocation15_spill] sm:$0xff] }
 0x202   : > { %13276 = vst [vmem:[#allocation100_spill] sm:$0xff] %v9829_v8  ;;  %v2058_v38 = vadd.f32 %v9629_v55, %v2023_v22  ;;  %v1957_v3 = vsel %vm1817_vm2, %v9557_v58, %v1933_v63  ;;  %v2001_v17 = vmax.f32 %v9181_v51, %v1933_v63  ;;  %6235 = vmatprep.mubr.msk.f32.mxu1 %vm2613_vm3, %v9829_v8  ;;  %v13278_v58 = vld [vmem:[#allocation11_spill] sm:$0xff]  ;;  %v2460_v22 = vld [vmem:[%s13017_s3 + $0xf8] sm:$0xff] }
 0x203   : > { %13277 = vst [vmem:[#allocation101_spill] sm:$0xff] %v9834_v43  ;;  %v1868_v45 = vmax.f32 %v9173_v40, %v1825_v6  ;;  %v2057_v53 = vadd.f32 %v9637_v52, %v2022_v34  ;;  %v2000_v25 = vmax.f32 %v13278_v58, %v1957_v3  ;;  %3457 = vmatmul.mubr.f32.gmra.mrb[128].mxu1 %v9834_v43  ;;  %v13279_v51 = vld [vmem:[#allocation87_spill] sm:$0xff]  ;;  %v2458_v6 = vld [vmem:[%s13017_s3 + $0xe8] sm:$0xff]  ;;  %v13286_v34 = vld [vmem:[#allocation12_spill] sm:$0xff] }
 0x204   : > { %2291 = vrot.lane.b32.xlu1 %v1735_v10, %s8002_s22  ;;  %v1826_v46 = vsel %vm1817_vm2, %v13280_v30, %v13279_v51  ;;  %v9869_v29 = vmax.f32 %v2058_v38, 0.0  ;;  %v2025_v56 = vmax.f32 %v1869_v28, %v2001_v17  ;;  %7059 = vmatpush1.bf16.msra.mxu1 %v9832_v27  ;;  %v9872_v40 = vpack.c.bf16 %v2451_v61, %v2449_v59  ;;  %v2453_v10 = vld [vmem:[%s13017_s3 + $0xc0] sm:$0xff]  ;;  %v13287_v61 = vld [vmem:[#allocation14_spill] sm:$0xff] }
 0x205   : > { %v9874_v42 = vmax.f32 %v2057_v53, 0.0  ;;  %v2024_v62 = vmax.f32 %v1868_v45, %v2000_v25  ;;  %v1937_v5 = vpop.permute.xlu1 %1936  ;;  %7061 = vmatprep.subr.bf16.mxu1 %v9837_v26  ;;  %v9877_v7 = vpack.c.bf16 %v2456_v11, %v2454_v19  ;;  %v1871_v48 = vmax.f32 %v13283_v13, %v13279_v51  ;;  %v13288_v38 = vld [vmem:[#allocation50_spill] sm:$0xff]  ;;  %v13289_v3 = vld [vmem:[#allocation89_spill] sm:$0xff]  ;;  %v9913_v58 = vpop.permute.xlu0 %2137  ;;  %v13294_v13 = vld [vmem:[#allocation83_spill] sm:$0xff] }
 0x206   : > { %13281 = vst [vmem:[#allocation11_spill] sm:$0xff] %v9869_v29  ;;  %v2060_v33 = vadd.f32 %v9629_v55, %v2025_v56  ;;  %v1958_v12 = vsel %vm1817_vm2, %v13284_v37, %v1937_v5  ;;  %v2003_v39 = vmax.f32 %v13285_v15, %v1937_v5  ;;  %6236 = vmatprep.mubr.msk.f32.mxu1 %vm2613_vm3, %v9869_v29  ;;  %v13290_v17 = vld [vmem:[#allocation82_spill] sm:$0xff]  ;;  %v2457_v56 = vld [vmem:[%s13017_s3 + $0xe0] sm:$0xff]  ;;  %v2464_v15 = vld [vmem:[%s13017_s3 + $0x118] sm:$0xff] }
 0x207   : > { %13282 = vst [vmem:[#allocation87_spill] sm:$0xff] %v9874_v42  ;;  %v1870_v63 = vmax.f32 %v13286_v34, %v1826_v46  ;;  %v2059_v59 = vadd.f32 %v9637_v52, %v2024_v62  ;;  %v2002_v28 = vmax.f32 %v13287_v61, %v1958_v12  ;;  %3463 = vmatmul.mubr.f32.gmra.mrb[130].mxu1 %v9874_v42  ;;  %v2459_v62 = vld [vmem:[%s13017_s3 + $0xf0] sm:$0xff]  ;;  %v13293_v5 = vld [vmem:[#allocation17_spill] sm:$0xff]  ;;  %v2462_v12 = vld [vmem:[%s13017_s3 + $0x108] sm:$0xff] }
 0x208   : > { %1815 = vrot.lane.b32.xlu1 %v13288_v38, %s8002_s22  ;;  %v1827_v19 = vsel %vm1817_vm2, %v13290_v17, %v13289_v3  ;;  %v9908_v11 = vmax.f32 %v2060_v33, 0.0  ;;  %v2027_v45 = vmax.f32 %v1871_v48, %v2003_v39  ;;  %7063 = vmatpush1.bf16.msra.mxu1 %v9872_v40  ;;  %v9911_v53 = vpack.c.bf16 %v2455_v31, %v2453_v10  ;;  %v13295_v33 = vld [vmem:[#allocation19_spill] sm:$0xff]  ;;  %v13296_v39 = vld [vmem:[#allocation16_spill] sm:$0xff]  ;;  %v13297_v34 = vld [vmem:[#allocation18_spill] sm:$0xff] }
 0x209   : > { %v9915_v25 = vmax.f32 %v2059_v59, 0.0  ;;  %v2026_v51 = vmax.f32 %v1870_v63, %v2002_v28  ;;  %v1941_v30 = vpop.permute.xlu1 %1940  ;;  %7065 = vmatprep.subr.bf16.mxu1 %v9877_v7  ;;  %v9918_v46 = vpack.c.bf16 %v2460_v22, %v2458_v6  ;;  %v1873_v10 = vmax.f32 %v13293_v5, %v13289_v3  ;;  %v13298_v59 = vld [vmem:[#allocation76_spill] sm:$0xff]  ;;  %v13299_v61 = vld [vmem:[#allocation91_spill] sm:$0xff]  ;;  %v13300_v28 = vld [vmem:[#allocation85_spill] sm:$0xff] }
 0x20a   : > { %13291 = vst [vmem:[#allocation80_spill] sm:$0xff] %v9908_v11  ;;  %v2062_v31 = vadd.f32 %v9629_v55, %v2027_v45  ;;  %v1959_v48 = vsel %vm1817_vm2, %v13294_v13, %v1941_v30  ;;  %v2005_v37 = vmax.f32 %v13295_v33, %v1941_v30  ;;  %6237 = vmatprep.mubr.msk.f32.mxu1 %vm2613_vm3, %v9908_v11  ;;  %v2461_v13 = vld [vmem:[%s13017_s3 + $0x100] sm:$0xff] }
 0x20b   : > { %13292 = vst [vmem:[#allocation13_spill] sm:$0xff] %v9915_v25  ;;  %v1872_v6 = vmax.f32 %v13296_v39, %v1827_v19  ;;  %v2061_v22 = vadd.f32 %v9637_v52, %v2026_v51  ;;  %v2004_v63 = vmax.f32 %v13297_v34, %v1959_v48  ;;  %3469 = vmatmul.mubr.f32.gmra.mrb[132].mxu1 %v9915_v25  ;;  %v13304_v48 = vld [vmem:[#allocation86_spill] sm:$0xff]  ;;  %v9980_v34 = vpop.permute.xlu0 %2141  ;;  %v13319_v42 = vld [vmem:[#allocation53_spill] sm:$0xff] }
 0x20c   : > { %1948 = vrot.lane.b32.xlu1 %v13298_v59, %s8002_s22  ;;  %v1828_v38 = vsel %vm1817_vm2, %v13300_v28, %v13299_v61  ;;  %v9949_v3 = vmax.f32 %v2062_v31, 0.0  ;;  %v2029_v17 = vmax.f32 %v1873_v10, %v2005_v37  ;;  %7067 = vmatpush1.bf16.msra.mxu1 %v9911_v53  ;;  %v9952_v45 = vpack.c.bf16 %v2459_v62, %v2457_v56  ;;  %v2463_v10 = vld [vmem:[%s13017_s3 + $0x110] sm:$0xff]  ;;  %v13303_v31 = vld [vmem:[#allocation21_spill] sm:$0xff]  ;;  %v13307_v59 = vld [vmem:[#allocation22_spill] sm:$0xff] }
 0x20d   : > { %v9954_v19 = vmax.f32 %v2061_v22, 0.0  ;;  %v2028_v51 = vmax.f32 %v1872_v6, %v2004_v63  ;;  %v1945_v30 = vpop.permute.xlu1 %1944  ;;  %7069 = vmatprep.subr.bf16.mxu1 %v9918_v46  ;;  %v9957_v5 = vpack.c.bf16 %v2464_v15, %v2462_v12  ;;  %v1875_v56 = vmax.f32 %v13303_v31, %v13299_v61  ;;  %v13305_v37 = vld [vmem:[#allocation23_spill] sm:$0xff]  ;;  %v6074_v12 = vld [vmem:[%s13017_s3 + $0x248] sm:$0xff]  ;;  %v6076_v15 = vld [vmem:[%s13017_s3 + $0x258] sm:$0xff] }
 0x20e   : > { %13301 = vst [vmem:[#allocation81_spill] sm:$0xff] %v9949_v3  ;;  %v2064_v62 = vadd.f32 %v9629_v55, %v2029_v17  ;;  %v1960_v33 = vsel %vm1817_vm2, %v13304_v48, %v1945_v30  ;;  %v2007_v39 = vmax.f32 %v13305_v37, %v1945_v30  ;;  %6238 = vmatprep.mubr.msk.f32.mxu1 %vm2613_vm3, %v9949_v3  ;;  %v13306_v6 = vld [vmem:[#allocation20_spill] sm:$0xff]  ;;  %v13318_v25 = vld [vmem:[#allocation54_spill] sm:$0xff] }
 0x20f   : > { %13302 = vst [vmem:[#allocation15_spill] sm:$0xff] %v9954_v19  ;;  %v1874_v22 = vmax.f32 %v13306_v6, %v1828_v38  ;;  %v2063_v63 = vadd.f32 %v9637_v52, %v2028_v51  ;;  %v2006_v61 = vmax.f32 %v13307_v59, %v1960_v33  ;;  %3475 = vmatmul.mubr.f32.gmra.mrb[134].mxu1 %v9954_v19  ;;  %v13308_v28 = vld [vmem:[#allocation84_spill] sm:$0xff] }
 0x210   : > { %2163 = vrot.lane.b32.xlu1 %v13308_v28, %s8002_s22  ;;  %v9987_v17 = vmax.f32 %v2064_v62, 0.0  ;;  %v2031_v30 = vmax.f32 %v1875_v56, %v2007_v39  ;;  %7071 = vmatpush1.bf16.msra.mxu1 %v9952_v45  ;;  %v9990_v31 = vpack.c.bf16 %v2463_v10, %v2461_v13  ;;  %v9995_v51 = vpack.c.bf16 %v6076_v15, %v6074_v12  ;;  %v10007_v10 = vpop.permute.xlu0 %2145  ;;  %v13315_v39 = vld [vmem:[#allocation88_spill] sm:$0xff] }
 0x211   : > { %v9992_v48 = vmax.f32 %v2063_v63, 0.0  ;;  %v2030_v38 = vmax.f32 %v1874_v22, %v2006_v61  ;;  %7073 = vmatprep.subr.bf16.mxu1 %v9957_v5  ;;  %v13316_v15 = vld [vmem:[#allocation28_spill] sm:$0xff] }
 0x212   : > { %13309 = vst [vmem:[#allocation12_spill] sm:$0xff] %v9987_v17  ;;  %13310 = vst [vmem:[#allocation14_spill] sm:$0xff] %v9990_v31  ;;  %v2066_v33 = vadd.f32 %v9629_v55, %v2031_v30  ;;  %6239 = vmatprep.mubr.msk.f32.mxu1 %vm2613_vm3, %v9987_v17  ;;  %v13317_v17 = vld [vmem:[#allocation29_spill] sm:$0xff] }
 0x213   : > { %13311 = vst [vmem:[#allocation50_spill] sm:$0xff] %v9992_v48  ;;  %13312 = vst [vmem:[#allocation89_spill] sm:$0xff] %v9995_v51  ;;  %v2065_v62 = vadd.f32 %v9637_v52, %v2030_v38  ;;  %3481 = vmatmul.mubr.f32.gmra.mrb[136].mxu1 %v9992_v48 }
 0x214   : > { %2295 = vrot.lane.b32.xlu1 %v9812_v24, %s8002_s22  ;;  %v10004_v13 = vmax.f32 %v2066_v33, 0.0  ;;  %7075 = vmatpush1.bf16.msra.mxu1 %v9990_v31  ;;  %v10018_v22 = vpop.permute.xlu0 %2149  ;;  %s5855_s22 = sshll.u32 %s377_s14, 3 }
 0x215   : > { %v10009_v56 = vmax.f32 %v2065_v62, 0.0  ;;  %v2120_v37 = vpop.permute.xlu1 %2119  ;;  %7077 = vmatprep.subr.bf16.mxu1 %v9995_v51  ;;  %s379_s15 = scalar_lea.vmem [#allocation2], %s5855_s22  ;;  %s7940_s22 = sshll.u32 %s8006_s21, 4  ;;  %s7941_s22 = int_to_ptr.vmem [resolvable:$false] %s7940_s22 }
 0x216   : > { %13313 = vst [vmem:[#allocation82_spill] sm:$0xff] %v10004_v13  ;;  %v2165_v12 = vsel %vm1817_vm2, %v13315_v39, %v2120_v37  ;;  %6240 = vmatprep.mubr.msk.f32.mxu1 %vm2613_vm3, %v10004_v13  ;;  %v2202_v19 = vmax.f32 %v13317_v17, %v2120_v37  ;;  %v6075_v17 = vld [vmem:[%s13017_s3 + $0x250] sm:$0xff]  ;;  %s7942_s16 = scalar_lea.vmem %s7941_s22, 256 }
 0x217   : > { %13314 = vst [vmem:[#allocation17_spill] sm:$0xff] %v10009_v56  ;;  %v2201_v6 = vmax.f32 %v13316_v15, %v2165_v12  ;;  %3487 = vmatmul.mubr.f32.gmra.mrb[138].mxu1 %v10009_v56  ;;  %v13320_v37 = vld [vmem:[#allocation31_spill] sm:$0xff]  ;;  %v10071_v41 = vpack.c.bf16 %v6075_v17, %v6073_v18  ;;  %v13325_v17 = vld [vmem:[#allocation58_spill] sm:$0xff] }
 0x218   : > { %v10020_v59 = vpop.permute.xlu0 %2153 }
 0x219   : > { %v2124_v24 = vpop.permute.xlu1 %2123 }
 0x21a   : > { %v2166_v43 = vsel %vm1817_vm2, %v9673_v32, %v2124_v24  ;;  %v6078_v32 = vld [vmem:[%s13017_s3 + $0x268] sm:$0xff] }
 0x21c   : > { %v2250_v30 = vpop.permute.xlu0 %2249 }
 0x21d   : > { %v2128_v63 = vpop.permute.xlu1 %2127 }
 0x21e   : > { %v2206_v16 = vmax.f32 %v13324_v21, %v2128_v63  ;;  %v6082_v21 = vld [vmem:[%s13017_s3 + $0x288] sm:$0xff] }
 0x220   : > { %v2254_v33 = vpop.permute.xlu0 %2253 }
 0x221   : > { %v10022_v61 = vpop.permute.xlu1 %2131 }
 0x224   : > { %v2258_v39 = vpop.permute.xlu0 %2257 }
 0x225   : > { %v10024_v28 = vpop.permute.xlu1 %2135 }
 0x228   : > { %v10032_v15 = vpop.permute.xlu0 %2261 }
 0x229   : > { %v10026_v38 = vpop.permute.xlu1 %2139 }
 0x22c   : > { %v10036_v1 = vpop.permute.xlu0 %2265 }
 0x22d   : > { %v10028_v62 = vpop.permute.xlu1 %2143 }
 0x230   : > { %v10040_v13 = vpop.permute.xlu0 %2269 }
 0x231   : > { %v10030_v12 = vpop.permute.xlu1 %2147 }
 0x235   : > { %v10034_v2 = vpop.permute.xlu1 %2151 }
 0x239   : > { %v10038_v56 = vpop.permute.xlu1 %2155 }
 0x245   : > { %v2252_v48 = vpop.permute.xlu1 %2251 }
 0x246   : > { %v2297_v3 = vsel %vm1817_vm2, %v2250_v30, %v2252_v48  ;;  %v2334_v11 = vmax.f32 %v13318_v25, %v2252_v48  ;;  %v2204_v30 = vmax.f32 %v13320_v37, %v2124_v24  ;;  %v13323_v37 = vld [vmem:[#allocation55_spill] sm:$0xff] }
 0x247   : > { %v2333_v29 = vmax.f32 %v13319_v42, %v2297_v3  ;;  %v13321_v3 = vld [vmem:[#allocation56_spill] sm:$0xff] }
 0x248   : > { %v2358_v8 = vmax.f32 %v2202_v19, %v2334_v11  ;;  %v13322_v11 = vld [vmem:[#allocation30_spill] sm:$0xff] }
 0x249   : > { %v2357_v20 = vmax.f32 %v2201_v6, %v2333_v29  ;;  %v2256_v44 = vpop.permute.xlu1 %2255  ;;  %v6080_v29 = vld [vmem:[%s13017_s3 + $0x278] sm:$0xff]  ;;  %v2203_v19 = vmax.f32 %v13322_v11, %v2166_v43  ;;  %v10065_v6 = vpop.permute.xlu0 %2273  ;;  %v6079_v43 = vld [vmem:[%s13017_s3 + $0x270] sm:$0xff] }
 0x24a   : > { %v2382_v25 = vadd.f32 %v2358_v8, %v9629_v55  ;;  %v2298_v42 = vsel %vm1817_vm2, %v2254_v33, %v2256_v44  ;;  %v2336_v48 = vmax.f32 %v13321_v3, %v2256_v44  ;;  %v2167_v33 = vsel %vm1817_vm2, %v9738_v47, %v2128_v63  ;;  %v6084_v63 = vld [vmem:[%s13017_s3 + $0x298] sm:$0xff] }
 0x24b   : > { %v2381_v24 = vadd.f32 %v2357_v20, %v9637_v52  ;;  %v2335_v8 = vmax.f32 %v13323_v37, %v2298_v42  ;;  %v10074_v31 = vpack.c.bf16 %v6080_v29, %v6078_v32  ;;  %v6077_v20 = vld [vmem:[%s13017_s3 + $0x260] sm:$0xff] }
 0x24c   : > { %v2406_v44 = vmax.f32 %v2382_v25, 0.0  ;;  %v2360_v3 = vmax.f32 %v2204_v30, %v2336_v48  ;;  %v13326_v25 = vld [vmem:[#allocation32_spill] sm:$0xff]  ;;  %v13327_v32 = vld [vmem:[#allocation57_spill] sm:$0xff] }
 0x24d   : > { %v2405_v50 = vmax.f32 %v2381_v24, 0.0  ;;  %v2359_v4 = vmax.f32 %v2203_v19, %v2335_v8  ;;  %v2260_v51 = vpop.permute.xlu1 %2259  ;;  %v2205_v42 = vmax.f32 %v13326_v25, %v2167_v33  ;;  %v10103_v19 = vpack.c.bf16 %v6079_v43, %v6077_v20  ;;  %v10105_v24 = vpop.permute.xlu0 %2277  ;;  %v6088_v43 = vld [vmem:[%s13017_s3 + $0x2b8] sm:$0xff] }
 0x24e   : > { %v2384_v47 = vadd.f32 %v2360_v3, %v9629_v55  ;;  %v2299_v18 = vsel %vm1817_vm2, %v2258_v39, %v2260_v51  ;;  %v2338_v30 = vmax.f32 %v13325_v17, %v2260_v51  ;;  %6181 = vmatprep.mubr.msk.f32.mxu0 %vm2613_vm3, %v2406_v44  ;;  %6241 = vmatprep.mubr.msk.f32.mxu1 %vm2613_vm3, %v2406_v44  ;;  %v13329_v3 = vld [vmem:[#allocation60_spill] sm:$0xff]  ;;  %v13331_v17 = vld [vmem:[#allocation59_spill] sm:$0xff] }
 0x24f   : > { %v2383_v48 = vadd.f32 %v2359_v4, %v9637_v52  ;;  %v2337_v39 = vmax.f32 %v13327_v32, %v2299_v18  ;;  %2709 = vmatmul.mubr.f32.vlgmr.msra.gmra.mrb[72].mxu0 %v2405_v50  ;;  %3558 = vmatmul.mubr.f32.vlgmr.msra.gmra.mrb[120].mxu1 %v2405_v50  ;;  %v2168_v51 = vsel %vm1817_vm2, %v9791_v54, %v10022_v61  ;;  %v13328_v4 = vld [vmem:[#allocation35_spill] sm:$0xff] }
 0x250   : > { %v10099_v29 = vmax.f32 %v2384_v47, 0.0  ;;  %v2362_v11 = vmax.f32 %v2206_v16, %v2338_v30  ;;  %6863 = vmatpush1.bf16.msra.mxu0 %v9671_v36  ;;  %7079 = vmatpush1.bf16.msra.mxu1 %v10071_v41  ;;  %v2208_v37 = vmax.f32 %v13328_v4, %v10022_v61  ;;  %v10113_v16 = vpack.c.bf16 %v6084_v63, %v6082_v21  ;;  %v6081_v36 = vld [vmem:[%s13017_s3 + $0x280] sm:$0xff]  ;;  %v6083_v54 = vld [vmem:[%s13017_s3 + $0x290] sm:$0xff]  ;;  %v13330_v47 = vld [vmem:[#allocation34_spill] sm:$0xff] }
 0x251   : > { %v10109_v8 = vmax.f32 %v2383_v48, 0.0  ;;  %v2361_v50 = vmax.f32 %v2205_v42, %v2337_v39  ;;  %v2264_v33 = vpop.permute.xlu1 %2263  ;;  %6865 = vmatprep.subr.bf16.mxu0 %v9677_v35  ;;  %7081 = vmatprep.subr.bf16.mxu1 %v10074_v31  ;;  %v6086_v35 = vld [vmem:[%s13017_s3 + $0x2a8] sm:$0xff]  ;;  %v2207_v18 = vmax.f32 %v13330_v47, %v2168_v51  ;;  %v2169_v21 = vsel %vm1817_vm2, %v9860_v49, %v10024_v28  ;;  %v13332_v48 = vld [vmem:[#allocation37_spill] sm:$0xff]  ;;  %v6087_v4 = vld [vmem:[%s13017_s3 + $0x2b0] sm:$0xff] }
 0x252   : > { %v2386_v61 = vadd.f32 %v2362_v11, %v9629_v55  ;;  %v2300_v44 = vsel %vm1817_vm2, %v10032_v15, %v2264_v33  ;;  %v2340_v20 = vmax.f32 %v13329_v3, %v2264_v33  ;;  %6182 = vmatprep.mubr.msk.f32.mxu0 %vm2613_vm3, %v10099_v29  ;;  %6242 = vmatprep.mubr.msk.f32.mxu1 %vm2613_vm3, %v10099_v29  ;;  %v13335_v3 = vld [vmem:[#allocation61_spill] sm:$0xff] }
 0x253   : > { %v2385_v15 = vadd.f32 %v2361_v50, %v9637_v52  ;;  %v2339_v30 = vmax.f32 %v13331_v17, %v2300_v44  ;;  %2715 = vmatmul.mubr.f32.gmra.mrb[74].mxu0 %v10109_v8  ;;  %3564 = vmatmul.mubr.f32.gmra.mrb[122].mxu1 %v10109_v8  ;;  %v10147_v42 = vpack.c.bf16 %v6083_v54, %v6081_v36  ;;  %v13333_v50 = vld [vmem:[#allocation62_spill] sm:$0xff]  ;;  %v6092_v36 = vld [vmem:[%s13017_s3 + $0x2d8] sm:$0xff]  ;;  %v10177_v54 = vpop.permute.xlu0 %2281 }
 0x254   : > { %v10143_v63 = vmax.f32 %v2386_v61, 0.0  ;;  %v2364_v25 = vmax.f32 %v2208_v37, %v2340_v20  ;;  %6867 = vmatpush1.bf16.msra.mxu0 %v9710_v0  ;;  %7083 = vmatpush1.bf16.msra.mxu1 %v10103_v19  ;;  %v2210_v32 = vmax.f32 %v13332_v48, %v10024_v28  ;;  %v10155_v49 = vpack.c.bf16 %v6088_v43, %v6086_v35  ;;  %v6085_v0 = vld [vmem:[%s13017_s3 + $0x2a0] sm:$0xff]  ;;  %v13334_v61 = vld [vmem:[#allocation36_spill] sm:$0xff]  ;;  %v6091_v48 = vld [vmem:[%s13017_s3 + $0x2d0] sm:$0xff] }
 0x255   : > { %v10151_v39 = vmax.f32 %v2385_v15, 0.0  ;;  %v2363_v51 = vmax.f32 %v2207_v18, %v2339_v30  ;;  %v2268_v11 = vpop.permute.xlu1 %2267  ;;  %6869 = vmatprep.subr.bf16.mxu0 %v9715_v9  ;;  %7085 = vmatprep.subr.bf16.mxu1 %v10113_v16  ;;  %v6090_v9 = vld [vmem:[%s13017_s3 + $0x2c8] sm:$0xff]  ;;  %v2170_v35 = vsel %vm1817_vm2, %v9913_v58, %v10026_v38  ;;  %v10191_v18 = vpack.c.bf16 %v6087_v4, %v6085_v0  ;;  %v13336_v15 = vld [vmem:[#allocation39_spill] sm:$0xff]  ;;  %v6096_v0 = vld [vmem:[%s13017_s3 + $0x2f8] sm:$0xff] }
 0x256   : > { %v2388_v28 = vadd.f32 %v2364_v25, %v9629_v55  ;;  %v2301_v37 = vsel %vm1817_vm2, %v10036_v1, %v2268_v11  ;;  %v2342_v33 = vmax.f32 %v13333_v50, %v2268_v11  ;;  %6183 = vmatprep.mubr.msk.f32.mxu0 %vm2613_vm3, %v10143_v63  ;;  %6243 = vmatprep.mubr.msk.f32.mxu1 %vm2613_vm3, %v10143_v63  ;;  %v13338_v4 = vld [vmem:[#allocation38_spill] sm:$0xff] }
 0x257   : > { %v2209_v1 = vmax.f32 %v13334_v61, %v2169_v21  ;;  %v2387_v44 = vadd.f32 %v2363_v51, %v9637_v52  ;;  %v2341_v20 = vmax.f32 %v13335_v3, %v2301_v37  ;;  %2721 = vmatmul.mubr.f32.gmra.mrb[76].mxu0 %v10151_v39  ;;  %3570 = vmatmul.mubr.f32.gmra.mrb[124].mxu1 %v10151_v39  ;;  %v13337_v51 = vld [vmem:[#allocation65_spill] sm:$0xff]  ;;  %v13339_v37 = vld [vmem:[#allocation64_spill] sm:$0xff] }
 0x258   : > { %v10187_v43 = vmax.f32 %v2388_v28, 0.0  ;;  %v2366_v47 = vmax.f32 %v2210_v32, %v2342_v33  ;;  %6871 = vmatpush1.bf16.msra.mxu0 %v9750_v60  ;;  %7087 = vmatpush1.bf16.msra.mxu1 %v10147_v42  ;;  %v2212_v17 = vmax.f32 %v13336_v15, %v10026_v38  ;;  %v10199_v58 = vpack.c.bf16 %v6092_v36, %v6090_v9  ;;  %v6089_v60 = vld [vmem:[%s13017_s3 + $0x2c0] sm:$0xff]  ;;  %v6095_v15 = vld [vmem:[%s13017_s3 + $0x2f0] sm:$0xff] }
 0x259   : > { %v10195_v30 = vmax.f32 %v2387_v44, 0.0  ;;  %v2365_v21 = vmax.f32 %v2209_v1, %v2341_v20  ;;  %v2272_v25 = vpop.permute.xlu1 %2271  ;;  %6873 = vmatprep.subr.bf16.mxu0 %v9755_v23  ;;  %7089 = vmatprep.subr.bf16.mxu1 %v10155_v49  ;;  %v6094_v23 = vld [vmem:[%s13017_s3 + $0x2e8] sm:$0xff]  ;;  %v2211_v28 = vmax.f32 %v13338_v4, %v2170_v35  ;;  %v2171_v33 = vsel %vm1817_vm2, %v9980_v34, %v10028_v62  ;;  %v10235_v1 = vpop.permute.xlu0 %2285  ;;  %v13340_v44 = vld [vmem:[#allocation41_spill] sm:$0xff] }
 0x25a   : > { %v2390_v38 = vadd.f32 %v2366_v47, %v9629_v55  ;;  %v2302_v32 = vsel %vm1817_vm2, %v10040_v13, %v2272_v25  ;;  %v2344_v11 = vmax.f32 %v13337_v51, %v2272_v25  ;;  %6184 = vmatprep.mubr.msk.f32.mxu0 %vm2613_vm3, %v10187_v43  ;;  %6244 = vmatprep.mubr.msk.f32.mxu1 %vm2613_vm3, %v10187_v43 }
 0x25b   : > { %v2389_v13 = vadd.f32 %v2365_v21, %v9637_v52  ;;  %v2343_v50 = vmax.f32 %v13339_v37, %v2302_v32  ;;  %2727 = vmatmul.mubr.f32.gmra.mrb[78].mxu0 %v10195_v30  ;;  %3576 = vmatmul.mubr.f32.gmra.mrb[126].mxu1 %v10195_v30  ;;  %v10233_v61 = vpack.c.bf16 %v6091_v48, %v6089_v60  ;;  %v13342_v21 = vld [vmem:[#allocation67_spill] sm:$0xff]  ;;  %v6100_v60 = vld [vmem:[%s13017_s3 + $0x318] sm:$0xff]  ;;  %v13344_v32 = vld [vmem:[#allocation66_spill] sm:$0xff] }
 0x25c   : > { %v10229_v9 = vmax.f32 %v2390_v38, 0.0  ;;  %v2368_v36 = vmax.f32 %v2212_v17, %v2344_v11  ;;  %6875 = vmatpush1.bf16.msra.mxu0 %v9789_v14  ;;  %7091 = vmatpush1.bf16.msra.mxu1 %v10191_v18  ;;  %v2214_v3 = vmax.f32 %v13340_v44, %v10028_v62  ;;  %v10243_v34 = vpack.c.bf16 %v6096_v0, %v6094_v23  ;;  %v6093_v14 = vld [vmem:[%s13017_s3 + $0x2e0] sm:$0xff]  ;;  %v13343_v48 = vld [vmem:[#allocation40_spill] sm:$0xff] }
 0x25d   : > { %v10239_v20 = vmax.f32 %v2389_v13, 0.0  ;;  %v2367_v35 = vmax.f32 %v2211_v28, %v2343_v50  ;;  %v2276_v47 = vpop.permute.xlu1 %2275  ;;  %6877 = vmatprep.subr.bf16.mxu0 %v9796_v57  ;;  %7093 = vmatprep.subr.bf16.mxu1 %v10199_v58  ;;  %v6098_v57 = vld [vmem:[%s13017_s3 + $0x308] sm:$0xff]  ;;  %v2213_v38 = vmax.f32 %v13343_v48, %v2171_v33  ;;  %v2172_v11 = vsel %vm1817_vm2, %v10007_v10, %v10030_v12  ;;  %v13345_v28 = vld [vmem:[#allocation43_spill] sm:$0xff] }
 0x25e   : > { %v2392_v62 = vadd.f32 %v2368_v36, %v9629_v55  ;;  %v2303_v17 = vsel %vm1817_vm2, %v10065_v6, %v2276_v47  ;;  %v2346_v25 = vmax.f32 %v13342_v21, %v2276_v47  ;;  %6185 = vmatprep.mubr.msk.f32.mxu0 %vm2613_vm3, %v10229_v9  ;;  %6245 = vmatprep.mubr.msk.f32.mxu1 %vm2613_vm3, %v10229_v9  ;;  %v6099_v36 = vld [vmem:[%s13017_s3 + $0x310] sm:$0xff]  ;;  %v6104_v47 = vld [vmem:[%s13017_s3 + $0x338] sm:$0xff] }
 0x25f   : > { %13341 = vst [vmem:[#allocation83_spill] sm:$0xff] %v10239_v20  ;;  %v2391_v6 = vadd.f32 %v2367_v35, %v9637_v52  ;;  %v2345_v51 = vmax.f32 %v13344_v32, %v2303_v17  ;;  %2733 = vmatmul.mubr.f32.gmra.mrb[80].mxu0 %v10239_v20  ;;  %3582 = vmatmul.mubr.f32.gmra.mrb[128].mxu1 %v10239_v20  ;;  %v13348_v17 = vld [vmem:[#allocation68_spill] sm:$0xff] }
 0x260   : > { %v10273_v23 = vmax.f32 %v2392_v62, 0.0  ;;  %v2370_v0 = vmax.f32 %v2214_v3, %v2346_v25  ;;  %6879 = vmatpush1.bf16.msra.mxu0 %v9832_v27  ;;  %7095 = vmatpush1.bf16.msra.mxu1 %v10233_v61  ;;  %v10277_v4 = vpack.c.bf16 %v6095_v15, %v6093_v14  ;;  %v2216_v13 = vmax.f32 %v13345_v28, %v10030_v12  ;;  %v6097_v27 = vld [vmem:[%s13017_s3 + $0x300] sm:$0xff]  ;;  %v10307_v14 = vpop.permute.xlu0 %1902  ;;  %v13347_v15 = vld [vmem:[#allocation42_spill] sm:$0xff] }
 0x261   : > { %v10281_v37 = vmax.f32 %v2391_v6, 0.0  ;;  %v2369_v50 = vmax.f32 %v2213_v38, %v2345_v51  ;;  %v2280_v33 = vpop.permute.xlu1 %2279  ;;  %6881 = vmatprep.subr.bf16.mxu0 %v9837_v26  ;;  %7097 = vmatprep.subr.bf16.mxu1 %v10243_v34  ;;  %v10285_v10 = vpack.c.bf16 %v6100_v60, %v6098_v57  ;;  %v13346_v3 = vld [vmem:[#allocation69_spill] sm:$0xff]  ;;  %v6102_v26 = vld [vmem:[%s13017_s3 + $0x328] sm:$0xff]  ;;  %v2173_v25 = vsel %vm1817_vm2, %v10018_v22, %v10034_v2 }
 0x262   : > { %v2394_v12 = vadd.f32 %v2370_v0, %v9629_v55  ;;  %v2304_v44 = vsel %vm1817_vm2, %v10105_v24, %v2280_v33  ;;  %v2348_v35 = vmax.f32 %v13346_v3, %v2280_v33  ;;  %6186 = vmatprep.mubr.msk.f32.mxu0 %vm2613_vm3, %v10273_v23  ;;  %6246 = vmatprep.mubr.msk.f32.mxu1 %vm2613_vm3, %v10273_v23  ;;  %v13349_v38 = vld [vmem:[#allocation45_spill] sm:$0xff]  ;;  %v6103_v0 = vld [vmem:[%s13017_s3 + $0x330] sm:$0xff]  ;;  %v6108_v33 = vld [vmem:[%s13017_s3 + $0x358] sm:$0xff] }
 0x263   : > { %v2215_v24 = vmax.f32 %v13347_v15, %v2172_v11  ;;  %v2393_v62 = vadd.f32 %v2369_v50, %v9637_v52  ;;  %v2347_v21 = vmax.f32 %v13348_v17, %v2304_v44  ;;  %2739 = vmatmul.mubr.f32.gmra.mrb[82].mxu0 %v10281_v37  ;;  %3588 = vmatmul.mubr.f32.gmra.mrb[130].mxu1 %v10281_v37 }
 0x264   : > { %v10317_v57 = vmax.f32 %v2394_v12, 0.0  ;;  %v2372_v60 = vmax.f32 %v2216_v13, %v2348_v35  ;;  %6883 = vmatpush1.bf16.msra.mxu0 %v9872_v40  ;;  %7099 = vmatpush1.bf16.msra.mxu1 %v10277_v4  ;;  %v10321_v48 = vpack.c.bf16 %v6099_v36, %v6097_v27  ;;  %v2218_v6 = vmax.f32 %v13349_v38, %v10034_v2  ;;  %v6101_v40 = vld [vmem:[%s13017_s3 + $0x320] sm:$0xff]  ;;  %v13350_v13 = vld [vmem:[#allocation71_spill] sm:$0xff]  ;;  %v13351_v27 = vld [vmem:[#allocation44_spill] sm:$0xff]  ;;  %v10365_v15 = vpop.permute.xlu0 %2157 }
 0x265   : > { %v10325_v32 = vmax.f32 %v2393_v62, 0.0  ;;  %v2371_v51 = vmax.f32 %v2215_v24, %v2347_v21  ;;  %v2284_v11 = vpop.permute.xlu1 %2283  ;;  %6885 = vmatprep.subr.bf16.mxu0 %v9877_v7  ;;  %7101 = vmatprep.subr.bf16.mxu1 %v10285_v10  ;;  %v10329_v22 = vpack.c.bf16 %v6104_v47, %v6102_v26  ;;  %v6106_v7 = vld [vmem:[%s13017_s3 + $0x348] sm:$0xff]  ;;  %v2217_v36 = vmax.f32 %v13351_v27, %v2173_v25  ;;  %v13353_v24 = vld [vmem:[#allocation47_spill] sm:$0xff] }
 0x266   : > { %v2396_v2 = vadd.f32 %v2372_v60, %v9629_v55  ;;  %v2305_v28 = vsel %vm1817_vm2, %v10177_v54, %v2284_v11  ;;  %v2350_v50 = vmax.f32 %v13350_v13, %v2284_v11  ;;  %6187 = vmatprep.mubr.msk.f32.mxu0 %vm2613_vm3, %v10317_v57  ;;  %6247 = vmatprep.mubr.msk.f32.mxu1 %vm2613_vm3, %v10317_v57  ;;  %v13352_v12 = vld [vmem:[#allocation70_spill] sm:$0xff]  ;;  %v6107_v60 = vld [vmem:[%s13017_s3 + $0x350] sm:$0xff]  ;;  %v6112_v11 = vld [vmem:[%s13017_s3 + $0x378] sm:$0xff] }
 0x267   : > { %v2395_v54 = vadd.f32 %v2371_v51, %v9637_v52  ;;  %v2349_v44 = vmax.f32 %v13352_v12, %v2305_v28  ;;  %2745 = vmatmul.mubr.f32.gmra.mrb[84].mxu0 %v10325_v32  ;;  %3594 = vmatmul.mubr.f32.gmra.mrb[132].mxu1 %v10325_v32  ;;  %v2174_v3 = vsel %vm1817_vm2, %v10020_v59, %v10038_v56  ;;  %v13357_v13 = vld [vmem:[#allocation79_spill] sm:$0xff] }
 0x268   : > { %v10359_v35 = vmax.f32 %v2396_v2, 0.0  ;;  %v2374_v26 = vmax.f32 %v2218_v6, %v2350_v50  ;;  %6887 = vmatpush1.bf16.msra.mxu0 %v9911_v53  ;;  %7103 = vmatpush1.bf16.msra.mxu1 %v10321_v48  ;;  %v10363_v47 = vpack.c.bf16 %v6103_v0, %v6101_v40  ;;  %v2220_v62 = vmax.f32 %v13353_v24, %v10038_v56  ;;  %v6105_v53 = vld [vmem:[%s13017_s3 + $0x340] sm:$0xff]  ;;  %v13355_v40 = vld [vmem:[#allocation46_spill] sm:$0xff]  ;;  %v13356_v2 = vld [vmem:[#allocation72_spill] sm:$0xff] }
 0x269   : > { %v10369_v17 = vmax.f32 %v2395_v54, 0.0  ;;  %v2373_v21 = vmax.f32 %v2217_v36, %v2349_v44  ;;  %v2288_v25 = vpop.permute.xlu1 %2287  ;;  %6889 = vmatprep.subr.bf16.mxu0 %v9918_v46  ;;  %7105 = vmatprep.subr.bf16.mxu1 %v10329_v22  ;;  %v10373_v59 = vpack.c.bf16 %v6108_v33, %v6106_v7  ;;  %v13354_v6 = vld [vmem:[#allocation73_spill] sm:$0xff]  ;;  %v6110_v46 = vld [vmem:[%s13017_s3 + $0x368] sm:$0xff]  ;;  %v2219_v0 = vmax.f32 %v13355_v40, %v2174_v3  ;;  %v13358_v50 = vld [vmem:[#allocation63_spill] sm:$0xff] }
 0x26a   : > { %v2398_v56 = vadd.f32 %v2374_v26, %v9629_v55  ;;  %v2306_v38 = vsel %vm1817_vm2, %v10235_v1, %v2288_v25  ;;  %v2352_v51 = vmax.f32 %v13354_v6, %v2288_v25  ;;  %6188 = vmatprep.mubr.msk.f32.mxu0 %vm2613_vm3, %v10359_v35  ;;  %6248 = vmatprep.mubr.msk.f32.mxu1 %vm2613_vm3, %v10359_v35  ;;  %v13360_v54 = vld [vmem:[#allocation8_spill] sm:$0xff] }
 0x26b   : > { %v2397_v1 = vadd.f32 %v2373_v21, %v9637_v52  ;;  %v2351_v28 = vmax.f32 %v13356_v2, %v2306_v38  ;;  %2751 = vmatmul.mubr.f32.gmra.mrb[86].mxu0 %v10369_v17  ;;  %3600 = vmatmul.mubr.f32.gmra.mrb[134].mxu1 %v10369_v17  ;;  %v1818_v7 = vsel %vm1817_vm2, %v13358_v50, %v13357_v13  ;;  %v13362_v21 = vld [vmem:[#allocation10_spill] sm:$0xff]  ;;  %v13364_v38 = vld [vmem:[#allocation9_spill] sm:$0xff]  ;;  %v6111_v50 = vld [vmem:[%s13017_s3 + $0x370] sm:$0xff] }
 0x26c   : > { %v10403_v33 = vmax.f32 %v2398_v56, 0.0  ;;  %v2376_v27 = vmax.f32 %v2220_v62, %v2352_v51  ;;  %6891 = vmatpush1.bf16.msra.mxu0 %v9952_v45  ;;  %7107 = vmatpush1.bf16.msra.mxu1 %v10363_v47  ;;  %v10407_v36 = vpack.c.bf16 %v6107_v60, %v6105_v53  ;;  %v1855_v12 = vmax.f32 %v13360_v54, %v13357_v13  ;;  %v13363_v53 = vld [vmem:[#allocation7_spill] sm:$0xff]  ;;  %v6109_v13 = vld [vmem:[%s13017_s3 + $0x360] sm:$0xff] }
 0x26d   : > { %v10411_v44 = vmax.f32 %v2397_v1, 0.0  ;;  %v2375_v3 = vmax.f32 %v2219_v0, %v2351_v28  ;;  %v1905_v26 = vpop.permute.xlu1 %1904  ;;  %6893 = vmatprep.subr.bf16.mxu0 %v9957_v5  ;;  %7109 = vmatprep.subr.bf16.mxu1 %v10373_v59  ;;  %v10415_v24 = vpack.c.bf16 %v6112_v11, %v6110_v46  ;;  %v1854_v60 = vmax.f32 %v13363_v53, %v1818_v7  ;;  %v2290_v5 = vpop.permute.xlu0 %2289  ;;  %v13366_v46 = vld [vmem:[#allocation14_spill] sm:$0xff]  ;;  %v13367_v1 = vld [vmem:[#allocation89_spill] sm:$0xff] }
 0x26e   : > { %13359 = vst [vmem:[#allocation19_spill] sm:$0xff] %v10403_v33  ;;  %v2400_v62 = vadd.f32 %v2376_v27, %v9629_v55  ;;  %v1950_v45 = vsel %vm1817_vm2, %v10307_v14, %v1905_v26  ;;  %v1987_v25 = vmax.f32 %v13362_v21, %v1905_v26  ;;  %6189 = vmatprep.mubr.msk.f32.mxu0 %vm2613_vm3, %v10403_v33  ;;  %v13368_v26 = vld [vmem:[#allocation49_spill] sm:$0xff]  ;;  %v13369_v21 = vld [vmem:[#allocation75_spill] sm:$0xff] }
 0x26f   : > { %13361 = vst [vmem:[#allocation16_spill] sm:$0xff] %v10411_v44  ;;  %6249 = vmatprep.mubr.msk.f32.mxu1 %vm2613_vm3, %v10403_v33  ;;  %v2399_v56 = vadd.f32 %v2375_v3, %v9637_v52  ;;  %v1986_v6 = vmax.f32 %v13364_v38, %v1950_v45  ;;  %2757 = vmatmul.mubr.f32.gmra.mrb[88].mxu0 %v10411_v44 }
 0x270   : > { %3606 = vmatmul.mubr.f32.gmra.mrb[136].mxu1 %v10411_v44  ;;  %v10430_v14 = vmax.f32 %v2400_v62, 0.0  ;;  %v2011_v51 = vmax.f32 %v1855_v12, %v1987_v25  ;;  %6895 = vmatpush1.bf16.msra.mxu0 %v13366_v46  ;;  %v10460_v53 = vpack.c.bf16 %v6111_v50, %v6109_v13  ;;  %v6115_v46 = vld [vmem:[%s13017_s3 + $0x390] sm:$0xff]  ;;  %v6118_v13 = vld [vmem:[%s13017_s3 + $0x3a8] sm:$0xff] }
 0x271   : > { %7111 = vmatpush1.bf16.msra.mxu1 %v10407_v36  ;;  %v10434_v11 = vmax.f32 %v2399_v56, 0.0  ;;  %v2010_v40 = vmax.f32 %v1854_v60, %v1986_v6  ;;  %v2160_v0 = vpop.permute.xlu1 %2159  ;;  %6897 = vmatprep.subr.bf16.mxu0 %v13367_v1  ;;  %v1814_v54 = vpop.permute.xlu0 %1813  ;;  %v6116_v60 = vld [vmem:[%s13017_s3 + $0x398] sm:$0xff]  ;;  %v13371_v6 = vld [vmem:[#allocation74_spill] sm:$0xff] }
 0x272   : > { %13365 = vst [vmem:[#allocation18_spill] sm:$0xff] %v10430_v14  ;;  %7113 = vmatprep.subr.bf16.mxu1 %v10415_v24  ;;  %v2046_v2 = vadd.f32 %v9629_v55, %v2011_v51  ;;  %6190 = vmatprep.mubr.msk.f32.mxu0 %vm2613_vm3, %v10430_v14  ;;  %v2175_v27 = vsel %vm1817_vm2, %v10365_v15, %v2160_v0  ;;  %v6114_v15 = vld [vmem:[%s13017_s3 + $0x388] sm:$0xff]  ;;  %v13370_v56 = vld [vmem:[#allocation48_spill] sm:$0xff] }
 0x273   : > { %6250 = vmatprep.mubr.msk.f32.mxu1 %vm2613_vm3, %v10430_v14  ;;  %v2045_v28 = vadd.f32 %v9637_v52, %v2010_v40  ;;  %2763 = vmatmul.mubr.f32.gmra.mrb[90].mxu0 %v10434_v11  ;;  %v2222_v62 = vmax.f32 %v13368_v26, %v2160_v0  ;;  %v2221_v38 = vmax.f32 %v13370_v56, %v2175_v27  ;;  %v13372_v0 = vld [vmem:[#allocation92_spill] sm:$0xff]  ;;  %v13374_v26 = vld [vmem:[#allocation94_spill] sm:$0xff] }
 0x274   : > { %3612 = vmatmul.mubr.f32.gmra.mrb[138].mxu1 %v10434_v11  ;;  %v2070_v7 = vmax.f32 %v2046_v2, 0.0 }
 0x275   : > { %6251 = vmatprep.mubr.msk.f32.mxu1 %vm2613_vm3, %v10099_v29  ;;  %v2069_v12 = vmax.f32 %v2045_v28, 0.0  ;;  %v10487_v28 = vpack.c.bf16 %v6116_v60, %v6114_v15  ;;  %v1947_v27 = vpop.permute.xlu0 %1946 }
 0x276   : > { %v2292_v3 = vpop.permute.xlu1 %2291  ;;  %6191 = vmatprep.mubr.msk.f32.mxu0 %vm2613_vm3, %v2070_v7  ;;  %v6117_v7 = vld [vmem:[%s13017_s3 + $0x3a0] sm:$0xff] }
 0x277   : > { %v2307_v45 = vsel %vm1817_vm2, %v2290_v5, %v2292_v3  ;;  %v2354_v25 = vmax.f32 %v13369_v21, %v2292_v3  ;;  %2864 = vmatmul.mubr.f32.vlgmr.msra.gmra.mrb[72].mxu0 %v2069_v12  ;;  %v6113_v5 = vld [vmem:[%s13017_s3 + $0x380] sm:$0xff] }
 0x278   : > { %v2353_v51 = vmax.f32 %v13371_v6, %v2307_v45  ;;  %3683 = vmatmul.mubr.f32.vlgmr.msra.gmra.mrb[120].mxu1 %v10109_v8  ;;  %6192 = vmatprep.mubr.msk.f32.mxu0 %vm2613_vm3, %v13372_v0  ;;  %v10493_v50 = vpack.c.bf16 %v6115_v46, %v6113_v5  ;;  %v13373_v12 = vld [vmem:[#allocation93_spill] sm:$0xff]  ;;  %v13378_v46 = vld [vmem:[#allocation26_spill] sm:$0xff] }
 0x279   : > { %v10477_v40 = vmax.f32 %v2222_v62, %v2354_v25  ;;  %6899 = vmatpush1.bf16.msra.mxu0 %v10071_v41  ;;  %6252 = vmatprep.mubr.msk.f32.mxu1 %vm2613_vm3, %v10143_v63  ;;  %v6120_v41 = vld [vmem:[%s13017_s3 + $0x3b8] sm:$0xff]  ;;  %v13375_v25 = vld [vmem:[#allocation25_spill] sm:$0xff]  ;;  %v2162_v6 = vpop.permute.xlu0 %2161 }
 0x27a   : > { %v10482_v1 = vmax.f32 %v2221_v38, %v2353_v51  ;;  %v1816_v2 = vpop.permute.xlu1 %1815  ;;  %6901 = vmatprep.subr.bf16.mxu0 %v10074_v31  ;;  %7115 = vmatpush1.bf16.msra.mxu1 %v10460_v53  ;;  %v6119_v31 = vld [vmem:[%s13017_s3 + $0x3b0] sm:$0xff]  ;;  %v10513_v45 = vpack.c.bf16 %v6120_v41, %v6118_v13  ;;  %v6124_v38 = vld [vmem:[%s13017_s3 + $0x3d8] sm:$0xff] }
 0x27b   : > { %2870 = vmatmul.mubr.f32.gmra.mrb[74].mxu0 %v13373_v12  ;;  %v1829_v3 = vsel %vm1817_vm2, %v1814_v54, %v1816_v2  ;;  %7117 = vmatprep.subr.bf16.mxu1 %v10487_v28  ;;  %v10515_v21 = vpack.c.bf16 %v6119_v31, %v6117_v7  ;;  %v1877_v15 = vmax.f32 %v13375_v25, %v1816_v2  ;;  %v13376_v54 = vld [vmem:[#allocation27_spill] sm:$0xff]  ;;  %v13377_v51 = vld [vmem:[#allocation24_spill] sm:$0xff]  ;;  %v6126_v25 = vld [vmem:[%s13017_s3 + $0x3e8] sm:$0xff] }
 0x27c   : > { %3689 = vmatmul.mubr.f32.gmra.mrb[122].mxu1 %v10151_v39  ;;  %6193 = vmatprep.mubr.msk.f32.mxu0 %vm2613_vm3, %v13374_v26  ;;  %v1876_v5 = vmax.f32 %v13377_v51, %v1829_v3  ;;  %v13379_v13 = vld [vmem:[#allocation95_spill] sm:$0xff]  ;;  %v13380_v31 = vld [vmem:[#allocation96_spill] sm:$0xff] }
 0x27d   : > { %6253 = vmatprep.mubr.msk.f32.mxu1 %vm2613_vm3, %v10187_v43  ;;  %6903 = vmatpush1.bf16.msra.mxu0 %v10103_v19  ;;  %v6122_v19 = vld [vmem:[%s13017_s3 + $0x3c8] sm:$0xff]  ;;  %v6123_v41 = vld [vmem:[%s13017_s3 + $0x3d0] sm:$0xff] }
 0x27e   : > { %v1949_v62 = vpop.permute.xlu1 %1948  ;;  %6905 = vmatprep.subr.bf16.mxu0 %v10113_v16  ;;  %7119 = vmatpush1.bf16.msra.mxu1 %v10493_v50  ;;  %v6121_v16 = vld [vmem:[%s13017_s3 + $0x3c0] sm:$0xff] }
 0x27f   : > { %v1961_v60 = vsel %vm1817_vm2, %v1947_v27, %v1949_v62  ;;  %v2009_v56 = vmax.f32 %v13376_v54, %v1949_v62  ;;  %2876 = vmatmul.mubr.f32.gmra.mrb[76].mxu0 %v13379_v13  ;;  %7121 = vmatprep.subr.bf16.mxu1 %v10513_v45  ;;  %v10548_v62 = vpack.c.bf16 %v6124_v38, %v6122_v19  ;;  %v6127_v54 = vld [vmem:[%s13017_s3 + $0x3f0] sm:$0xff]  ;;  %v2294_v19 = vpop.permute.xlu0 %2293  ;;  %v13382_v38 = vld [vmem:[#allocation98_spill] sm:$0xff] }
 0x280   : > { %v2008_v2 = vmax.f32 %v13378_v46, %v1961_v60  ;;  %3695 = vmatmul.mubr.f32.gmra.mrb[124].mxu1 %v10195_v30  ;;  %6194 = vmatprep.mubr.msk.f32.mxu0 %vm2613_vm3, %v13380_v31  ;;  %v6128_v60 = vld [vmem:[%s13017_s3 + $0x3f8] sm:$0xff] }
 0x281   : > { %v10538_v7 = vmax.f32 %v1877_v15, %v2009_v56  ;;  %6254 = vmatprep.mubr.msk.f32.mxu1 %vm2613_vm3, %v10229_v9  ;;  %6907 = vmatpush1.bf16.msra.mxu0 %v10147_v42  ;;  %v10555_v15 = vpack.c.bf16 %v6123_v41, %v6121_v16  ;;  %v6125_v42 = vld [vmem:[%s13017_s3 + $0x3e0] sm:$0xff] }
 0x282   : > { %v10544_v27 = vmax.f32 %v1876_v5, %v2008_v2  ;;  %v2164_v3 = vpop.permute.xlu1 %2163  ;;  %7123 = vmatpush1.bf16.msra.mxu1 %v10515_v21  ;;  %6909 = vmatprep.subr.bf16.mxu0 %v10155_v49  ;;  %v13381_v56 = vld [vmem:[#allocation97_spill] sm:$0xff]  ;;  %v10575_v5 = vpack.c.bf16 %v6128_v60, %v6126_v25  ;;  %v10577_v46 = vpack.c.bf16 %v6127_v54, %v6125_v42  ;;  %v13383_v2 = vld [vmem:[#allocation52_spill] sm:$0xff]  ;;  %v13385_v60 = vld [vmem:[#allocation51_spill] sm:$0xff] }
 0x283   : > { %2882 = vmatmul.mubr.f32.gmra.mrb[78].mxu0 %v13381_v56  ;;  %v2176_v49 = vsel %vm1817_vm2, %v2162_v6, %v2164_v3  ;;  %7125 = vmatprep.subr.bf16.mxu1 %v10548_v62  ;;  %v2224_v16 = vmax.f32 %v13383_v2, %v2164_v3  ;;  %v13384_v6 = vld [vmem:[#allocation78_spill] sm:$0xff]  ;;  %v6132_v25 = vld [vmem:[%s13017_s3 + $0x418] sm:$0xff]  ;;  %v13386_v54 = vld [vmem:[#allocation77_spill] sm:$0xff] }
 0x284   : > { %3701 = vmatmul.mubr.f32.gmra.mrb[126].mxu1 %v10239_v20  ;;  %6195 = vmatprep.mubr.msk.f32.mxu0 %vm2613_vm3, %v13382_v38  ;;  %v2223_v42 = vmax.f32 %v13385_v60, %v2176_v49  ;;  %v13387_v2 = vld [vmem:[#allocation99_spill] sm:$0xff]  ;;  %v6136_v60 = vld [vmem:[%s13017_s3 + $0x438] sm:$0xff] }
 0x285   : > { %6255 = vmatprep.mubr.msk.f32.mxu1 %vm2613_vm3, %v10273_v23  ;;  %6911 = vmatpush1.bf16.msra.mxu0 %v10191_v18  ;;  %v6130_v18 = vld [vmem:[%s13017_s3 + $0x408] sm:$0xff] }
 0x286   : > { %v2296_v51 = vpop.permute.xlu1 %2295  ;;  %7127 = vmatpush1.bf16.msra.mxu1 %v10555_v15  ;;  %6913 = vmatprep.subr.bf16.mxu0 %v10199_v58  ;;  %v6129_v58 = vld [vmem:[%s13017_s3 + $0x400] sm:$0xff] }
 0x287   : > { %v2308_v41 = vsel %vm1817_vm2, %v2294_v19, %v2296_v51  ;;  %v2356_v20 = vmax.f32 %v13384_v6, %v2296_v51  ;;  %2888 = vmatmul.mubr.f32.gmra.mrb[80].mxu0 %v13387_v2  ;;  %v6131_v19 = vld [vmem:[%s13017_s3 + $0x410] sm:$0xff]  ;;  %v13389_v6 = vld [vmem:[#allocation100_spill] sm:$0xff]  ;;  %7129 = vmatprep.subr.bf16.mxu1 %v10575_v5 }
 0x288   : > { %v2355_v3 = vmax.f32 %v13386_v54, %v2308_v41  ;;  %3707 = vmatmul.mubr.f32.gmra.mrb[128].mxu1 %v10281_v37  ;;  %6196 = vmatprep.mubr.msk.f32.mxu0 %vm2613_vm3, %v13389_v6  ;;  %v10610_v41 = vpack.c.bf16 %v6132_v25, %v6130_v18  ;;  %v13392_v18 = vld [vmem:[#allocation11_spill] sm:$0xff] }
 0x289   : > { %v10600_v51 = vmax.f32 %v2224_v16, %v2356_v20  ;;  %6256 = vmatprep.mubr.msk.f32.mxu1 %vm2613_vm3, %v10317_v57  ;;  %6915 = vmatpush1.bf16.msra.mxu0 %v10233_v61  ;;  %v10614_v20 = vpack.c.bf16 %v6131_v19, %v6129_v58  ;;  %v6134_v16 = vld [vmem:[%s13017_s3 + $0x428] sm:$0xff]  ;;  %v6133_v61 = vld [vmem:[%s13017_s3 + $0x420] sm:$0xff]  ;;  %v6140_v58 = vld [vmem:[%s13017_s3 + $0x458] sm:$0xff] }
 0x28a   : > { %v10606_v49 = vmax.f32 %v2223_v42, %v2355_v3  ;;  %7131 = vmatpush1.bf16.msra.mxu1 %v10577_v46  ;;  %6917 = vmatprep.subr.bf16.mxu0 %v10243_v34  ;;  %v13391_v42 = vld [vmem:[#allocation101_spill] sm:$0xff]  ;;  %v6135_v34 = vld [vmem:[%s13017_s3 + $0x430] sm:$0xff]  ;;  %v10636_v25 = vpack.c.bf16 %v6136_v60, %v6134_v16  ;;  %v6138_v3 = vld [vmem:[%s13017_s3 + $0x448] sm:$0xff] }
 0x28b   : > { %13388 = vst [vmem:[#allocation76_spill] sm:$0xff] %v10600_v51  ;;  %2894 = vmatmul.mubr.f32.gmra.mrb[82].mxu0 %v13391_v42  ;;  %7133 = vmatprep.subr.bf16.mxu1 %v10610_v41  ;;  %v10640_v54 = vpack.c.bf16 %v6135_v34, %v6133_v61  ;;  %v13393_v19 = vld [vmem:[#allocation87_spill] sm:$0xff]  ;;  %v13394_v16 = vld [vmem:[#allocation80_spill] sm:$0xff]  ;;  %v10662_v60 = vpack.c.bf16 %v6140_v58, %v6138_v3  ;;  %v13395_v51 = vld [vmem:[#allocation13_spill] sm:$0xff] }
 0x28c   : > { %13390 = vst [vmem:[#allocation91_spill] sm:$0xff] %v10606_v49  ;;  %3713 = vmatmul.mubr.f32.gmra.mrb[130].mxu1 %v10325_v32  ;;  %6197 = vmatprep.mubr.msk.f32.mxu0 %vm2613_vm3, %v13392_v18  ;;  %v2402_v61 = vadd.f32 %v10477_v40, %v9629_v55  ;;  %v6142_v49 = vld [vmem:[%s13017_s3 + $0x468] sm:$0xff]  ;;  %v6141_v40 = vld [vmem:[%s13017_s3 + $0x460] sm:$0xff]  ;;  %v2401_v58 = vadd.f32 %v10482_v1, %v9637_v52  ;;  %v13398_v1 = vld [vmem:[#allocation12_spill] sm:$0xff] }
 0x28d   : > { %6257 = vmatprep.mubr.msk.f32.mxu1 %vm2613_vm3, %v10359_v35  ;;  %6919 = vmatpush1.bf16.msra.mxu0 %v10277_v4  ;;  %v6137_v4 = vld [vmem:[%s13017_s3 + $0x440] sm:$0xff] }
 0x28e   : > { %7135 = vmatpush1.bf16.msra.mxu1 %v10614_v20  ;;  %6921 = vmatprep.subr.bf16.mxu0 %v10285_v10  ;;  %v6139_v10 = vld [vmem:[%s13017_s3 + $0x450] sm:$0xff]  ;;  %v13396_v3 = vld [vmem:[#allocation81_spill] sm:$0xff] }
 0x28f   : > { %2900 = vmatmul.mubr.f32.gmra.mrb[84].mxu0 %v13393_v19  ;;  %7137 = vmatprep.subr.bf16.mxu1 %v10636_v25  ;;  %v10668_v34 = vpack.c.bf16 %v6139_v10, %v6137_v4  ;;  %v10694_v10 = vmax.f32 %v2402_v61, 0.0  ;;  %v13399_v61 = vld [vmem:[#allocation50_spill] sm:$0xff] }
 0x290   : > { %3719 = vmatmul.mubr.f32.gmra.mrb[132].mxu1 %v10369_v17  ;;  %6198 = vmatprep.mubr.msk.f32.mxu0 %vm2613_vm3, %v13394_v16 }
 0x291   : > { %6258 = vmatprep.mubr.msk.f32.mxu1 %vm2613_vm3, %v10403_v33  ;;  %6923 = vmatpush1.bf16.msra.mxu0 %v10321_v48  ;;  %v6144_v48 = vld [vmem:[%s13017_s3 + $0x478] sm:$0xff]  ;;  %v13397_v33 = vld [vmem:[#allocation15_spill] sm:$0xff] }
 0x292   : > { %7139 = vmatpush1.bf16.msra.mxu1 %v10640_v54  ;;  %6925 = vmatprep.subr.bf16.mxu0 %v10329_v22  ;;  %v6143_v22 = vld [vmem:[%s13017_s3 + $0x470] sm:$0xff]  ;;  %v10692_v4 = vpack.c.bf16 %v6144_v48, %v6142_v49  ;;  %v6145_v48 = vld [vmem:[%s13017_s3 + $0x480] sm:$0xff] }
 0x293   : > { %2906 = vmatmul.mubr.f32.gmra.mrb[86].mxu0 %v13395_v51  ;;  %7141 = vmatprep.subr.bf16.mxu1 %v10662_v60 }
 0x294   : > { %3725 = vmatmul.mubr.f32.gmra.mrb[134].mxu1 %v10411_v44  ;;  %6199 = vmatprep.mubr.msk.f32.mxu0 %vm2613_vm3, %v13396_v3  ;;  %v10698_v44 = vpack.c.bf16 %v6143_v22, %v6141_v40  ;;  %v6147_v40 = vld [vmem:[%s13017_s3 + $0x490] sm:$0xff] }
 0x295   : > { %6259 = vmatprep.mubr.msk.f32.mxu1 %vm2613_vm3, %v10430_v14  ;;  %6927 = vmatpush1.bf16.msra.mxu0 %v10363_v47  ;;  %v6146_v14 = vld [vmem:[%s13017_s3 + $0x488] sm:$0xff]  ;;  %v6148_v47 = vld [vmem:[%s13017_s3 + $0x498] sm:$0xff]  ;;  %v6151_v22 = vld [vmem:[%s13017_s3 + $0x4b0] sm:$0xff] }
 0x296   : > { %7143 = vmatpush1.bf16.msra.mxu1 %v10668_v34  ;;  %6929 = vmatprep.subr.bf16.mxu0 %v10373_v59  ;;  %v10712_v59 = vmax.f32 %v2401_v58, 0.0  ;;  %v10716_v49 = vpack.c.bf16 %v6148_v47, %v6146_v14  ;;  %v6152_v14 = vld [vmem:[%s13017_s3 + $0x4b8] sm:$0xff]  ;;  %v6154_v47 = vld [vmem:[%s13017_s3 + $0x4c8] sm:$0xff] }
 0x297   : > { %2912 = vmatmul.mubr.f32.gmra.mrb[88].mxu0 %v13397_v33  ;;  %7145 = vmatprep.subr.bf16.mxu1 %v10692_v4 }
 0x298   : > { %3731 = vmatmul.mubr.f32.gmra.mrb[136].mxu1 %v10434_v11  ;;  %6200 = vmatprep.mubr.msk.f32.mxu0 %vm2613_vm3, %v13398_v1 }
 0x299   : > { %6260 = vmatprep.mubr.msk.f32.mxu1 %vm2613_vm3, %v10694_v10  ;;  %6931 = vmatpush1.bf16.msra.mxu0 %v10407_v36  ;;  %v10733_v36 = vpack.c.bf16 %v6147_v40, %v6145_v48  ;;  %v6156_v48 = vld [vmem:[%s13017_s3 + $0x4d8] sm:$0xff] }
 0x29a   : > { %7147 = vmatpush1.bf16.msra.mxu1 %v10698_v44  ;;  %6933 = vmatprep.subr.bf16.mxu0 %v10415_v24  ;;  %v6150_v24 = vld [vmem:[%s13017_s3 + $0x4a8] sm:$0xff]  ;;  %v10780_v40 = vpack.c.bf16 %v6156_v48, %v6154_v47 }
 0x29b   : > { %2918 = vmatmul.mubr.f32.gmra.mrb[90].mxu0 %v13399_v61  ;;  %7149 = vmatprep.subr.bf16.mxu1 %v10716_v49  ;;  %v6162_v48 = vld [vmem:[%s13017_s3 + $0x508] sm:$0xff] }
 0x29c   : > { %3737 = vmatmul.mubr.f32.gmra.mrb[138].mxu1 %v10712_v59  ;;  %6201 = vmatprep.mubr.msk.f32.mxu0 %vm2613_vm3, %v13372_v0  ;;  %v6149_v0 = vld [vmem:[%s13017_s3 + $0x4a0] sm:$0xff] }
 0x29d   : > { %6261 = vmatprep.mubr.msk.f32.mxu1 %vm2613_vm3, %v13374_v26  ;;  %v10758_v58 = vpack.c.bf16 %v6151_v22, %v6149_v0  ;;  %v6160_v0 = vld [vmem:[%s13017_s3 + $0x4f8] sm:$0xff] }
 0x29f   : > { %2992 = vmatmul.mubr.f32.vlgmr.msra.gmra.mrb[72].mxu0 %v13373_v12  ;;  %v10755_v12 = vpack.c.bf16 %v6152_v14, %v6150_v24  ;;  %v6158_v14 = vld [vmem:[%s13017_s3 + $0x4e8] sm:$0xff] }
 0x2a0   : > { %3828 = vmatmul.mubr.f32.vlgmr.msra.gmra.mrb[120].mxu1 %v13379_v13  ;;  %6202 = vmatprep.mubr.msk.f32.mxu0 %vm2613_vm3, %v13374_v26  ;;  %v10806_v22 = vpack.c.bf16 %v6160_v0, %v6158_v14  ;;  %v6166_v0 = vld [vmem:[%s13017_s3 + $0x528] sm:$0xff] }
 0x2a1   : > { %6935 = vmatpush1.bf16.msra.mxu0 %v10460_v53  ;;  %6262 = vmatprep.mubr.msk.f32.mxu1 %vm2613_vm3, %v13380_v31  ;;  %v6153_v53 = vld [vmem:[%s13017_s3 + $0x4c0] sm:$0xff] }
 0x2a2   : > { %6937 = vmatprep.subr.bf16.mxu0 %v10487_v28  ;;  %7151 = vmatpush1.bf16.msra.mxu1 %v10733_v36  ;;  %v6155_v28 = vld [vmem:[%s13017_s3 + $0x4d0] sm:$0xff] }
 0x2a3   : > { %2998 = vmatmul.mubr.f32.gmra.mrb[74].mxu0 %v13379_v13  ;;  %7153 = vmatprep.subr.bf16.mxu1 %v10755_v12  ;;  %v10784_v24 = vpack.c.bf16 %v6155_v28, %v6153_v53  ;;  %v6164_v53 = vld [vmem:[%s13017_s3 + $0x518] sm:$0xff] }
 0x2a4   : > { %3834 = vmatmul.mubr.f32.gmra.mrb[122].mxu1 %v13381_v56  ;;  %6203 = vmatprep.mubr.msk.f32.mxu0 %vm2613_vm3, %v13380_v31  ;;  %v10832_v28 = vpack.c.bf16 %v6164_v53, %v6162_v48  ;;  %v6170_v53 = vld [vmem:[%s13017_s3 + $0x548] sm:$0xff] }
 0x2a5   : > { %6263 = vmatprep.mubr.msk.f32.mxu1 %vm2613_vm3, %v13382_v38  ;;  %6939 = vmatpush1.bf16.msra.mxu0 %v10493_v50  ;;  %v6157_v50 = vld [vmem:[%s13017_s3 + $0x4e0] sm:$0xff] }
 0x2a6   : > { %6941 = vmatprep.subr.bf16.mxu0 %v10513_v45  ;;  %7155 = vmatpush1.bf16.msra.mxu1 %v10758_v58  ;;  %v6159_v45 = vld [vmem:[%s13017_s3 + $0x4f0] sm:$0xff] }
 0x2a7   : > { %3004 = vmatmul.mubr.f32.gmra.mrb[76].mxu0 %v13381_v56  ;;  %7157 = vmatprep.subr.bf16.mxu1 %v10780_v40  ;;  %v10810_v47 = vpack.c.bf16 %v6159_v45, %v6157_v50  ;;  %v6168_v50 = vld [vmem:[%s13017_s3 + $0x538] sm:$0xff] }
 0x2a8   : > { %3840 = vmatmul.mubr.f32.gmra.mrb[124].mxu1 %v13387_v2  ;;  %6204 = vmatprep.mubr.msk.f32.mxu0 %vm2613_vm3, %v13382_v38  ;;  %v10858_v45 = vpack.c.bf16 %v6168_v50, %v6166_v0  ;;  %v6174_v50 = vld [vmem:[%s13017_s3 + $0x568] sm:$0xff] }
 0x2a9   : > { %6264 = vmatprep.mubr.msk.f32.mxu1 %vm2613_vm3, %v13389_v6  ;;  %6943 = vmatpush1.bf16.msra.mxu0 %v10515_v21  ;;  %v6161_v21 = vld [vmem:[%s13017_s3 + $0x500] sm:$0xff] }
 0x2aa   : > { %7159 = vmatpush1.bf16.msra.mxu1 %v10784_v24  ;;  %6945 = vmatprep.subr.bf16.mxu0 %v10548_v62  ;;  %v6163_v62 = vld [vmem:[%s13017_s3 + $0x510] sm:$0xff] }
 0x2ab   : > { %3010 = vmatmul.mubr.f32.gmra.mrb[78].mxu0 %v13387_v2  ;;  %7161 = vmatprep.subr.bf16.mxu1 %v10806_v22  ;;  %v10836_v14 = vpack.c.bf16 %v6163_v62, %v6161_v21  ;;  %v6172_v21 = vld [vmem:[%s13017_s3 + $0x558] sm:$0xff] }
 0x2ac   : > { %3846 = vmatmul.mubr.f32.gmra.mrb[126].mxu1 %v13391_v42  ;;  %6205 = vmatprep.mubr.msk.f32.mxu0 %vm2613_vm3, %v13389_v6  ;;  %v10884_v62 = vpack.c.bf16 %v6172_v21, %v6170_v53  ;;  %v10914_v53 = vadd.f32 %v9629_v55, %v10538_v7  ;;  %v6177_v7 = vld [vmem:[%s13017_s3 + $0x580] sm:$0xff] }
 0x2ad   : > { %6265 = vmatprep.mubr.msk.f32.mxu1 %vm2613_vm3, %v13392_v18  ;;  %6947 = vmatpush1.bf16.msra.mxu0 %v10555_v15  ;;  %v6165_v15 = vld [vmem:[%s13017_s3 + $0x520] sm:$0xff] }
 0x2ae   : > { %7163 = vmatpush1.bf16.msra.mxu1 %v10810_v47  ;;  %6949 = vmatprep.subr.bf16.mxu0 %v10575_v5  ;;  %v6167_v5 = vld [vmem:[%s13017_s3 + $0x530] sm:$0xff] }
 0x2af   : > { %3016 = vmatmul.mubr.f32.gmra.mrb[80].mxu0 %v13391_v42  ;;  %7165 = vmatprep.subr.bf16.mxu1 %v10832_v28  ;;  %v10862_v48 = vpack.c.bf16 %v6167_v5, %v6165_v15  ;;  %v6176_v15 = vld [vmem:[%s13017_s3 + $0x578] sm:$0xff] }
 0x2b0   : > { %3852 = vmatmul.mubr.f32.gmra.mrb[128].mxu1 %v13393_v19  ;;  %6206 = vmatprep.mubr.msk.f32.mxu0 %vm2613_vm3, %v13392_v18  ;;  %v10910_v5 = vpack.c.bf16 %v6176_v15, %v6174_v50  ;;  %v10942_v50 = vadd.f32 %v9637_v52, %v10544_v27 }
 0x2b1   : > { %6266 = vmatprep.mubr.msk.f32.mxu1 %vm2613_vm3, %v13394_v16  ;;  %6951 = vmatpush1.bf16.msra.mxu0 %v10577_v46  ;;  %v6169_v46 = vld [vmem:[%s13017_s3 + $0x540] sm:$0xff] }
 0x2b2   : > { %7167 = vmatpush1.bf16.msra.mxu1 %v10836_v14  ;;  %6953 = vmatprep.subr.bf16.mxu0 %v10610_v41  ;;  %v6171_v41 = vld [vmem:[%s13017_s3 + $0x550] sm:$0xff]  ;;  %v2091_v27 = vmax.f32 %v10942_v50, 0.0 }
 0x2b3   : > { %3022 = vmatmul.mubr.f32.gmra.mrb[82].mxu0 %v13393_v19  ;;  %7169 = vmatprep.subr.bf16.mxu1 %v10858_v45  ;;  %v10888_v0 = vpack.c.bf16 %v6171_v41, %v6169_v46  ;;  %v6178_v46 = vld [vmem:[%s13017_s3 + $0x588] sm:$0xff]  ;;  %v4287_v50 = vld [vmem:[%s13019_s5 + $0x10] sm:$0xff] }
 0x2b4   : > { %3858 = vmatmul.mubr.f32.gmra.mrb[130].mxu1 %v13395_v51  ;;  %6207 = vmatprep.mubr.msk.f32.mxu0 %vm2613_vm3, %v13394_v16  ;;  %v13400_v41 = vld [vmem:[#allocation82_spill] sm:$0xff] }
 0x2b5   : > { %6267 = vmatprep.mubr.msk.f32.mxu1 %vm2613_vm3, %v13396_v3  ;;  %6955 = vmatpush1.bf16.msra.mxu0 %v10614_v20  ;;  %v6173_v20 = vld [vmem:[%s13017_s3 + $0x560] sm:$0xff] }
 0x2b6   : > { %7171 = vmatpush1.bf16.msra.mxu1 %v10862_v48  ;;  %6957 = vmatprep.subr.bf16.mxu0 %v10636_v25  ;;  %v6175_v25 = vld [vmem:[%s13017_s3 + $0x570] sm:$0xff] }
 0x2b7   : > { %3028 = vmatmul.mubr.f32.gmra.mrb[84].mxu0 %v13395_v51  ;;  %7173 = vmatprep.subr.bf16.mxu1 %v10884_v62  ;;  %v10918_v21 = vpack.c.bf16 %v6175_v25, %v6173_v20  ;;  %v2092_v20 = vmax.f32 %v10914_v53, 0.0 }
 0x2b8   : > { %3864 = vmatmul.mubr.f32.gmra.mrb[132].mxu1 %v13397_v33  ;;  %6208 = vmatprep.mubr.msk.f32.mxu0 %vm2613_vm3, %v13396_v3 }
 0x2b9   : > { %6268 = vmatprep.mubr.msk.f32.mxu1 %vm2613_vm3, %v13398_v1  ;;  %6959 = vmatpush1.bf16.msra.mxu0 %v10640_v54  ;;  %v6180_v54 = vld [vmem:[%s13017_s3 + $0x598] sm:$0xff] }
 0x2ba   : > { %7175 = vmatpush1.bf16.msra.mxu1 %v10888_v0  ;;  %6961 = vmatprep.subr.bf16.mxu0 %v10662_v60  ;;  %v6179_v60 = vld [vmem:[%s13017_s3 + $0x590] sm:$0xff]  ;;  %v10944_v15 = vpack.c.bf16 %v6180_v54, %v6178_v46  ;;  %v4338_v54 = vld [vmem:[%s13019_s5 + $0x1a8] sm:$0xff] }
 0x2bb   : > { %3034 = vmatmul.mubr.f32.gmra.mrb[86].mxu0 %v13397_v33  ;;  %7177 = vmatprep.subr.bf16.mxu1 %v10910_v5  ;;  %v10949_v25 = vpack.c.bf16 %v6179_v60, %v6177_v7  ;;  %v4335_v46 = vld [vmem:[%s13019_s5 + $0x190] sm:$0xff] }
 0x2bc   : > { %3870 = vmatmul.mubr.f32.gmra.mrb[134].mxu1 %v13399_v61  ;;  %6209 = vmatprep.mubr.msk.f32.mxu0 %vm2613_vm3, %v13398_v1  ;;  %v13401_v1 = vld [vmem:[#allocation17_spill] sm:$0xff]  ;;  %v4331_v60 = vld [vmem:[%s13019_s5 + $0x170] sm:$0xff] }
 0x2bd   : > { %6269 = vmatprep.mubr.msk.f32.mxu1 %vm2613_vm3, %v13400_v41  ;;  %6963 = vmatpush1.bf16.msra.mxu0 %v10668_v34  ;;  %v4307_v34 = vld [vmem:[%s13019_s5 + $0xb0] sm:$0xff] }
 0x2be   : > { %7179 = vmatpush1.bf16.msra.mxu1 %v10918_v21  ;;  %6965 = vmatprep.subr.bf16.mxu0 %v10692_v4  ;;  %v4303_v4 = vld [vmem:[%s13019_s5 + $0x90] sm:$0xff] }
 0x2bf   : > { %3040 = vmatmul.mubr.f32.gmra.mrb[88].mxu0 %v13399_v61  ;;  %7181 = vmatprep.subr.bf16.mxu1 %v10944_v15 }
 0x2c0   : > { %3876 = vmatmul.mubr.f32.gmra.mrb[136].mxu1 %v13401_v1  ;;  %6210 = vmatprep.mubr.msk.f32.mxu0 %vm2613_vm3, %v13400_v41 }
 0x2c1   : > { %6270 = vmatprep.mubr.msk.f32.mxu1 %vm2613_vm3, %v2092_v20  ;;  %6967 = vmatpush1.bf16.msra.mxu0 %v10698_v44 }
 0x2c2   : > { %7183 = vmatpush1.bf16.msra.mxu1 %v10949_v25  ;;  %6969 = vmatprep.subr.bf16.mxu0 %v10716_v49  ;;  %v4313_v49 = vld [vmem:[%s13019_s5 + $0xe0] sm:$0xff] }
 0x2c3   : > { %3046 = vmatmul.mubr.f32.gmra.mrb[90].mxu0 %v13401_v1 }
 0x2c4   : > { %3882 = vmatmul.mubr.f32.gmra.mrb[138].mxu1 %v2091_v27  ;;  %6211 = vmatprep.mubr.msk.f32.mxu0 %vm2613_vm3, %v10099_v29  ;;  %v13402_v29 = vld [vmem:[#allocation83_spill] sm:$0xff] }
 0x2c5   : > { %6271 = vmatprep.mubr.msk.f32.mxu1 %vm2613_vm3, %v10143_v63 }
 0x2c7   : > { %3140 = vmatmul.mubr.f32.vlgmr.msra.gmra.mrb[72].mxu0 %v10109_v8  ;;  %v13403_v8 = vld [vmem:[#allocation19_spill] sm:$0xff] }
 0x2c8   : > { %3976 = vmatmul.mubr.f32.vlgmr.msra.gmra.mrb[120].mxu1 %v10151_v39  ;;  %6212 = vmatprep.mubr.msk.f32.mxu0 %vm2613_vm3, %v10143_v63  ;;  %v13404_v63 = vld [vmem:[#allocation16_spill] sm:$0xff] }
 0x2c9   : > { %6971 = vmatpush1.bf16.msra.mxu0 %v10733_v36  ;;  %6272 = vmatprep.mubr.msk.f32.mxu1 %vm2613_vm3, %v10187_v43 }
 0x2ca   : > { %6973 = vmatprep.subr.bf16.mxu0 %v10755_v12  ;;  %v4312_v12 = vld [vmem:[%s13019_s5 + $0xd8] sm:$0xff] }
 0x2cb   : > { %3146 = vmatmul.mubr.f32.gmra.mrb[74].mxu0 %v10151_v39  ;;  %v13405_v39 = vld [vmem:[#allocation18_spill] sm:$0xff] }
 0x2cc   : > { %3982 = vmatmul.mubr.f32.gmra.mrb[122].mxu1 %v10195_v30  ;;  %6213 = vmatprep.mubr.msk.f32.mxu0 %vm2613_vm3, %v10187_v43  ;;  %v13406_v43 = vld [vmem:[#allocation76_spill] sm:$0xff] }
 0x2cd   : > { %6273 = vmatprep.mubr.msk.f32.mxu1 %vm2613_vm3, %v10229_v9  ;;  %6975 = vmatpush1.bf16.msra.mxu0 %v10758_v58  ;;  %v4316_v58 = vld [vmem:[%s13019_s5 + $0xf8] sm:$0xff] }
 0x2ce   : > { %6977 = vmatprep.subr.bf16.mxu0 %v10780_v40  ;;  %v4319_v40 = vld [vmem:[%s13019_s5 + $0x110] sm:$0xff] }
 0x2cf   : > { %3152 = vmatmul.mubr.f32.gmra.mrb[76].mxu0 %v10195_v30  ;;  %v2404_v30 = vadd.f32 %v13406_v43, %v9629_v55 }
 0x2d0   : > { %3988 = vmatmul.mubr.f32.gmra.mrb[124].mxu1 %v13402_v29  ;;  %6214 = vmatprep.mubr.msk.f32.mxu0 %vm2613_vm3, %v10229_v9  ;;  %v13407_v9 = vld [vmem:[#allocation91_spill] sm:$0xff] }
 0x2d1   : > { %6274 = vmatprep.mubr.msk.f32.mxu1 %vm2613_vm3, %v10273_v23  ;;  %6979 = vmatpush1.bf16.msra.mxu0 %v10784_v24 }
 0x2d2   : > { %6981 = vmatprep.subr.bf16.mxu0 %v10806_v22  ;;  %v7204_v22 = vpack.c.bf16 %v4319_v40, %v4316_v58 }
 0x2d3   : > { %3158 = vmatmul.mubr.f32.gmra.mrb[78].mxu0 %v13402_v29  ;;  %v4327_v29 = vld [vmem:[%s13019_s5 + $0x150] sm:$0xff] }
 0x2d4   : > { %3994 = vmatmul.mubr.f32.gmra.mrb[126].mxu1 %v10281_v37  ;;  %6215 = vmatprep.mubr.msk.f32.mxu0 %vm2613_vm3, %v10273_v23  ;;  %v2403_v23 = vadd.f32 %v13407_v9, %v9637_v52  ;;  %v13408_v52 = vld [vmem:[#allocation12_spill] sm:$0xff] }
 0x2d5   : > { %6275 = vmatprep.mubr.msk.f32.mxu1 %vm2613_vm3, %v10317_v57  ;;  %6983 = vmatpush1.bf16.msra.mxu0 %v10810_v47  ;;  %v4315_v47 = vld [vmem:[%s13019_s5 + $0xf0] sm:$0xff] }
 0x2d6   : > { %6985 = vmatprep.subr.bf16.mxu0 %v10832_v28  ;;  %v2427_v55 = vmax.f32 %v2403_v23, 0.0  ;;  %v4318_v28 = vld [vmem:[%s13019_s5 + $0x108] sm:$0xff]  ;;  %v4293_v23 = vld [vmem:[%s13019_s5 + $0x40] sm:$0xff] }
 0x2d7   : > { %3164 = vmatmul.mubr.f32.gmra.mrb[80].mxu0 %v10281_v37  ;;  %v2428_v37 = vmax.f32 %v2404_v30, 0.0  ;;  %v4334_v30 = vld [vmem:[%s13019_s5 + $0x188] sm:$0xff] }
 0x2d8   : > { %4000 = vmatmul.mubr.f32.gmra.mrb[128].mxu1 %v10325_v32  ;;  %6216 = vmatprep.mubr.msk.f32.mxu0 %vm2613_vm3, %v10317_v57  ;;  %v4286_v57 = vld [vmem:[%s13019_s5 + $0x8] sm:$0xff] }
 0x2d9   : > { %6276 = vmatprep.mubr.msk.f32.mxu1 %vm2613_vm3, %v10359_v35  ;;  %6987 = vmatpush1.bf16.msra.mxu0 %v10836_v14  ;;  %v4322_v14 = vld [vmem:[%s13019_s5 + $0x128] sm:$0xff] }
 0x2da   : > { %6989 = vmatprep.subr.bf16.mxu0 %v10858_v45  ;;  %v4325_v45 = vld [vmem:[%s13019_s5 + $0x140] sm:$0xff] }
 0x2db   : > { %3170 = vmatmul.mubr.f32.gmra.mrb[82].mxu0 %v10325_v32  ;;  %v4289_v32 = vld [vmem:[%s13019_s5 + $0x20] sm:$0xff]  ;;  %v7208_v53 = vpack.c.bf16 %v4325_v45, %v4322_v14  ;;  %v4352_v14 = vld [vmem:[%s13019_s5 + $0x218] sm:$0xff]  ;;  %v4355_v45 = vld [vmem:[%s13019_s5 + $0x230] sm:$0xff] }
 0x2dc   : > { %4006 = vmatmul.mubr.f32.gmra.mrb[130].mxu1 %v10369_v17  ;;  %6217 = vmatprep.mubr.msk.f32.mxu0 %vm2613_vm3, %v10359_v35  ;;  %v7184_v35 = vpack.c.bf16 %v4289_v32, %v4286_v57  ;;  %v4347_v32 = vld [vmem:[%s13019_s5 + $0x1f0] sm:$0xff] }
 0x2dd   : > { %6277 = vmatprep.mubr.msk.f32.mxu1 %vm2613_vm3, %v13403_v8  ;;  %6991 = vmatpush1.bf16.msra.mxu0 %v10862_v48  ;;  %v7206_v48 = vpack.c.bf16 %v4318_v28, %v4315_v47  ;;  %v4348_v47 = vld [vmem:[%s13019_s5 + $0x1f8] sm:$0xff] }
 0x2de   : > { %6993 = vmatprep.subr.bf16.mxu0 %v10884_v62  ;;  %v4321_v62 = vld [vmem:[%s13019_s5 + $0x120] sm:$0xff] }
 0x2df   : > { %3176 = vmatmul.mubr.f32.gmra.mrb[84].mxu0 %v10369_v17  ;;  %v4285_v17 = vld [vmem:[%s13019_s5] sm:$0xff] }
 0x2e0   : > { %4012 = vmatmul.mubr.f32.gmra.mrb[132].mxu1 %v13404_v63  ;;  %6218 = vmatprep.mubr.msk.f32.mxu0 %vm2613_vm3, %v13403_v8  ;;  %v4330_v8 = vld [vmem:[%s13019_s5 + $0x168] sm:$0xff] }
 0x2e1   : > { %6278 = vmatprep.mubr.msk.f32.mxu1 %vm2613_vm3, %v13405_v39  ;;  %6995 = vmatpush1.bf16.msra.mxu0 %v10888_v0  ;;  %v4324_v0 = vld [vmem:[%s13019_s5 + $0x138] sm:$0xff] }
 0x2e2   : > { %6997 = vmatprep.subr.bf16.mxu0 %v10910_v5 }
 0x2e3   : > { %3182 = vmatmul.mubr.f32.gmra.mrb[86].mxu0 %v13404_v63  ;;  %v4344_v63 = vld [vmem:[%s13019_s5 + $0x1d8] sm:$0xff] }
 0x2e4   : > { %4018 = vmatmul.mubr.f32.gmra.mrb[134].mxu1 %v10434_v11  ;;  %6219 = vmatprep.mubr.msk.f32.mxu0 %vm2613_vm3, %v13405_v39 }
 0x2e5   : > { %6279 = vmatprep.mubr.msk.f32.mxu1 %vm2613_vm3, %v10694_v10  ;;  %6999 = vmatpush1.bf16.msra.mxu0 %v10918_v21  ;;  %v4328_v21 = vld [vmem:[%s13019_s5 + $0x158] sm:$0xff] }
 0x2e6   : > { %7001 = vmatprep.subr.bf16.mxu0 %v10944_v15  ;;  %v4290_v15 = vld [vmem:[%s13019_s5 + $0x28] sm:$0xff]  ;;  %v7212_v43 = vpack.c.bf16 %v4331_v60, %v4328_v21 }
 0x2e7   : > { %3188 = vmatmul.mubr.f32.gmra.mrb[88].mxu0 %v10434_v11  ;;  %v4292_v11 = vld [vmem:[%s13019_s5 + $0x38] sm:$0xff]  ;;  %v4354_v21 = vld [vmem:[%s13019_s5 + $0x228] sm:$0xff] }
 0x2e8   : > { %4024 = vmatmul.mubr.f32.gmra.mrb[136].mxu1 %v10712_v59  ;;  %6220 = vmatprep.mubr.msk.f32.mxu0 %vm2613_vm3, %v10694_v10  ;;  %v4306_v10 = vld [vmem:[%s13019_s5 + $0xa8] sm:$0xff] }
 0x2e9   : > { %6280 = vmatprep.mubr.msk.f32.mxu1 %vm2613_vm3, %v2428_v37  ;;  %7003 = vmatpush1.bf16.msra.mxu0 %v10949_v25  ;;  %v4341_v25 = vld [vmem:[%s13019_s5 + $0x1c0] sm:$0xff]  ;;  %v4296_v37 = vld [vmem:[%s13019_s5 + $0x58] sm:$0xff] }
 0x2ea   : > { %7185 = vmatprep.subr.bf16.mxu0 %v7184_v35  ;;  %v7508_v9 = vpack.c.bf16 %v4344_v63, %v4341_v25  ;;  %v7510_v57 = vpack.c.bf16 %v4296_v37, %v4293_v23  ;;  %v4350_v35 = vld [vmem:[%s13019_s5 + $0x208] sm:$0xff]  ;;  %v4360_v63 = vld [vmem:[%s13019_s5 + $0x258] sm:$0xff]  ;;  %v4311_v23 = vld [vmem:[%s13019_s5 + $0xd0] sm:$0xff] }
 0x2eb   : > { %3194 = vmatmul.mubr.f32.gmra.mrb[90].mxu0 %v10712_v59  ;;  %v4310_v59 = vld [vmem:[%s13019_s5 + $0xc8] sm:$0xff] }
 0x2ec   : > { %4030 = vmatmul.mubr.f32.gmra.mrb[138].mxu1 %v2427_v55  ;;  %6221 = vmatprep.mubr.msk.f32.mxu0 %vm2613_vm3, %v13374_v26  ;;  %v4295_v26 = vld [vmem:[%s13019_s5 + $0x50] sm:$0xff]  ;;  %v7200_v36 = vpack.c.bf16 %v4313_v49, %v4310_v59  ;;  %v4342_v59 = vld [vmem:[%s13019_s5 + $0x1c8] sm:$0xff] }
 0x2ed   : > { %v4314_v37 = vld [vmem:[%s13019_s5 + $0xe8] sm:$0xff] }
 0x2ef   : > { %3288 = vmatmul.mubr.f32.vlgmr.msra.gmra.mrb[72].mxu0 %v13379_v13  ;;  %v7188_v13 = vpack.c.bf16 %v4295_v26, %v4292_v11  ;;  %v4333_v11 = vld [vmem:[%s13019_s5 + $0x180] sm:$0xff]  ;;  %v4336_v26 = vld [vmem:[%s13019_s5 + $0x198] sm:$0xff] }
 0x2f0   : > { %6222 = vmatprep.mubr.msk.f32.mxu0 %vm2613_vm3, %v13380_v31  ;;  %v4291_v31 = vld [vmem:[%s13019_s5 + $0x30] sm:$0xff] }
 0x2f3   : > { %3294 = vmatmul.mubr.f32.gmra.mrb[74].mxu0 %v13381_v56  ;;  %v4294_v56 = vld [vmem:[%s13019_s5 + $0x48] sm:$0xff] }
 0x2f4   : > { %6223 = vmatprep.mubr.msk.f32.mxu0 %vm2613_vm3, %v13382_v38  ;;  %v7190_v38 = vpack.c.bf16 %v4294_v56, %v4291_v31 }
 0x2f7   : > { %3300 = vmatmul.mubr.f32.gmra.mrb[76].mxu0 %v13387_v2  ;;  %v4298_v2 = vld [vmem:[%s13019_s5 + $0x68] sm:$0xff] }
 0x2f8   : > { %6224 = vmatprep.mubr.msk.f32.mxu0 %vm2613_vm3, %v13389_v6  ;;  %v4297_v6 = vld [vmem:[%s13019_s5 + $0x60] sm:$0xff] }
 0x2fb   : > { %3306 = vmatmul.mubr.f32.gmra.mrb[78].mxu0 %v13391_v42 }
 0x2fc   : > { %6225 = vmatprep.mubr.msk.f32.mxu0 %vm2613_vm3, %v13392_v18  ;;  %v4300_v18 = vld [vmem:[%s13019_s5 + $0x78] sm:$0xff] }
 0x2ff   : > { %3312 = vmatmul.mubr.f32.gmra.mrb[80].mxu0 %v13393_v19  ;;  %v7194_v19 = vpack.c.bf16 %v4300_v18, %v4297_v6  ;;  %v4356_v6 = vld [vmem:[%s13019_s5 + $0x238] sm:$0xff]  ;;  %v4343_v18 = vld [vmem:[%s13019_s5 + $0x1d0] sm:$0xff] }
 0x300   : > { %6226 = vmatprep.mubr.msk.f32.mxu0 %vm2613_vm3, %v13394_v16  ;;  %v4304_v16 = vld [vmem:[%s13019_s5 + $0x98] sm:$0xff] }
 0x303   : > { %3318 = vmatmul.mubr.f32.gmra.mrb[82].mxu0 %v13395_v51  ;;  %v4301_v51 = vld [vmem:[%s13019_s5 + $0x80] sm:$0xff] }
 0x304   : > { %6227 = vmatprep.mubr.msk.f32.mxu0 %vm2613_vm3, %v13396_v3  ;;  %v7192_v42 = vpack.c.bf16 %v4301_v51, %v4298_v2  ;;  %v7196_v3 = vpack.c.bf16 %v4307_v34, %v4304_v16  ;;  %v4353_v51 = vld [vmem:[%s13019_s5 + $0x220] sm:$0xff]  ;;  %v4308_v34 = vld [vmem:[%s13019_s5 + $0xb8] sm:$0xff] }
 0x305   : > { %v4305_v16 = vld [vmem:[%s13019_s5 + $0xa0] sm:$0xff] }
 0x306   : > { %v7518_v49 = vpack.c.bf16 %v4308_v34, %v4305_v16 }
 0x307   : > { %3324 = vmatmul.mubr.f32.gmra.mrb[84].mxu0 %v13397_v33  ;;  %v4288_v33 = vld [vmem:[%s13019_s5 + $0x18] sm:$0xff] }
 0x308   : > { %6228 = vmatprep.mubr.msk.f32.mxu0 %vm2613_vm3, %v13408_v52  ;;  %v7186_v44 = vpack.c.bf16 %v4288_v33, %v4285_v17  ;;  %v4337_v52 = vld [vmem:[%s13019_s5 + $0x1a0] sm:$0xff]  ;;  %v7512_v17 = vpack.c.bf16 %v4350_v35, %v4347_v32  ;;  %v4299_v33 = vld [vmem:[%s13019_s5 + $0x70] sm:$0xff] }
 0x309   : > { %v7216_v56 = vpack.c.bf16 %v4337_v52, %v4334_v30  ;;  %v4364_v52 = vld [vmem:[%s13019_s5 + $0x278] sm:$0xff] }
 0x30a   : > { %7187 = vmatpush1.bf16.msra.mxu0 %v7186_v44  ;;  %v7214_v44 = vpack.c.bf16 %v4330_v8, %v4327_v29  ;;  %v4362_v29 = vld [vmem:[%s13019_s5 + $0x268] sm:$0xff]  ;;  %v4357_v8 = vld [vmem:[%s13019_s5 + $0x240] sm:$0xff] }
 0x30b   : > { %3330 = vmatmul.mubr.f32.gmra.mrb[86].mxu0 %v13399_v61  ;;  %7189 = vmatprep.subr.bf16.mxu0 %v7188_v13  ;;  %v4309_v61 = vld [vmem:[%s13019_s5 + $0xc0] sm:$0xff]  ;;  %v4302_v13 = vld [vmem:[%s13019_s5 + $0x88] sm:$0xff] }
 0x30c   : > { %6229 = vmatprep.mubr.msk.f32.mxu0 %vm2613_vm3, %v13400_v41  ;;  %v7202_v24 = vpack.c.bf16 %v4312_v12, %v4309_v61  ;;  %v7504_v41 = vpack.c.bf16 %v4338_v54, %v4335_v46  ;;  %v7514_v2 = vpack.c.bf16 %v4302_v13, %v4299_v33  ;;  %v4349_v12 = vld [vmem:[%s13019_s5 + $0x200] sm:$0xff]  ;;  %v4368_v33 = vld [vmem:[%s13019_s5 + $0x298] sm:$0xff]  ;;  %v4366_v13 = vld [vmem:[%s13019_s5 + $0x288] sm:$0xff] }
 0x30e   : > { %7191 = vmatpush1.bf16.msra.mxu0 %v7190_v38  ;;  %7505 = vmatprep.subr.bf16.mxu1 %v7504_v41  ;;  %v4340_v38 = vld [vmem:[%s13019_s5 + $0x1b8] sm:$0xff] }
 0x30f   : > { %3336 = vmatmul.mubr.f32.gmra.mrb[88].mxu0 %v13401_v1  ;;  %7193 = vmatprep.subr.bf16.mxu0 %v7192_v42  ;;  %v7198_v1 = vpack.c.bf16 %v4306_v10, %v4303_v4  ;;  %v7220_v10 = vpack.c.bf16 %v4343_v18, %v4340_v38  ;;  %v4320_v38 = vld [vmem:[%s13019_s5 + $0x118] sm:$0xff]  ;;  %v4373_v18 = vld [vmem:[%s13019_s5 + $0x2c0] sm:$0xff] }
 0x310   : > { %6230 = vmatprep.mubr.msk.f32.mxu0 %vm2613_vm3, %v2092_v20  ;;  %v7506_v20 = vpack.c.bf16 %v4290_v15, %v4287_v50  ;;  %v4358_v50 = vld [vmem:[%s13019_s5 + $0x248] sm:$0xff]  ;;  %v4361_v15 = vld [vmem:[%s13019_s5 + $0x260] sm:$0xff] }
 0x312   : > { %7195 = vmatpush1.bf16.msra.mxu0 %v7194_v19  ;;  %7507 = vmatpush3.bf16.msra.mxu1 %v7506_v20  ;;  %v7516_v19 = vpack.c.bf16 %v4356_v6, %v4353_v51  ;;  %v4359_v20 = vld [vmem:[%s13019_s5 + $0x250] sm:$0xff]  ;;  %v4370_v6 = vld [vmem:[%s13019_s5 + $0x2a8] sm:$0xff] }
 0x313   : > { %3342 = vmatmul.mubr.f32.gmra.mrb[90].mxu0 %v2091_v27  ;;  %7197 = vmatprep.subr.bf16.mxu0 %v7196_v3  ;;  %v7210_v27 = vpack.c.bf16 %v4324_v0, %v4321_v62  ;;  %v7218_v3 = vpack.c.bf16 %v4336_v26, %v4333_v11  ;;  %v7228_v0 = vpack.c.bf16 %v4355_v45, %v4352_v14  ;;  %v4377_v14 = vld [vmem:[%s13019_s5 + $0x2e0] sm:$0xff] }
 0x314   : > { %7509 = vmatprep.subr.bf16.mxu1 %v7508_v9  ;;  %v7520_v30 = vpack.c.bf16 %v4362_v29, %v4359_v20  ;;  %v7234_v9 = vpack.c.bf16 %v4360_v63, %v4357_v8  ;;  %v7240_v34 = vpack.c.bf16 %v4373_v18, %v4370_v6  ;;  %v4329_v20 = vld [vmem:[%s13019_s5 + $0x160] sm:$0xff]  ;;  %v4382_v8 = vld [vmem:[%s13019_s5 + $0x308] sm:$0xff] }
 0x315   : > { %v4385_v63 = vld [vmem:[%s13019_s5 + $0x320] sm:$0xff] }
 0x316   : > { %7199 = vmatpush1.bf16.msra.mxu0 %v7198_v1  ;;  %7511 = vmatpush3.bf16.msra.mxu1 %v7510_v57  ;;  %v4339_v1 = vld [vmem:[%s13019_s5 + $0x1b0] sm:$0xff] }
 0x317   : > { %7201 = vmatprep.subr.bf16.mxu0 %v7200_v36  ;;  %7513 = vmatprep.subr.bf16.mxu1 %v7512_v17  ;;  %v4346_v36 = vld [vmem:[%s13019_s5 + $0x1e8] sm:$0xff]  ;;  %v7222_v58 = vpack.c.bf16 %v4342_v59, %v4339_v1  ;;  %v4367_v57 = vld [vmem:[%s13019_s5 + $0x290] sm:$0xff]  ;;  %v4365_v17 = vld [vmem:[%s13019_s5 + $0x280] sm:$0xff] }
 0x318   : > { %v7236_v35 = vpack.c.bf16 %v4367_v57, %v4364_v52  ;;  %v7524_v26 = vpack.c.bf16 %v4368_v33, %v4365_v17  ;;  %v4372_v1 = vld [vmem:[%s13019_s5 + $0x2b8] sm:$0xff] }
 0x31a   : > { %7203 = vmatpush1.bf16.msra.mxu0 %v7202_v24  ;;  %7515 = vmatpush3.bf16.msra.mxu1 %v7514_v2  ;;  %v7224_v24 = vpack.c.bf16 %v4349_v12, %v4346_v36  ;;  %v4323_v12 = vld [vmem:[%s13019_s5 + $0x130] sm:$0xff] }
 0x31b   : > { %7205 = vmatprep.subr.bf16.mxu0 %v7204_v22  ;;  %7517 = vmatprep.subr.bf16.mxu1 %v7516_v19  ;;  %v4345_v22 = vld [vmem:[%s13019_s5 + $0x1e0] sm:$0xff]  ;;  %v4371_v19 = vld [vmem:[%s13019_s5 + $0x2b0] sm:$0xff] }
 0x31e   : > { %7207 = vmatpush1.bf16.msra.mxu0 %v7206_v48  ;;  %7519 = vmatpush3.bf16.msra.mxu1 %v7518_v49  ;;  %v7226_v48 = vpack.c.bf16 %v4348_v47, %v4345_v22  ;;  %v4376_v22 = vld [vmem:[%s13019_s5 + $0x2d8] sm:$0xff]  ;;  %v4379_v47 = vld [vmem:[%s13019_s5 + $0x2f0] sm:$0xff] }
 0x31f   : > { %7209 = vmatprep.subr.bf16.mxu0 %v7208_v53  ;;  %v4351_v53 = vld [vmem:[%s13019_s5 + $0x210] sm:$0xff]  ;;  %7521 = vmatprep.subr.bf16.mxu1 %v7520_v30 }
 0x320   : > { %v7230_v54 = vpack.c.bf16 %v4354_v21, %v4351_v53  ;;  %v4375_v53 = vld [vmem:[%s13019_s5 + $0x2d0] sm:$0xff]  ;;  %v4378_v21 = vld [vmem:[%s13019_s5 + $0x2e8] sm:$0xff] }
 0x321   : > { %v4431_v30 = vld [vmem:[%s13019_s5 + $0x490] sm:$0xff] }
 0x322   : > { %7211 = vmatpush1.bf16.msra.mxu0 %v7210_v27  ;;  %v7232_v27 = vpack.c.bf16 %v4361_v15, %v4358_v50  ;;  %v7246_v15 = vpack.c.bf16 %v4378_v21, %v4375_v53 }
 0x323   : > { %7213 = vmatprep.subr.bf16.mxu0 %v7212_v43 }
 0x326   : > { %7215 = vmatpush1.bf16.msra.mxu0 %v7214_v44  ;;  %v4363_v44 = vld [vmem:[%s13019_s5 + $0x270] sm:$0xff] }
 0x327   : > { %7217 = vmatprep.subr.bf16.mxu0 %v7216_v56  ;;  %v4317_v56 = vld [vmem:[%s13019_s5 + $0x100] sm:$0xff]  ;;  %v7238_v2 = vpack.c.bf16 %v4366_v13, %v4363_v44 }
 0x328   : > { %v7526_v51 = vpack.c.bf16 %v4320_v38, %v4317_v56 }
 0x32a   : > { %7219 = vmatpush1.bf16.msra.mxu0 %v7218_v3  ;;  %v4374_v3 = vld [vmem:[%s13019_s5 + $0x2c8] sm:$0xff] }
 0x32b   : > { %7221 = vmatprep.subr.bf16.mxu0 %v7220_v10  ;;  %v4369_v10 = vld [vmem:[%s13019_s5 + $0x2a0] sm:$0xff]  ;;  %v7528_v49 = vpack.c.bf16 %v4374_v3, %v4371_v19 }
 0x32c   : > { %v7242_v36 = vpack.c.bf16 %v4372_v1, %v4369_v10 }
 0x32e   : > { %7223 = vmatpush1.bf16.msra.mxu0 %v7222_v58  ;;  %v4326_v58 = vld [vmem:[%s13019_s5 + $0x148] sm:$0xff] }
 0x32f   : > { %7225 = vmatprep.subr.bf16.mxu0 %v7224_v24  ;;  %v7530_v24 = vpack.c.bf16 %v4326_v58, %v4323_v12 }
 0x332   : > { %7227 = vmatpush1.bf16.msra.mxu0 %v7226_v48  ;;  %v7244_v48 = vpack.c.bf16 %v4379_v47, %v4376_v22 }
 0x333   : > { %7229 = vmatprep.subr.bf16.mxu0 %v7228_v0  ;;  %v4380_v0 = vld [vmem:[%s13019_s5 + $0x2f8] sm:$0xff] }
 0x334   : > { %v7532_v50 = vpack.c.bf16 %v4380_v0, %v4377_v14  ;;  %v4384_v0 = vld [vmem:[%s13019_s5 + $0x318] sm:$0xff] }
 0x336   : > { %7231 = vmatpush1.bf16.msra.mxu0 %v7230_v54 }
 0x337   : > { %7233 = vmatprep.subr.bf16.mxu0 %v7232_v27  ;;  %v4332_v27 = vld [vmem:[%s13019_s5 + $0x178] sm:$0xff] }
 0x338   : > { %v7534_v29 = vpack.c.bf16 %v4332_v27, %v4329_v20  ;;  %v4437_v20 = vld [vmem:[%s13019_s5 + $0x4c0] sm:$0xff]  ;;  %v4440_v27 = vld [vmem:[%s13019_s5 + $0x4d8] sm:$0xff] }
 0x33a   : > { %7235 = vmatpush1.bf16.msra.mxu0 %v7234_v9 }
 0x33b   : > { %7237 = vmatprep.subr.bf16.mxu0 %v7236_v35 }
 0x33e   : > { %7239 = vmatpush1.bf16.msra.mxu0 %v7238_v2 }
 0x33f   : > { %7241 = vmatprep.subr.bf16.mxu0 %v7240_v34 }
 0x342   : > { %7243 = vmatpush1.bf16.msra.mxu0 %v7242_v36 }
 0x343   : > { %7245 = vmatprep.subr.bf16.mxu0 %v7244_v48  ;;  %v4381_v48 = vld [vmem:[%s13019_s5 + $0x300] sm:$0xff] }
 0x346   : > { %7247 = vmatpush1.bf16.msra.mxu0 %v7246_v15  ;;  %v4391_v15 = vld [vmem:[%s13019_s5 + $0x350] sm:$0xff] }
 0x39b   : > { %v11161_v5 = vpop.f32.mrb[120].mxu1 }
 0x39c   : > { %v11172_v7 = vpop.f32.mrb[121].mxu1 }
 0x39f   : > { %v11195_v39 = vpop.f32.mrb[122].mxu1 }
 0x3a0   : > { %4172 = vrot.lane.b32.xlu0 %v11195_v39, %s8003_s19  ;;  %v3985_v55 = vpop.f32.mrb[123].mxu1 }
 0x3a1   : > { %4174 = vrot.lane.b32.xlu1 %v3985_v55, %s8003_s19  ;;  %v7522_v55 = vpack.c.bf16 %v4314_v37, %v4311_v23  ;;  %v7248_v23 = vpack.c.bf16 %v4385_v63, %v4382_v8  ;;  %v4434_v37 = vld [vmem:[%s13019_s5 + $0x4a8] sm:$0xff]  ;;  %v7250_v63 = vpack.c.bf16 %v4384_v0, %v4381_v48 }
 0x3a2   : > { %v7536_v52 = vpack.c.bf16 %v4434_v37, %v4431_v30 }
 0x3a3   : > { %v11230_v31 = vpop.f32.mrb[124].mxu1  ;;  %7523 = vmatpush3.bf16.msra.mxu1 %v7522_v55  ;;  %7249 = vmatprep.subr.bf16.mxu0 %v7248_v23  ;;  %v4390_v23 = vld [vmem:[%s13019_s5 + $0x348] sm:$0xff] }
 0x3a4   : > { %v11241_v42 = vpop.f32.mrb[125].mxu1  ;;  %7525 = vmatprep.subr.bf16.mxu1 %v7524_v26 }
 0x3a7   : > { %v11252_v4 = vpop.f32.mrb[126].mxu1  ;;  %7527 = vmatpush3.bf16.msra.mxu1 %v7526_v51 }
 0x3a8   : > { %v11260_v61 = vpop.f32.mrb[127].mxu1  ;;  %7529 = vmatprep.subr.bf16.mxu1 %v7528_v49 }
 0x3ab   : > { %v11268_v40 = vpop.f32.mrb[128].mxu1  ;;  %7531 = vmatpush3.bf16.msra.mxu1 %v7530_v24 }
 0x3ac   : > { %v11276_v28 = vpop.f32.mrb[129].mxu1  ;;  %7533 = vmatprep.subr.bf16.mxu1 %v7532_v50  ;;  %v4388_v50 = vld [vmem:[%s13019_s5 + $0x338] sm:$0xff] }
 0x3af   : > { %v11284_v62 = vpop.f32.mrb[130].mxu1  ;;  %7535 = vmatpush3.bf16.msra.mxu1 %v7534_v29 }
 0x3b0   : > { %v11292_v46 = vpop.f32.mrb[131].mxu1  ;;  %7537 = vmatprep.subr.bf16.mxu1 %v7536_v52  ;;  %v7252_v52 = vpack.c.bf16 %v4391_v15, %v4388_v50  ;;  %v4404_v50 = vld [vmem:[%s13019_s5 + $0x3b8] sm:$0xff]  ;;  %v4406_v15 = vld [vmem:[%s13019_s5 + $0x3c8] sm:$0xff] }
 0x3b3   : > { %v11294_v60 = vpop.f32.mrb[132].mxu1 }
 0x3b4   : > { %v11296_v41 = vpop.f32.mrb[133].mxu1 }
 0x3b7   : > { %v11307_v25 = vpop.f32.mrb[134].mxu1 }
 0x3b8   : > { %v11318_v43 = vpop.f32.mrb[135].mxu1 }
 0x3bb   : > { %v11332_v32 = vpop.f32.mrb[136].mxu1 }
 0x3bc   : > { %v11343_v11 = vpop.f32.mrb[137].mxu1 }
 0x3bf   : > { %v11363_v16 = vpop.f32.mrb[138].mxu1 }
 0x3c0   : > { %v11374_v59 = vpop.f32.mrb[139].mxu1 }
 0x3c2   : > { %v11391_v45 = vpop.f32.mrb[72].mxu0 }
 0x3c3   : > { %v3291_v54 = vpop.f32.mrb[73].mxu0  ;;  %4077 = vrot.lane.b32.xlu0 %v11391_v45, %s8003_s19 }
 0x3c4   : > { %4079 = vrot.lane.b32.xlu1 %v3291_v54, %s8003_s19 }
 0x3c6   : > { %v11420_v9 = vpop.f32.mrb[74].mxu0 }
 0x3c7   : > { %v3297_v55 = vpop.f32.mrb[75].mxu0  ;;  %4081 = vrot.lane.b32.xlu0 %v11420_v9, %s8003_s19 }
 0x3c8   : > { %4083 = vrot.lane.b32.xlu1 %v3297_v55, %s8003_s19 }
 0x3ca   : > { %v11428_v57 = vpop.f32.mrb[76].mxu0 }
 0x3cb   : > { %v3303_v35 = vpop.f32.mrb[77].mxu0  ;;  %4168 = vrot.lane.b32.xlu0 %v11161_v5, %s8003_s19 }
 0x3cc   : > { %4170 = vrot.lane.b32.xlu1 %v11172_v7, %s8003_s19 }
 0x3ce   : > { %v11434_v17 = vpop.f32.mrb[78].mxu0 }
 0x3cf   : > { %v3309_v33 = vpop.f32.mrb[79].mxu0  ;;  %4180 = vrot.lane.b32.xlu0 %v11252_v4, %s8003_s19 }
 0x3d0   : > { %4182 = vrot.lane.b32.xlu1 %v11260_v61, %s8003_s19 }
 0x3d2   : > { %v11440_v44 = vpop.f32.mrb[80].mxu0 }
 0x3d3   : > { %v3315_v26 = vpop.f32.mrb[81].mxu0  ;;  %4085 = vrot.lane.b32.xlu0 %v11428_v57, %s8003_s19 }
 0x3d4   : > { %4087 = vrot.lane.b32.xlu1 %v3303_v35, %s8003_s19  ;;  %v7540_v35 = vpack.c.bf16 %v4440_v27, %v4437_v20  ;;  %v4409_v27 = vld [vmem:[%s13019_s5 + $0x3e0] sm:$0xff] }
 0x3d6   : > { %v11445_v13 = vpop.f32.mrb[82].mxu0 }
 0x3d7   : > { %v3321_v7 = vpop.f32.mrb[83].mxu0  ;;  %4089 = vrot.lane.b32.xlu0 %v11434_v17, %s8003_s19 }
 0x3d8   : > { %4091 = vrot.lane.b32.xlu1 %v3309_v33, %s8003_s19  ;;  %v4389_v33 = vld [vmem:[%s13019_s5 + $0x340] sm:$0xff] }
 0x3da   : > { %v11450_v56 = vpop.f32.mrb[84].mxu0 }
 0x3db   : > { %v3327_v38 = vpop.f32.mrb[85].mxu0  ;;  %4176 = vrot.lane.b32.xlu0 %v11230_v31, %s8003_s19 }
 0x3dc   : > { %4178 = vrot.lane.b32.xlu1 %v11241_v42, %s8003_s19 }
 0x3de   : > { %v11456_v61 = vpop.f32.mrb[86].mxu0 }
 0x3df   : > { %v3333_v2 = vpop.f32.mrb[87].mxu0  ;;  %4188 = vrot.lane.b32.xlu0 %v11284_v62, %s8003_s19 }
 0x3e0   : > { %4190 = vrot.lane.b32.xlu1 %v11292_v46, %s8003_s19 }
 0x3e2   : > { %v11462_v51 = vpop.f32.mrb[88].mxu0 }
 0x3e3   : > { %v3339_v6 = vpop.f32.mrb[89].mxu0  ;;  %4093 = vrot.lane.b32.xlu0 %v11440_v44, %s8003_s19 }
 0x3e4   : > { %4095 = vrot.lane.b32.xlu1 %v3315_v26, %s8003_s19  ;;  %v4392_v26 = vld [vmem:[%s13019_s5 + $0x358] sm:$0xff] }
 0x3e6   : > { %v11467_v18 = vpop.f32.mrb[90].mxu0 }
 0x3e7   : > { %v3345_v42 = vpop.f32.mrb[91].mxu0  ;;  %4097 = vrot.lane.b32.xlu0 %v11445_v13, %s8003_s19 }
 0x3e8   : > { %4099 = vrot.lane.b32.xlu1 %v3321_v7, %s8003_s19  ;;  %v4394_v7 = vld [vmem:[%s13019_s5 + $0x368] sm:$0xff] }
 0x3eb   : > { %4184 = vrot.lane.b32.xlu0 %v11268_v40, %s8003_s19 }
 0x3ec   : > { %4186 = vrot.lane.b32.xlu1 %v11276_v28, %s8003_s19 }
 0x3ef   : > { %4196 = vrot.lane.b32.xlu0 %v11307_v25, %s8003_s19 }
 0x3f0   : > { %4198 = vrot.lane.b32.xlu1 %v11318_v43, %s8003_s19 }
 0x3f3   : > { %4101 = vrot.lane.b32.xlu0 %v11450_v56, %s8003_s19 }
 0x3f4   : > { %4103 = vrot.lane.b32.xlu1 %v3327_v38, %s8003_s19  ;;  %v4397_v38 = vld [vmem:[%s13019_s5 + $0x380] sm:$0xff] }
 0x3f7   : > { %4105 = vrot.lane.b32.xlu0 %v11456_v61, %s8003_s19 }
 0x3f8   : > { %4107 = vrot.lane.b32.xlu1 %v3333_v2, %s8003_s19  ;;  %v4443_v2 = vld [vmem:[%s13019_s5 + $0x4f0] sm:$0xff] }
 0x3fb   : > { %4192 = vrot.lane.b32.xlu0 %v11294_v60, %s8003_s19 }
 0x3fc   : > { %4194 = vrot.lane.b32.xlu1 %v11296_v41, %s8003_s19 }
 0x3ff   : > { %4204 = vrot.lane.b32.xlu0 %v11363_v16, %s8003_s19 }
 0x400   : > { %4206 = vrot.lane.b32.xlu1 %v11374_v59, %s8003_s19 }
 0x403   : > { %4109 = vrot.lane.b32.xlu0 %v11462_v51, %s8003_s19 }
 0x404   : > { %4111 = vrot.lane.b32.xlu1 %v3339_v6, %s8003_s19  ;;  %v4446_v6 = vld [vmem:[%s13019_s5 + $0x508] sm:$0xff] }
 0x407   : > { %4113 = vrot.lane.b32.xlu0 %v11467_v18, %s8003_s19 }
 0x408   : > { %4115 = vrot.lane.b32.xlu1 %v3345_v42, %s8003_s19 }
 0x40b   : > { %4200 = vrot.lane.b32.xlu0 %v11332_v32, %s8003_s19 }
 0x40c   : > { %4202 = vrot.lane.b32.xlu1 %v11343_v11, %s8003_s19  ;;  %v11512_v11 = vld [vmem:[%s13018_s4] ss:$0 sm:$0xff]  ;;  %s5792_s19 = sshll.u32 %s379_s15, 4  ;;  %s12974_s19 = int_to_ptr.vmem [resolvable:$true] %s5792_s19 }
 0x40d   : > { %s7936_s13 = scalar_lea.vmem %s12974_s19, 128  ;;  %p7943_p0 = scmp.lt.s32.totalorder %s12974_s19, %s7941_s22 }
 0x40e   : > { %p7937_p11 = scmp.ne.s32.totalorder %s12974_s19, %s7936_s13  ;;  %p7944_p1 = scmp.lt.s32.totalorder %s7942_s16, %s7936_s13 }
 0x410   : > { %p7938_p12 = pnand %p7937_p11, %p8105_p5  ;;  %p7945_p2 = por %p7944_p1, %p7943_p0 }
 0x412   : > { %v4173_v28 = vpop.permute.xlu0 %4172  ;;  %p7939_p13 = pneg %p7938_p12 }
 0x413   : > { %v4175_v46 = vpop.permute.xlu1 %4174 }
 0x414   : > { %v4209_v19 = vsel %vm4117_vm4, %v4173_v28, %v4175_v46  ;;  %p7946_p3 = pnand %p7945_p2, %p7939_p13 }
 0x415   : > { %v4229_v1 = vmax.f32 %v11195_v39, %v4209_v19  ;;  %v4396_v19 = vld [vmem:[%s13019_s5 + $0x378] sm:$0xff] }
 0x435   : > { %v4078_v41 = vpop.permute.xlu0 %4077 }
 0x436   : > { %v4080_v43 = vpop.permute.xlu1 %4079 }
 0x437   : > { %v4118_v49 = vsel %vm4117_vm4, %v4078_v41, %v4080_v43  ;;  %v7542_v41 = vpack.c.bf16 %v4392_v26, %v4389_v33  ;;  %v4393_v43 = vld [vmem:[%s13019_s5 + $0x360] sm:$0xff] }
 0x438   : > { %v4138_v22 = vmax.f32 %v11391_v45, %v4118_v49  ;;  %v4383_v45 = vld [vmem:[%s13019_s5 + $0x310] sm:$0xff]  ;;  %v4400_v49 = vld [vmem:[%s13019_s5 + $0x398] sm:$0xff]  ;;  %v7258_v48 = vpack.c.bf16 %v4396_v19, %v4393_v43 }
 0x439   : > { %v4082_v34 = vpop.permute.xlu0 %4081 }
 0x43a   : > { %v4084_v3 = vpop.permute.xlu1 %4083 }
 0x43b   : > { %v4119_v10 = vsel %vm4117_vm4, %v4082_v34, %v4084_v3  ;;  %v7256_v3 = vpack.c.bf16 %v4397_v38, %v4394_v7  ;;  %v4407_v38 = vld [vmem:[%s13019_s5 + $0x3d0] sm:$0xff] }
 0x43c   : > { %v4139_v59 = vmax.f32 %v11420_v9, %v4119_v10  ;;  %v4387_v9 = vld [vmem:[%s13019_s5 + $0x330] sm:$0xff]  ;;  %v7544_v10 = vpack.c.bf16 %v4446_v6, %v4443_v2  ;;  %v4410_v2 = vld [vmem:[%s13019_s5 + $0x3e8] sm:$0xff]  ;;  %v4412_v6 = vld [vmem:[%s13019_s5 + $0x3f8] sm:$0xff] }
 0x43d   : > { %v4169_v36 = vpop.permute.xlu0 %4168  ;;  %v7254_v46 = vpack.c.bf16 %v4390_v23, %v4387_v9  ;;  %v7554_v19 = vpack.c.bf16 %v4410_v2, %v4407_v38  ;;  %v4527_v2 = vld [vmem:[%s13019_s5 + $0x790] sm:$0xff] }
 0x43e   : > { %v4239_v12 = vmax.f32 %v4139_v59, %v4229_v1  ;;  %v4171_v58 = vpop.permute.xlu1 %4170  ;;  %v4395_v1 = vld [vmem:[%s13019_s5 + $0x370] sm:$0xff]  ;;  %v4398_v59 = vld [vmem:[%s13019_s5 + $0x388] sm:$0xff] }
 0x43f   : > { %v4208_v24 = vsel %vm4117_vm4, %v4169_v36, %v4171_v58  ;;  %v4449_v58 = vld [vmem:[%s13019_s5 + $0x520] sm:$0xff]  ;;  %v7546_v0 = vpack.c.bf16 %v4398_v59, %v4395_v1 }
 0x440   : > { %v4255_v47 = vadd.f32 %v11512_v11, %v4239_v12  ;;  %v4228_v39 = vmax.f32 %v11161_v5, %v4208_v24  ;;  %v4386_v5 = vld [vmem:[%s13019_s5 + $0x328] sm:$0xff]  ;;  %v4403_v12 = vld [vmem:[%s13019_s5 + $0x3b0] sm:$0xff]  ;;  %v4452_v24 = vld [vmem:[%s13019_s5 + $0x538] sm:$0xff] }
 0x441   : > { %v4181_v14 = vpop.permute.xlu0 %4180  ;;  %v7538_v30 = vpack.c.bf16 %v4386_v5, %v4383_v45  ;;  %v4401_v5 = vld [vmem:[%s13019_s5 + $0x3a0] sm:$0xff] }
 0x442   : > { %v4265_v53 = vmax.f32 %v4255_v47, 0.0  ;;  %v4238_v21 = vmax.f32 %v4138_v22, %v4228_v39  ;;  %v4183_v54 = vpop.permute.xlu1 %4182 }
 0x443   : > { %v4211_v42 = vsel %vm4117_vm4, %v4181_v14, %v4183_v54 }
 0x444   : > { %v4254_v29 = vadd.f32 %v11512_v11, %v4238_v21  ;;  %6282 = vmatprep.mubr.msk.f32.mxu0 %vm4274_vm5, %v4265_v53  ;;  %6292 = vmatprep.mubr.msk.f32.mxu1 %vm4274_vm5, %v4265_v53  ;;  %v4231_v22 = vmax.f32 %v11252_v4, %v4211_v42  ;;  %v4399_v53 = vld [vmem:[%s13019_s5 + $0x390] sm:$0xff]  ;;  %v4402_v21 = vld [vmem:[%s13019_s5 + $0x3a8] sm:$0xff]  ;;  %v7260_v4 = vpack.c.bf16 %v4403_v12, %v4400_v49  ;;  %v4413_v49 = vld [vmem:[%s13019_s5 + $0x400] sm:$0xff] }
 0x445   : > { %v4086_v8 = vpop.permute.xlu0 %4085  ;;  %v4415_v42 = vld [vmem:[%s13019_s5 + $0x410] sm:$0xff]  ;;  %v4418_v12 = vld [vmem:[%s13019_s5 + $0x428] sm:$0xff] }
 0x446   : > { %v4264_v37 = vmax.f32 %v4254_v29, 0.0  ;;  %v4088_v55 = vpop.permute.xlu1 %4087  ;;  %v4455_v29 = vld [vmem:[%s13019_s5 + $0x550] sm:$0xff]  ;;  %v7268_v1 = vpack.c.bf16 %v4415_v42, %v4412_v6  ;;  %v4530_v6 = vld [vmem:[%s13019_s5 + $0x7a8] sm:$0xff] }
 0x447   : > { %v4120_v39 = vsel %vm4117_vm4, %v4086_v8, %v4088_v55  ;;  %v4458_v8 = vld [vmem:[%s13019_s5 + $0x568] sm:$0xff]  ;;  %v7550_v55 = vpack.c.bf16 %v4404_v50, %v4401_v5  ;;  %v4424_v5 = vld [vmem:[%s13019_s5 + $0x458] sm:$0xff] }
 0x448   : > { %6283 = vmatmul.mubr.msk.f32.vlgmr.msra.gmra.mrb[92].mxu0 %vm4274_vm5, %v4264_v37  ;;  %6293 = vmatmul.mubr.msk.f32.vlgmr.msra.gmra.mrb[140].mxu1 %vm4274_vm5, %v4264_v37  ;;  %v7262_v37 = vpack.c.bf16 %v4402_v21, %v4399_v53  ;;  %v7552_v7 = vpack.c.bf16 %v4458_v8, %v4455_v29  ;;  %v4420_v53 = vld [vmem:[%s13019_s5 + $0x438] sm:$0xff] }
 0x449   : > { %7251 = vmatpush1.bf16.msra.mxu0 %v7250_v63  ;;  %7539 = vmatpush3.bf16.msra.mxu1 %v7538_v30  ;;  %v4090_v28 = vpop.permute.xlu0 %4089  ;;  %v4140_v63 = vmax.f32 %v11428_v57, %v4120_v39 }
 0x44a   : > { %v4092_v34 = vpop.permute.xlu1 %4091  ;;  %7253 = vmatprep.subr.bf16.mxu0 %v7252_v52  ;;  %7541 = vmatprep.subr.bf16.mxu1 %v7540_v35  ;;  %v4405_v52 = vld [vmem:[%s13019_s5 + $0x3c0] sm:$0xff]  ;;  %v4408_v35 = vld [vmem:[%s13019_s5 + $0x3d8] sm:$0xff] }
 0x44b   : > { %v4121_v36 = vsel %vm4117_vm4, %v4090_v28, %v4092_v34  ;;  %v4461_v28 = vld [vmem:[%s13019_s5 + $0x580] sm:$0xff]  ;;  %v7266_v43 = vpack.c.bf16 %v4408_v35, %v4405_v52  ;;  %v4411_v34 = vld [vmem:[%s13019_s5 + $0x3f0] sm:$0xff] }
 0x44c   : > { %v4141_v47 = vmax.f32 %v11434_v17, %v4121_v36  ;;  %v7548_v17 = vpack.c.bf16 %v4452_v24, %v4449_v58  ;;  %v4416_v36 = vld [vmem:[%s13019_s5 + $0x418] sm:$0xff]  ;;  %v4421_v58 = vld [vmem:[%s13019_s5 + $0x440] sm:$0xff]  ;;  %v4467_v24 = vld [vmem:[%s13019_s5 + $0x5b0] sm:$0xff] }
 0x44d   : > { %7255 = vmatpush1.bf16.msra.mxu0 %v7254_v46  ;;  %7543 = vmatpush3.bf16.msra.mxu1 %v7542_v41  ;;  %v4177_v14 = vpop.permute.xlu0 %4176  ;;  %v4464_v46 = vld [vmem:[%s13019_s5 + $0x598] sm:$0xff] }
 0x44e   : > { %v4241_v54 = vmax.f32 %v4141_v47, %v4231_v22  ;;  %v4179_v45 = vpop.permute.xlu1 %4178  ;;  %7257 = vmatprep.subr.bf16.mxu0 %v7256_v3  ;;  %7545 = vmatprep.subr.bf16.mxu1 %v7544_v10  ;;  %v4414_v3 = vld [vmem:[%s13019_s5 + $0x408] sm:$0xff]  ;;  %v7556_v59 = vpack.c.bf16 %v4464_v46, %v4461_v28 }
 0x44f   : > { %v4210_v20 = vsel %vm4117_vm4, %v4177_v14, %v4179_v45  ;;  %v4470_v22 = vld [vmem:[%s13019_s5 + $0x5c8] sm:$0xff]  ;;  %v7270_v14 = vpack.c.bf16 %v4414_v3, %v4411_v34  ;;  %v4429_v34 = vld [vmem:[%s13019_s5 + $0x480] sm:$0xff] }
 0x450   : > { %v4257_v30 = vadd.f32 %v11512_v11, %v4241_v54  ;;  %v4230_v9 = vmax.f32 %v11230_v31, %v4210_v20  ;;  %v7264_v31 = vpack.c.bf16 %v4409_v27, %v4406_v15  ;;  %v7272_v54 = vpack.c.bf16 %v4421_v58, %v4418_v12  ;;  %v4427_v15 = vld [vmem:[%s13019_s5 + $0x470] sm:$0xff]  ;;  %v4473_v20 = vld [vmem:[%s13019_s5 + $0x5e0] sm:$0xff]  ;;  %v4476_v27 = vld [vmem:[%s13019_s5 + $0x5f8] sm:$0xff] }
 0x451   : > { %7259 = vmatpush1.bf16.msra.mxu0 %v7258_v48  ;;  %7547 = vmatpush3.bf16.msra.mxu1 %v7546_v0  ;;  %v4189_v23 = vpop.permute.xlu0 %4188  ;;  %v7558_v48 = vpack.c.bf16 %v4416_v36, %v4413_v49  ;;  %v4417_v0 = vld [vmem:[%s13019_s5 + $0x420] sm:$0xff]  ;;  %v7560_v45 = vpack.c.bf16 %v4470_v22, %v4467_v24  ;;  %v7276_v35 = vpack.c.bf16 %v4427_v15, %v4424_v5  ;;  %v4482_v49 = vld [vmem:[%s13019_s5 + $0x628] sm:$0xff]  ;;  %v4439_v36 = vld [vmem:[%s13019_s5 + $0x4d0] sm:$0xff] }
 0x452   : > { %v4267_v33 = vmax.f32 %v4257_v30, 0.0  ;;  %v11634_v26 = vmax.f32 %v4140_v63, %v4230_v9  ;;  %v4191_v57 = vpop.permute.xlu1 %4190  ;;  %7261 = vmatprep.subr.bf16.mxu0 %v7260_v4  ;;  %7549 = vmatprep.subr.bf16.mxu1 %v7548_v17  ;;  %v4419_v4 = vld [vmem:[%s13019_s5 + $0x430] sm:$0xff]  ;;  %v4422_v17 = vld [vmem:[%s13019_s5 + $0x448] sm:$0xff]  ;;  %v7274_v9 = vpack.c.bf16 %v4420_v53, %v4417_v0  ;;  %v4533_v58 = vld [vmem:[%s13019_s5 + $0x7c0] sm:$0xff] }
 0x453   : > { %v4213_v47 = vsel %vm4117_vm4, %v4189_v23, %v4191_v57  ;;  %v7562_v23 = vpack.c.bf16 %v4422_v17, %v4419_v4  ;;  %v4428_v57 = vld [vmem:[%s13019_s5 + $0x478] sm:$0xff]  ;;  %v4442_v4 = vld [vmem:[%s13019_s5 + $0x4e8] sm:$0xff]  ;;  %v4445_v5 = vld [vmem:[%s13019_s5 + $0x500] sm:$0xff] }
 0x454   : > { %6284 = vmatprep.mubr.msk.f32.mxu0 %vm4274_vm5, %v4267_v33  ;;  %6294 = vmatprep.mubr.msk.f32.mxu1 %vm4274_vm5, %v4267_v33  ;;  %v4233_v29 = vmax.f32 %v11284_v62, %v4213_v47  ;;  %v4425_v62 = vld [vmem:[%s13019_s5 + $0x460] sm:$0xff]  ;;  %v7564_v33 = vpack.c.bf16 %v4476_v27, %v4473_v20  ;;  %v11741_v3 = vadd.f32 %v11512_v11, %v11634_v26  ;;  %v4436_v26 = vld [vmem:[%s13019_s5 + $0x4b8] sm:$0xff]  ;;  %v4542_v15 = vld [vmem:[%s13019_s5 + $0x808] sm:$0xff] }
 0x455   : > { %7263 = vmatpush1.bf16.msra.mxu0 %v7262_v37  ;;  %7551 = vmatpush3.bf16.msra.mxu1 %v7550_v55  ;;  %v4094_v41 = vpop.permute.xlu0 %4093  ;;  %v4423_v37 = vld [vmem:[%s13019_s5 + $0x450] sm:$0xff]  ;;  %v4426_v55 = vld [vmem:[%s13019_s5 + $0x468] sm:$0xff]  ;;  %v4536_v24 = vld [vmem:[%s13019_s5 + $0x7d8] sm:$0xff] }
 0x456   : > { %v4096_v10 = vpop.permute.xlu1 %4095  ;;  %7265 = vmatprep.subr.bf16.mxu0 %v7264_v31  ;;  %7553 = vmatprep.subr.bf16.mxu1 %v7552_v7  ;;  %v4430_v31 = vld [vmem:[%s13019_s5 + $0x488] sm:$0xff]  ;;  %v4433_v7 = vld [vmem:[%s13019_s5 + $0x4a0] sm:$0xff]  ;;  %v4266_v0 = vmax.f32 %v11741_v3, 0.0  ;;  %v7572_v17 = vpack.c.bf16 %v4536_v24, %v4533_v58 }
 0x457   : > { %v4122_v63 = vsel %vm4117_vm4, %v4094_v41, %v4096_v10  ;;  %v7278_v41 = vpack.c.bf16 %v4426_v55, %v4423_v37  ;;  %v7288_v37 = vpack.c.bf16 %v4445_v5, %v4442_v4  ;;  %v4463_v4 = vld [vmem:[%s13019_s5 + $0x590] sm:$0xff]  ;;  %v4560_v5 = vld [vmem:[%s13019_s5 + $0x898] sm:$0xff] }
 0x458   : > { %v4142_v42 = vmax.f32 %v11440_v44, %v4122_v63  ;;  %v4432_v44 = vld [vmem:[%s13019_s5 + $0x498] sm:$0xff] }
 0x459   : > { %7267 = vmatpush1.bf16.msra.mxu0 %v7266_v43  ;;  %7555 = vmatpush3.bf16.msra.mxu1 %v7554_v19  ;;  %v4098_v39 = vpop.permute.xlu0 %4097  ;;  %v7566_v43 = vpack.c.bf16 %v4428_v57, %v4425_v62  ;;  %v7280_v19 = vpack.c.bf16 %v4433_v7, %v4430_v31  ;;  %v7282_v47 = vpack.c.bf16 %v4432_v44, %v4429_v34  ;;  %v4491_v62 = vld [vmem:[%s13019_s5 + $0x670] sm:$0xff]  ;;  %v4545_v57 = vld [vmem:[%s13019_s5 + $0x820] sm:$0xff]  ;;  %v4548_v31 = vld [vmem:[%s13019_s5 + $0x838] sm:$0xff] }
 0x45a   : > { %v4100_v21 = vpop.permute.xlu1 %4099  ;;  %7269 = vmatprep.subr.bf16.mxu0 %v7268_v1  ;;  %7557 = vmatprep.subr.bf16.mxu1 %v7556_v59  ;;  %v4479_v59 = vld [vmem:[%s13019_s5 + $0x610] sm:$0xff]  ;;  %v4497_v34 = vld [vmem:[%s13019_s5 + $0x6a0] sm:$0xff] }
 0x45b   : > { %v4123_v50 = vsel %vm4117_vm4, %v4098_v39, %v4100_v21  ;;  %v7570_v39 = vpack.c.bf16 %v4482_v49, %v4479_v59  ;;  %v7284_v21 = vpack.c.bf16 %v4439_v36, %v4436_v26  ;;  %v4457_v59 = vld [vmem:[%s13019_s5 + $0x560] sm:$0xff]  ;;  %v4551_v49 = vld [vmem:[%s13019_s5 + $0x850] sm:$0xff]  ;;  %v4554_v26 = vld [vmem:[%s13019_s5 + $0x868] sm:$0xff] }
 0x45c   : > { %v4143_v8 = vmax.f32 %v11445_v13, %v4123_v50  ;;  %v4539_v50 = vld [vmem:[%s13019_s5 + $0x7f0] sm:$0xff] }
 0x45d   : > { %7271 = vmatpush1.bf16.msra.mxu0 %v7270_v14  ;;  %7559 = vmatpush3.bf16.msra.mxu1 %v7558_v48  ;;  %v4185_v30 = vpop.permute.xlu0 %4184  ;;  %v4435_v14 = vld [vmem:[%s13019_s5 + $0x4b0] sm:$0xff]  ;;  %v4438_v48 = vld [vmem:[%s13019_s5 + $0x4c8] sm:$0xff]  ;;  %v7576_v55 = vpack.c.bf16 %v4542_v15, %v4539_v50 }
 0x45e   : > { %v4243_v13 = vmax.f32 %v4143_v8, %v4233_v29  ;;  %v4187_v52 = vpop.permute.xlu1 %4186  ;;  %7273 = vmatprep.subr.bf16.mxu0 %v7272_v54  ;;  %7561 = vmatprep.subr.bf16.mxu1 %v7560_v45  ;;  %v4485_v54 = vld [vmem:[%s13019_s5 + $0x640] sm:$0xff]  ;;  %v4488_v45 = vld [vmem:[%s13019_s5 + $0x658] sm:$0xff]  ;;  %v7286_v8 = vpack.c.bf16 %v4438_v48, %v4435_v14 }
 0x45f   : > { %v4212_v38 = vsel %vm4117_vm4, %v4185_v30, %v4187_v52  ;;  %v7574_v63 = vpack.c.bf16 %v4488_v45, %v4485_v54  ;;  %v4441_v30 = vld [vmem:[%s13019_s5 + $0x4e0] sm:$0xff]  ;;  %v4448_v52 = vld [vmem:[%s13019_s5 + $0x518] sm:$0xff]  ;;  %v4506_v54 = vld [vmem:[%s13019_s5 + $0x6e8] sm:$0xff] }
 0x460   : > { %v4232_v28 = vmax.f32 %v11268_v40, %v4212_v38  ;;  %v7568_v40 = vpack.c.bf16 %v4530_v6, %v4527_v2  ;;  %v11761_v12 = vadd.f32 %v11512_v11, %v4243_v13  ;;  %v4494_v13 = vld [vmem:[%s13019_s5 + $0x688] sm:$0xff]  ;;  %v4456_v14 = vld [vmem:[%s13019_s5 + $0x558] sm:$0xff] }
 0x461   : > { %7275 = vmatpush1.bf16.msra.mxu0 %v7274_v9  ;;  %7563 = vmatpush3.bf16.msra.mxu1 %v7562_v23  ;;  %v4197_v46 = vpop.permute.xlu0 %4196  ;;  %v4444_v9 = vld [vmem:[%s13019_s5 + $0x4f8] sm:$0xff] }
 0x462   : > { %v11743_v10 = vmax.f32 %v4142_v42, %v4232_v28  ;;  %v4199_v1 = vpop.permute.xlu1 %4198  ;;  %7277 = vmatprep.subr.bf16.mxu0 %v7276_v35  ;;  %7565 = vmatprep.subr.bf16.mxu1 %v7564_v33  ;;  %v4269_v20 = vmax.f32 %v11761_v12, 0.0  ;;  %v4451_v33 = vld [vmem:[%s13019_s5 + $0x530] sm:$0xff]  ;;  %v7290_v42 = vpack.c.bf16 %v4444_v9, %v4441_v30  ;;  %v7578_v28 = vpack.c.bf16 %v4494_v13, %v4491_v62  ;;  %v4460_v45 = vld [vmem:[%s13019_s5 + $0x578] sm:$0xff]  ;;  %v4469_v62 = vld [vmem:[%s13019_s5 + $0x5c0] sm:$0xff] }
 0x463   : > { %v4215_v27 = vsel %vm4117_vm4, %v4197_v46, %v4199_v1  ;;  %v4447_v46 = vld [vmem:[%s13019_s5 + $0x510] sm:$0xff]  ;;  %v4500_v1 = vld [vmem:[%s13019_s5 + $0x6b8] sm:$0xff]  ;;  %v7300_v30 = vpack.c.bf16 %v4463_v4, %v4460_v45 }
 0x464   : > { %v4235_v7 = vmax.f32 %v11307_v25, %v4215_v27  ;;  %v4563_v13 = vld [vmem:[%s13019_s5 + $0x8b0] sm:$0xff] }
 0x465   : > { %7279 = vmatpush1.bf16.msra.mxu0 %v7278_v41  ;;  %7567 = vmatpush3.bf16.msra.mxu1 %v7566_v43  ;;  %v4102_v22 = vpop.permute.xlu0 %4101  ;;  %v4450_v41 = vld [vmem:[%s13019_s5 + $0x528] sm:$0xff]  ;;  %v4587_v12 = vld [vmem:[%s13019_s5 + $0x970] sm:$0xff] }
 0x466   : > { %v4104_v53 = vpop.permute.xlu1 %4103  ;;  %7281 = vmatprep.subr.bf16.mxu0 %v7280_v19  ;;  %7569 = vmatprep.subr.bf16.mxu1 %v7568_v40  ;;  %v7580_v19 = vpack.c.bf16 %v4548_v31, %v4545_v57  ;;  %v4454_v40 = vld [vmem:[%s13019_s5 + $0x548] sm:$0xff] }
 0x467   : > { %v4124_v2 = vsel %vm4117_vm4, %v4102_v22, %v4104_v53  ;;  %v7294_v22 = vpack.c.bf16 %v4450_v41, %v4447_v46  ;;  %v4518_v46 = vld [vmem:[%s13019_s5 + $0x748] sm:$0xff]  ;;  %v4472_v41 = vld [vmem:[%s13019_s5 + $0x5d8] sm:$0xff] }
 0x468   : > { %6295 = vmatmul.mubr.msk.f32.vlgmr.msra.gmra.mrb[142].mxu1 %vm4274_vm5, %v4266_v0  ;;  %v4144_v36 = vmax.f32 %v11450_v56, %v4124_v2  ;;  %v7296_v56 = vpack.c.bf16 %v4457_v59, %v4454_v40 }
 0x469   : > { %7283 = vmatpush1.bf16.msra.mxu0 %v7282_v47  ;;  %7571 = vmatpush3.bf16.msra.mxu1 %v7570_v39  ;;  %v4106_v29 = vpop.permute.xlu0 %4105  ;;  %v7582_v47 = vpack.c.bf16 %v4500_v1, %v4497_v34  ;;  %v4453_v39 = vld [vmem:[%s13019_s5 + $0x540] sm:$0xff]  ;;  %v4572_v34 = vld [vmem:[%s13019_s5 + $0x8f8] sm:$0xff] }
 0x46a   : > { %6296 = vmatprep.mubr.msk.f32.mxu1 %vm4274_vm5, %v4269_v20  ;;  %v4108_v23 = vpop.permute.xlu1 %4107  ;;  %7285 = vmatprep.subr.bf16.mxu0 %v7284_v21  ;;  %v4503_v21 = vld [vmem:[%s13019_s5 + $0x6d0] sm:$0xff]  ;;  %v7298_v15 = vpack.c.bf16 %v4456_v14, %v4453_v39  ;;  %v4524_v39 = vld [vmem:[%s13019_s5 + $0x778] sm:$0xff]  ;;  %v4478_v14 = vld [vmem:[%s13019_s5 + $0x608] sm:$0xff] }
 0x46b   : > { %v4125_v35 = vsel %vm4117_vm4, %v4106_v29, %v4108_v23  ;;  %7573 = vmatprep.subr.bf16.mxu1 %v7572_v17  ;;  %v4557_v17 = vld [vmem:[%s13019_s5 + $0x880] sm:$0xff]  ;;  %v7586_v27 = vpack.c.bf16 %v4506_v54, %v4503_v21  ;;  %v4459_v29 = vld [vmem:[%s13019_s5 + $0x570] sm:$0xff]  ;;  %v4626_v21 = vld [vmem:[%s13019_s5 + $0xaa8] sm:$0xff] }
 0x46c   : > { %v4145_v38 = vmax.f32 %v11456_v61, %v4125_v35  ;;  %v7292_v61 = vpack.c.bf16 %v4451_v33, %v4448_v52  ;;  %v7588_v9 = vpack.c.bf16 %v4560_v5, %v4557_v17  ;;  %v4509_v23 = vld [vmem:[%s13019_s5 + $0x700] sm:$0xff]  ;;  %v4566_v52 = vld [vmem:[%s13019_s5 + $0x8c8] sm:$0xff] }
 0x46d   : > { %7287 = vmatpush1.bf16.msra.mxu0 %v7286_v8  ;;  %7575 = vmatpush3.bf16.msra.mxu1 %v7574_v63  ;;  %v4193_v6 = vpop.permute.xlu0 %4192  ;;  %v4462_v8 = vld [vmem:[%s13019_s5 + $0x588] sm:$0xff] }
 0x46e   : > { %v11836_v43 = vmax.f32 %v4145_v38, %v4235_v7  ;;  %v4195_v25 = vpop.permute.xlu1 %4194  ;;  %7289 = vmatprep.subr.bf16.mxu0 %v7288_v37  ;;  %7577 = vmatprep.subr.bf16.mxu1 %v7576_v55  ;;  %v4512_v37 = vld [vmem:[%s13019_s5 + $0x718] sm:$0xff]  ;;  %v4466_v55 = vld [vmem:[%s13019_s5 + $0x5a8] sm:$0xff]  ;;  %v7302_v57 = vpack.c.bf16 %v4462_v8, %v4459_v29  ;;  %v4465_v7 = vld [vmem:[%s13019_s5 + $0x5a0] sm:$0xff] }
 0x46f   : > { %v4214_v44 = vsel %vm4117_vm4, %v4193_v6, %v4195_v25  ;;  %v7590_v31 = vpack.c.bf16 %v4512_v37, %v4509_v23  ;;  %v4468_v38 = vld [vmem:[%s13019_s5 + $0x5b8] sm:$0xff]  ;;  %v7304_v6 = vpack.c.bf16 %v4469_v62, %v4466_v55  ;;  %v4575_v29 = vld [vmem:[%s13019_s5 + $0x910] sm:$0xff] }
 0x470   : > { %v4234_v58 = vmax.f32 %v11294_v60, %v4214_v44  ;;  %v7584_v60 = vpack.c.bf16 %v4554_v26, %v4551_v49  ;;  %v7306_v49 = vpack.c.bf16 %v4468_v38, %v4465_v7  ;;  %v4484_v8 = vld [vmem:[%s13019_s5 + $0x638] sm:$0xff]  ;;  %v4483_v62 = vld [vmem:[%s13019_s5 + $0x630] sm:$0xff]  ;;  %v4493_v7 = vld [vmem:[%s13019_s5 + $0x680] sm:$0xff] }
 0x471   : > { %7291 = vmatpush1.bf16.msra.mxu0 %v7290_v42  ;;  %7579 = vmatpush3.bf16.msra.mxu1 %v7578_v28  ;;  %v4205_v24 = vpop.permute.xlu0 %4204  ;;  %v7592_v42 = vpack.c.bf16 %v4566_v52, %v4563_v13  ;;  %v4515_v28 = vld [vmem:[%s13019_s5 + $0x730] sm:$0xff]  ;;  %v4632_v23 = vld [vmem:[%s13019_s5 + $0xad8] sm:$0xff]  ;;  %v4486_v13 = vld [vmem:[%s13019_s5 + $0x648] sm:$0xff] }
 0x472   : > { %v11865_v48 = vmax.f32 %v4144_v36, %v4234_v58  ;;  %v4207_v53 = vpop.permute.xlu1 %4206  ;;  %7293 = vmatprep.subr.bf16.mxu0 %v7292_v61  ;;  %7581 = vmatprep.subr.bf16.mxu1 %v7580_v19  ;;  %v4475_v61 = vld [vmem:[%s13019_s5 + $0x5f0] sm:$0xff]  ;;  %v4569_v19 = vld [vmem:[%s13019_s5 + $0x8e0] sm:$0xff]  ;;  %v7594_v26 = vpack.c.bf16 %v4518_v46, %v4515_v28  ;;  %v4474_v58 = vld [vmem:[%s13019_s5 + $0x5e8] sm:$0xff]  ;;  %v7318_v3 = vpack.c.bf16 %v4486_v13, %v4483_v62 }
 0x473   : > { %v4217_v35 = vsel %vm4117_vm4, %v4205_v24, %v4207_v53  ;;  %v4471_v36 = vld [vmem:[%s13019_s5 + $0x5d0] sm:$0xff]  ;;  %v4481_v53 = vld [vmem:[%s13019_s5 + $0x620] sm:$0xff]  ;;  %v4492_v46 = vld [vmem:[%s13019_s5 + $0x678] sm:$0xff] }
 0x474   : > { %v4237_v1 = vmax.f32 %v11363_v16, %v4217_v35  ;;  %v4521_v16 = vld [vmem:[%s13019_s5 + $0x760] sm:$0xff]  ;;  %v7310_v4 = vpack.c.bf16 %v4474_v58, %v4471_v36  ;;  %v7312_v5 = vpack.c.bf16 %v4481_v53, %v4478_v14  ;;  %v4596_v58 = vld [vmem:[%s13019_s5 + $0x9b8] sm:$0xff]  ;;  %v4659_v62 = vld [vmem:[%s13019_s5 + $0xbb0] sm:$0xff] }
 0x475   : > { %7295 = vmatpush1.bf16.msra.mxu0 %v7294_v22  ;;  %7583 = vmatpush3.bf16.msra.mxu1 %v7582_v47  ;;  %v4110_v50 = vpop.permute.xlu0 %4109  ;;  %v7308_v22 = vpack.c.bf16 %v4475_v61, %v4472_v41  ;;  %v7596_v47 = vpack.c.bf16 %v4572_v34, %v4569_v19  ;;  %v7598_v17 = vpack.c.bf16 %v4524_v39, %v4521_v16  ;;  %v4581_v52 = vld [vmem:[%s13019_s5 + $0x940] sm:$0xff]  ;;  %v4590_v41 = vld [vmem:[%s13019_s5 + $0x988] sm:$0xff]  ;;  %v4499_v61 = vld [vmem:[%s13019_s5 + $0x6b0] sm:$0xff] }
 0x476   : > { %v4112_v63 = vpop.permute.xlu1 %4111  ;;  %7297 = vmatprep.subr.bf16.mxu0 %v7296_v56  ;;  %7585 = vmatprep.subr.bf16.mxu1 %v7584_v60  ;;  %v4623_v60 = vld [vmem:[%s13019_s5 + $0xa90] sm:$0xff]  ;;  %v4489_v28 = vld [vmem:[%s13019_s5 + $0x660] sm:$0xff]  ;;  %v4644_v34 = vld [vmem:[%s13019_s5 + $0xb38] sm:$0xff] }
 0x477   : > { %v4126_v44 = vsel %vm4117_vm4, %v4110_v50, %v4112_v63  ;;  %v11969_v50 = vadd.f32 %v11512_v11, %v11743_v10  ;;  %v4578_v10 = vld [vmem:[%s13019_s5 + $0x928] sm:$0xff]  ;;  %v11990_v63 = vadd.f32 %v11512_v11, %v11836_v43  ;;  %v4641_v19 = vld [vmem:[%s13019_s5 + $0xb20] sm:$0xff] }
 0x478   : > { %v4146_v54 = vmax.f32 %v11462_v51, %v4126_v44  ;;  %v4477_v51 = vld [vmem:[%s13019_s5 + $0x600] sm:$0xff]  ;;  %v7602_v43 = vpack.c.bf16 %v4578_v10, %v4575_v29  ;;  %v7612_v36 = vpack.c.bf16 %v4644_v34, %v4641_v19  ;;  %v4502_v16 = vld [vmem:[%s13019_s5 + $0x6c8] sm:$0xff]  ;;  %v4507_v10 = vld [vmem:[%s13019_s5 + $0x6f0] sm:$0xff] }
 0x479   : > { %7299 = vmatpush1.bf16.msra.mxu0 %v7298_v15  ;;  %7587 = vmatpush3.bf16.msra.mxu1 %v7586_v27  ;;  %v4114_v33 = vpop.permute.xlu0 %4113  ;;  %v7600_v27 = vpack.c.bf16 %v4626_v21, %v4623_v60  ;;  %v4268_v55 = vmax.f32 %v11969_v50, 0.0  ;;  %v4271_v38 = vmax.f32 %v11990_v63, 0.0  ;;  %v4504_v60 = vld [vmem:[%s13019_s5 + $0x6d8] sm:$0xff]  ;;  %v4599_v21 = vld [vmem:[%s13019_s5 + $0x9d0] sm:$0xff]  ;;  %v4662_v13 = vld [vmem:[%s13019_s5 + $0xbc8] sm:$0xff] }
 0x47a   : > { %v4116_v2 = vpop.permute.xlu1 %4115  ;;  %7301 = vmatprep.subr.bf16.mxu0 %v7300_v30  ;;  %7589 = vmatprep.subr.bf16.mxu1 %v7588_v9  ;;  %v4487_v30 = vld [vmem:[%s13019_s5 + $0x650] sm:$0xff]  ;;  %v4629_v9 = vld [vmem:[%s13019_s5 + $0xac0] sm:$0xff]  ;;  %v4620_v34 = vld [vmem:[%s13019_s5 + $0xa78] sm:$0xff] }
 0x47b   : > { %v4127_v25 = vsel %vm4117_vm4, %v4114_v33, %v4116_v2  ;;  %v7316_v35 = vpack.c.bf16 %v4487_v30, %v4484_v8  ;;  %v7604_v33 = vpack.c.bf16 %v4632_v23, %v4629_v9  ;;  %v4635_v2 = vld [vmem:[%s13019_s5 + $0xaf0] sm:$0xff]  ;;  %v4510_v8 = vld [vmem:[%s13019_s5 + $0x708] sm:$0xff]  ;;  %v4605_v30 = vld [vmem:[%s13019_s5 + $0xa00] sm:$0xff] }
 0x47c   : > { %v4147_v40 = vmax.f32 %v11467_v18, %v4127_v25  ;;  %v4496_v25 = vld [vmem:[%s13019_s5 + $0x698] sm:$0xff]  ;;  %v4595_v63 = vld [vmem:[%s13019_s5 + $0x9b0] sm:$0xff] }
 0x47d   : > { %7303 = vmatpush1.bf16.msra.mxu0 %v7302_v57  ;;  %7591 = vmatpush3.bf16.msra.mxu1 %v7590_v31  ;;  %v4201_v59 = vpop.permute.xlu0 %4200  ;;  %v4584_v57 = vld [vmem:[%s13019_s5 + $0x958] sm:$0xff]  ;;  %v4490_v31 = vld [vmem:[%s13019_s5 + $0x668] sm:$0xff]  ;;  %v7324_v44 = vpack.c.bf16 %v4499_v61, %v4496_v25  ;;  %v4617_v61 = vld [vmem:[%s13019_s5 + $0xa60] sm:$0xff] }
 0x47e   : > { %v11947_v18 = vmax.f32 %v4147_v40, %v4237_v1  ;;  %v4203_v24 = vpop.permute.xlu1 %4202  ;;  %7305 = vmatprep.subr.bf16.mxu0 %v7304_v6  ;;  %7593 = vmatprep.subr.bf16.mxu1 %v7592_v42  ;;  %v4638_v6 = vld [vmem:[%s13019_s5 + $0xb08] sm:$0xff]  ;;  %v7320_v42 = vpack.c.bf16 %v4493_v7, %v4490_v31  ;;  %v7322_v1 = vpack.c.bf16 %v4492_v46, %v4489_v28  ;;  %v4608_v23 = vld [vmem:[%s13019_s5 + $0xa18] sm:$0xff]  ;;  %v4611_v7 = vld [vmem:[%s13019_s5 + $0xa30] sm:$0xff] }
 0x47f   : > { %v4216_v56 = vsel %vm4117_vm4, %v4201_v59, %v4203_v24  ;;  %v7610_v40 = vpack.c.bf16 %v4590_v41, %v4587_v12  ;;  %v4495_v59 = vld [vmem:[%s13019_s5 + $0x690] sm:$0xff]  ;;  %v4505_v24 = vld [vmem:[%s13019_s5 + $0x6e0] sm:$0xff]  ;;  %v4516_v31 = vld [vmem:[%s13019_s5 + $0x738] sm:$0xff] }
 0x480   : > { %v4236_v45 = vmax.f32 %v11332_v32, %v4216_v56  ;;  %v4480_v32 = vld [vmem:[%s13019_s5 + $0x618] sm:$0xff]  ;;  %v7328_v53 = vpack.c.bf16 %v4505_v24, %v4502_v16  ;;  %v4501_v56 = vld [vmem:[%s13019_s5 + $0x6c0] sm:$0xff]  ;;  %v4519_v41 = vld [vmem:[%s13019_s5 + $0x750] sm:$0xff]  ;;  %v12191_v24 = vadd.f32 %v11512_v11, %v11865_v48 }
 0x481   : > { %7307 = vmatpush1.bf16.msra.mxu0 %v7306_v49  ;;  %7595 = vmatpush3.bf16.msra.mxu1 %v7594_v26  ;;  %v7314_v37 = vpack.c.bf16 %v4480_v32, %v4477_v51  ;;  %v4498_v49 = vld [vmem:[%s13019_s5 + $0x6a8] sm:$0xff]  ;;  %v4593_v26 = vld [vmem:[%s13019_s5 + $0x9a0] sm:$0xff]  ;;  %v7330_v51 = vpack.c.bf16 %v4504_v60, %v4501_v56  ;;  %v4668_v28 = vld [vmem:[%s13019_s5 + $0xbf8] sm:$0xff] }
 0x482   : > { %v11971_v15 = vmax.f32 %v4146_v54, %v4236_v45  ;;  %7309 = vmatprep.subr.bf16.mxu0 %v7308_v22  ;;  %7597 = vmatprep.subr.bf16.mxu1 %v7596_v47  ;;  %v4647_v22 = vld [vmem:[%s13019_s5 + $0xb50] sm:$0xff]  ;;  %v4650_v47 = vld [vmem:[%s13019_s5 + $0xb68] sm:$0xff]  ;;  %v7326_v39 = vpack.c.bf16 %v4498_v49, %v4495_v59  ;;  %v7614_v14 = vpack.c.bf16 %v4596_v58, %v4593_v26  ;;  %v4525_v58 = vld [vmem:[%s13019_s5 + $0x780] sm:$0xff] }
 0x483   : > { %v7616_v54 = vpack.c.bf16 %v4650_v47, %v4647_v22  ;;  %v4602_v45 = vld [vmem:[%s13019_s5 + $0x9e8] sm:$0xff]  ;;  %v7630_v26 = vpack.c.bf16 %v4620_v34, %v4617_v61  ;;  %v4528_v16 = vld [vmem:[%s13019_s5 + $0x798] sm:$0xff]  ;;  %v4671_v47 = vld [vmem:[%s13019_s5 + $0xc10] sm:$0xff] }
 0x484   : > { %v7618_v32 = vpack.c.bf16 %v4602_v45, %v4599_v21  ;;  %v4522_v25 = vld [vmem:[%s13019_s5 + $0x768] sm:$0xff]  ;;  %v4535_v48 = vld [vmem:[%s13019_s5 + $0x7d0] sm:$0xff]  ;;  %v4725_v56 = vld [vmem:[%s13019_s5 + $0xdc0] sm:$0xff]  ;;  %v7346_v21 = vpack.c.bf16 %v4528_v16, %v4525_v58 }
 0x485   : > { %7311 = vmatpush1.bf16.msra.mxu0 %v7310_v4  ;;  %7599 = vmatpush3.bf16.msra.mxu1 %v7598_v17  ;;  %v4508_v4 = vld [vmem:[%s13019_s5 + $0x6f8] sm:$0xff]  ;;  %v4511_v17 = vld [vmem:[%s13019_s5 + $0x710] sm:$0xff]  ;;  %v4722_v59 = vld [vmem:[%s13019_s5 + $0xda8] sm:$0xff]  ;;  %v7342_v49 = vpack.c.bf16 %v4522_v25, %v4519_v41 }
 0x486   : > { %7313 = vmatprep.subr.bf16.mxu0 %v7312_v5  ;;  %7601 = vmatprep.subr.bf16.mxu1 %v7600_v27  ;;  %v4653_v5 = vld [vmem:[%s13019_s5 + $0xb80] sm:$0xff]  ;;  %v4656_v27 = vld [vmem:[%s13019_s5 + $0xb98] sm:$0xff]  ;;  %v7332_v29 = vpack.c.bf16 %v4511_v17, %v4508_v4  ;;  %v4270_v4 = vmax.f32 %v12191_v24, 0.0  ;;  %v4743_v41 = vld [vmem:[%s13019_s5 + $0xe50] sm:$0xff] }
 0x487   : > { %v7620_v9 = vpack.c.bf16 %v4656_v27, %v4653_v5  ;;  %v4728_v60 = vld [vmem:[%s13019_s5 + $0xdd8] sm:$0xff]  ;;  %v4677_v45 = vld [vmem:[%s13019_s5 + $0xc40] sm:$0xff]  ;;  %v4746_v25 = vld [vmem:[%s13019_s5 + $0xe68] sm:$0xff] }
 0x488   : > { %6285 = vmatmul.mubr.msk.f32.vlgmr.msra.gmra.mrb[92].mxu0 %vm4274_vm5, %v4266_v0  ;;  %6297 = vmatmul.mubr.msk.f32.vlgmr.msra.gmra.mrb[144].mxu1 %vm4274_vm5, %v4268_v55  ;;  %v7606_v0 = vpack.c.bf16 %v4584_v57, %v4581_v52  ;;  %v7334_v52 = vpack.c.bf16 %v4510_v8, %v4507_v10  ;;  %v4513_v57 = vld [vmem:[%s13019_s5 + $0x720] sm:$0xff]  ;;  %v7636_v5 = vpack.c.bf16 %v4728_v60, %v4725_v56  ;;  %v4680_v27 = vld [vmem:[%s13019_s5 + $0xc58] sm:$0xff]  ;;  %v4731_v10 = vld [vmem:[%s13019_s5 + $0xdf0] sm:$0xff] }
 0x489   : > { %7315 = vmatpush1.bf16.msra.mxu0 %v7314_v37  ;;  %6286 = vmatprep.mubr.msk.f32.mxu0 %vm4274_vm5, %v4269_v20  ;;  %v7608_v20 = vpack.c.bf16 %v4638_v6, %v4635_v2  ;;  %v4514_v37 = vld [vmem:[%s13019_s5 + $0x728] sm:$0xff]  ;;  %v7624_v2 = vpack.c.bf16 %v4662_v13, %v4659_v62  ;;  %v7338_v46 = vpack.c.bf16 %v4516_v31, %v4513_v57  ;;  %v4683_v62 = vld [vmem:[%s13019_s5 + $0xc70] sm:$0xff]  ;;  %v4737_v57 = vld [vmem:[%s13019_s5 + $0xe20] sm:$0xff] }
 0x48a   : > { %7603 = vmatpush3.bf16.msra.mxu1 %v7602_v43  ;;  %6298 = vmatprep.mubr.msk.f32.mxu1 %vm4274_vm5, %v4271_v38  ;;  %v4517_v43 = vld [vmem:[%s13019_s5 + $0x740] sm:$0xff]  ;;  %v4614_v6 = vld [vmem:[%s13019_s5 + $0xa48] sm:$0xff]  ;;  %v4740_v31 = vld [vmem:[%s13019_s5 + $0xe38] sm:$0xff] }
 0x48b   : > { %7317 = vmatprep.subr.bf16.mxu0 %v7316_v35  ;;  %7605 = vmatprep.subr.bf16.mxu1 %v7604_v33  ;;  %v7622_v35 = vpack.c.bf16 %v4608_v23, %v4605_v30  ;;  %v7336_v33 = vpack.c.bf16 %v4517_v43, %v4514_v37  ;;  %v7626_v12 = vpack.c.bf16 %v4614_v6, %v4611_v7  ;;  %v4734_v8 = vld [vmem:[%s13019_s5 + $0xe08] sm:$0xff]  ;;  %v4537_v37 = vld [vmem:[%s13019_s5 + $0x7e0] sm:$0xff]  ;;  %v4540_v43 = vld [vmem:[%s13019_s5 + $0x7f8] sm:$0xff] }
 0x48c   : > { %v7640_v13 = vpack.c.bf16 %v4734_v8, %v4731_v10  ;;  %v7354_v7 = vpack.c.bf16 %v4540_v43, %v4537_v37  ;;  %v4749_v58 = vld [vmem:[%s13019_s5 + $0xe80] sm:$0xff]  ;;  %v4752_v16 = vld [vmem:[%s13019_s5 + $0xe98] sm:$0xff]  ;;  %v4707_v10 = vld [vmem:[%s13019_s5 + $0xd30] sm:$0xff] }
 0x48d   : > { %7319 = vmatpush1.bf16.msra.mxu0 %v7318_v3  ;;  %v4520_v3 = vld [vmem:[%s13019_s5 + $0x758] sm:$0xff]  ;;  %v4701_v56 = vld [vmem:[%s13019_s5 + $0xd00] sm:$0xff]  ;;  %v7652_v60 = vpack.c.bf16 %v4752_v16, %v4749_v58  ;;  %v4591_v58 = vld [vmem:[%s13019_s5 + $0x990] sm:$0xff] }
 0x48e   : > { %7607 = vmatpush3.bf16.msra.mxu1 %v7606_v0  ;;  %7321 = vmatprep.subr.bf16.mxu0 %v7320_v42  ;;  %v4523_v0 = vld [vmem:[%s13019_s5 + $0x770] sm:$0xff]  ;;  %v4665_v42 = vld [vmem:[%s13019_s5 + $0xbe0] sm:$0xff]  ;;  %v4764_v43 = vld [vmem:[%s13019_s5 + $0xef8] sm:$0xff] }
 0x48f   : > { %7609 = vmatprep.subr.bf16.mxu1 %v7608_v20  ;;  %v7340_v20 = vpack.c.bf16 %v4523_v0, %v4520_v3  ;;  %v7628_v19 = vpack.c.bf16 %v4668_v28, %v4665_v42  ;;  %v4543_v3 = vld [vmem:[%s13019_s5 + $0x810] sm:$0xff]  ;;  %v4546_v0 = vld [vmem:[%s13019_s5 + $0x828] sm:$0xff]  ;;  %v4689_v42 = vld [vmem:[%s13019_s5 + $0xca0] sm:$0xff]  ;;  %v7644_v28 = vpack.c.bf16 %v4740_v31, %v4737_v57 }
 0x490   : > { %v7358_v61 = vpack.c.bf16 %v4546_v0, %v4543_v3  ;;  %v4761_v37 = vld [vmem:[%s13019_s5 + $0xee0] sm:$0xff]  ;;  %v4588_v50 = vld [vmem:[%s13019_s5 + $0x978] sm:$0xff]  ;;  %v4594_v16 = vld [vmem:[%s13019_s5 + $0x9a8] sm:$0xff] }
 0x491   : > { %7323 = vmatpush1.bf16.msra.mxu0 %v7322_v1  ;;  %v4526_v1 = vld [vmem:[%s13019_s5 + $0x788] sm:$0xff]  ;;  %v4713_v57 = vld [vmem:[%s13019_s5 + $0xd60] sm:$0xff]  ;;  %v7660_v31 = vpack.c.bf16 %v4764_v43, %v4761_v37  ;;  %v4615_v37 = vld [vmem:[%s13019_s5 + $0xa50] sm:$0xff] }
 0x492   : > { %7611 = vmatpush3.bf16.msra.mxu1 %v7610_v40  ;;  %7325 = vmatprep.subr.bf16.mxu0 %v7324_v44  ;;  %v4529_v40 = vld [vmem:[%s13019_s5 + $0x7a0] sm:$0xff]  ;;  %v4719_v44 = vld [vmem:[%s13019_s5 + $0xd90] sm:$0xff]  ;;  %v4618_v43 = vld [vmem:[%s13019_s5 + $0xa68] sm:$0xff] }
 0x493   : > { %7613 = vmatprep.subr.bf16.mxu1 %v7612_v36  ;;  %v7344_v36 = vpack.c.bf16 %v4529_v40, %v4526_v1  ;;  %v7632_v22 = vpack.c.bf16 %v4722_v59, %v4719_v44  ;;  %v4549_v1 = vld [vmem:[%s13019_s5 + $0x840] sm:$0xff]  ;;  %v4552_v40 = vld [vmem:[%s13019_s5 + $0x858] sm:$0xff]  ;;  %v4695_v44 = vld [vmem:[%s13019_s5 + $0xcd0] sm:$0xff]  ;;  %v7648_v59 = vpack.c.bf16 %v4746_v25, %v4743_v41 }
 0x494   : > { %v4580_v41 = vld [vmem:[%s13019_s5 + $0x938] sm:$0xff]  ;;  %v4583_v25 = vld [vmem:[%s13019_s5 + $0x950] sm:$0xff] }
 0x495   : > { %7327 = vmatpush1.bf16.msra.mxu0 %v7326_v39  ;;  %v4674_v39 = vld [vmem:[%s13019_s5 + $0xc28] sm:$0xff]  ;;  %v4688_v24 = vld [vmem:[%s13019_s5 + $0xc98] sm:$0xff] }
 0x496   : > { %7615 = vmatpush3.bf16.msra.mxu1 %v7614_v14  ;;  %7329 = vmatprep.subr.bf16.mxu0 %v7328_v53  ;;  %v4532_v14 = vld [vmem:[%s13019_s5 + $0x7b8] sm:$0xff]  ;;  %v12204_v53 = vadd.f32 %v11512_v11, %v11947_v18  ;;  %v4531_v11 = vld [vmem:[%s13019_s5 + $0x7b0] sm:$0xff]  ;;  %v4534_v18 = vld [vmem:[%s13019_s5 + $0x7c8] sm:$0xff] }
 0x497   : > { %7617 = vmatprep.subr.bf16.mxu1 %v7616_v54  ;;  %v7634_v54 = vpack.c.bf16 %v4674_v39, %v4671_v47  ;;  %v7348_v17 = vpack.c.bf16 %v4535_v48, %v4532_v14  ;;  %v7350_v30 = vpack.c.bf16 %v4534_v18, %v4531_v11  ;;  %v4555_v14 = vld [vmem:[%s13019_s5 + $0x870] sm:$0xff]  ;;  %v4558_v48 = vld [vmem:[%s13019_s5 + $0x888] sm:$0xff]  ;;  %v4565_v11 = vld [vmem:[%s13019_s5 + $0x8c0] sm:$0xff] }
 0x498   : > { %v4755_v18 = vld [vmem:[%s13019_s5 + $0xeb0] sm:$0xff] }
 0x499   : > { %7331 = vmatpush1.bf16.msra.mxu0 %v7330_v51  ;;  %v4538_v51 = vld [vmem:[%s13019_s5 + $0x7e8] sm:$0xff] }
 0x49a   : > { %7619 = vmatpush3.bf16.msra.mxu1 %v7618_v32  ;;  %7333 = vmatprep.subr.bf16.mxu0 %v7332_v29  ;;  %v4541_v32 = vld [vmem:[%s13019_s5 + $0x800] sm:$0xff]  ;;  %v4273_v29 = vmax.f32 %v12204_v53, 0.0  ;;  %v4691_v53 = vld [vmem:[%s13019_s5 + $0xcb0] sm:$0xff] }
 0x49b   : > { %7621 = vmatprep.subr.bf16.mxu1 %v7620_v9  ;;  %v7638_v9 = vpack.c.bf16 %v4680_v27, %v4677_v45  ;;  %v7352_v23 = vpack.c.bf16 %v4541_v32, %v4538_v51  ;;  %v4758_v45 = vld [vmem:[%s13019_s5 + $0xec8] sm:$0xff]  ;;  %v4561_v51 = vld [vmem:[%s13019_s5 + $0x8a0] sm:$0xff]  ;;  %v4564_v32 = vld [vmem:[%s13019_s5 + $0x8b8] sm:$0xff] }
 0x49c   : > { %v7656_v8 = vpack.c.bf16 %v4758_v45, %v4755_v18  ;;  %v4603_v18 = vld [vmem:[%s13019_s5 + $0x9f0] sm:$0xff]  ;;  %v4606_v45 = vld [vmem:[%s13019_s5 + $0xa08] sm:$0xff] }
 0x49d   : > { %7335 = vmatpush1.bf16.msra.mxu0 %v7334_v52  ;;  %v4686_v52 = vld [vmem:[%s13019_s5 + $0xc88] sm:$0xff] }
 0x49e   : > { %7623 = vmatpush3.bf16.msra.mxu1 %v7622_v35  ;;  %7337 = vmatprep.subr.bf16.mxu0 %v7336_v33  ;;  %v4544_v35 = vld [vmem:[%s13019_s5 + $0x818] sm:$0xff]  ;;  %v4547_v33 = vld [vmem:[%s13019_s5 + $0x830] sm:$0xff] }
 0x49f   : > { %7625 = vmatprep.subr.bf16.mxu1 %v7624_v2  ;;  %v7642_v2 = vpack.c.bf16 %v4686_v52, %v4683_v62  ;;  %v7356_v6 = vpack.c.bf16 %v4547_v33, %v4544_v35  ;;  %v7370_v62 = vpack.c.bf16 %v4564_v32, %v4561_v51  ;;  %v4567_v35 = vld [vmem:[%s13019_s5 + $0x8d0] sm:$0xff]  ;;  %v4570_v33 = vld [vmem:[%s13019_s5 + $0x8e8] sm:$0xff]  ;;  %v4609_v32 = vld [vmem:[%s13019_s5 + $0xa20] sm:$0xff] }
 0x4a0   : > { %v7374_v3 = vpack.c.bf16 %v4570_v33, %v4567_v35  ;;  %v4621_v33 = vld [vmem:[%s13019_s5 + $0xa80] sm:$0xff] }
 0x4a1   : > { %7339 = vmatpush1.bf16.msra.mxu0 %v7338_v46  ;;  %v4692_v46 = vld [vmem:[%s13019_s5 + $0xcb8] sm:$0xff] }
 0x4a2   : > { %7627 = vmatpush3.bf16.msra.mxu1 %v7626_v12  ;;  %7341 = vmatprep.subr.bf16.mxu0 %v7340_v20  ;;  %v4550_v12 = vld [vmem:[%s13019_s5 + $0x848] sm:$0xff]  ;;  %v4553_v20 = vld [vmem:[%s13019_s5 + $0x860] sm:$0xff] }
 0x4a3   : > { %7629 = vmatprep.subr.bf16.mxu1 %v7628_v19  ;;  %v7646_v19 = vpack.c.bf16 %v4692_v46, %v4689_v42  ;;  %v7360_v34 = vpack.c.bf16 %v4553_v20, %v4550_v12  ;;  %v4576_v46 = vld [vmem:[%s13019_s5 + $0x918] sm:$0xff]  ;;  %v7935_v12 = vld [vmem:[%s13018_s4] ss:$0 sm:$0xff] }
 0x4a4   : > { %v12395_v20 = vadd.f32 %v7935_v12, %v11971_v15  ;;  %v4582_v15 = vld [vmem:[%s13019_s5 + $0x948] sm:$0xff] }
 0x4a5   : > { %7343 = vmatpush1.bf16.msra.mxu0 %v7342_v49  ;;  %v4698_v49 = vld [vmem:[%s13019_s5 + $0xce8] sm:$0xff] }
 0x4a6   : > { %7631 = vmatpush3.bf16.msra.mxu1 %v7630_v26  ;;  %7345 = vmatprep.subr.bf16.mxu0 %v7344_v36  ;;  %v4556_v26 = vld [vmem:[%s13019_s5 + $0x878] sm:$0xff]  ;;  %v4559_v36 = vld [vmem:[%s13019_s5 + $0x890] sm:$0xff]  ;;  %v7650_v47 = vpack.c.bf16 %v4698_v49, %v4695_v44  ;;  %v4589_v44 = vld [vmem:[%s13019_s5 + $0x980] sm:$0xff] }
 0x4a7   : > { %7633 = vmatprep.subr.bf16.mxu1 %v7632_v22  ;;  %v7362_v22 = vpack.c.bf16 %v4552_v40, %v4549_v1  ;;  %v7364_v39 = vpack.c.bf16 %v4559_v36, %v4556_v26  ;;  %v4272_v1 = vmax.f32 %v12395_v20, 0.0  ;;  %v4586_v40 = vld [vmem:[%s13019_s5 + $0x968] sm:$0xff]  ;;  %v4585_v26 = vld [vmem:[%s13019_s5 + $0x960] sm:$0xff] }
 0x4a8   : > { %v7384_v49 = vpack.c.bf16 %v4589_v44, %v4586_v40  ;;  %v4639_v40 = vld [vmem:[%s13019_s5 + $0xb10] sm:$0xff]  ;;  %v4642_v44 = vld [vmem:[%s13019_s5 + $0xb28] sm:$0xff] }
 0x4a9   : > { %6299 = vmatmul.mubr.msk.f32.vlgmr.msra.gmra.mrb[146].mxu1 %vm4274_vm5, %v4270_v4  ;;  %7347 = vmatpush1.bf16.msra.mxu0 %v7346_v21  ;;  %v4704_v21 = vld [vmem:[%s13019_s5 + $0xd18] sm:$0xff] }
 0x4aa   : > { %7635 = vmatpush3.bf16.msra.mxu1 %v7634_v54  ;;  %6300 = vmatprep.mubr.msk.f32.mxu1 %vm4274_vm5, %v4273_v29  ;;  %v4562_v54 = vld [vmem:[%s13019_s5 + $0x8a8] sm:$0xff] }
 0x4ab   : > { %7349 = vmatprep.subr.bf16.mxu0 %v7348_v17  ;;  %7637 = vmatprep.subr.bf16.mxu1 %v7636_v5  ;;  %v7366_v17 = vpack.c.bf16 %v4558_v48, %v4555_v14  ;;  %v7654_v5 = vpack.c.bf16 %v4704_v21, %v4701_v56  ;;  %v7368_v27 = vpack.c.bf16 %v4565_v11, %v4562_v54  ;;  %v4597_v48 = vld [vmem:[%s13019_s5 + $0x9c0] sm:$0xff]  ;;  %v4600_v56 = vld [vmem:[%s13019_s5 + $0x9d8] sm:$0xff]  ;;  %v4607_v21 = vld [vmem:[%s13019_s5 + $0xa10] sm:$0xff] }
 0x4ac   : > { %v7394_v54 = vpack.c.bf16 %v4600_v56, %v4597_v48 }
 0x4ad   : > { %7351 = vmatpush1.bf16.msra.mxu0 %v7350_v30  ;;  %v4710_v30 = vld [vmem:[%s13019_s5 + $0xd48] sm:$0xff] }
 0x4ae   : > { %7639 = vmatpush3.bf16.msra.mxu1 %v7638_v9  ;;  %7353 = vmatprep.subr.bf16.mxu0 %v7352_v23  ;;  %v4568_v9 = vld [vmem:[%s13019_s5 + $0x8d8] sm:$0xff]  ;;  %v4571_v23 = vld [vmem:[%s13019_s5 + $0x8f0] sm:$0xff] }
 0x4af   : > { %7641 = vmatprep.subr.bf16.mxu1 %v7640_v13  ;;  %v7658_v13 = vpack.c.bf16 %v4710_v30, %v4707_v10  ;;  %v7372_v52 = vpack.c.bf16 %v4571_v23, %v4568_v9  ;;  %v4612_v10 = vld [vmem:[%s13019_s5 + $0xa38] sm:$0xff]  ;;  %v4619_v30 = vld [vmem:[%s13019_s5 + $0xa70] sm:$0xff] }
 0x4b0   : > { %v7402_v9 = vpack.c.bf16 %v4612_v10, %v4609_v32 }
 0x4b1   : > { %7355 = vmatpush1.bf16.msra.mxu0 %v7354_v7  ;;  %v4716_v7 = vld [vmem:[%s13019_s5 + $0xd78] sm:$0xff] }
 0x4b2   : > { %7643 = vmatpush3.bf16.msra.mxu1 %v7642_v2  ;;  %7357 = vmatprep.subr.bf16.mxu0 %v7356_v6  ;;  %v4574_v2 = vld [vmem:[%s13019_s5 + $0x908] sm:$0xff]  ;;  %v4577_v6 = vld [vmem:[%s13019_s5 + $0x920] sm:$0xff]  ;;  %v7662_v0 = vpack.c.bf16 %v4716_v7, %v4713_v57  ;;  %v4624_v57 = vld [vmem:[%s13019_s5 + $0xa98] sm:$0xff] }
 0x4b3   : > { %7645 = vmatprep.subr.bf16.mxu1 %v7644_v28  ;;  %v7376_v42 = vpack.c.bf16 %v4577_v6, %v4574_v2  ;;  %v4573_v28 = vld [vmem:[%s13019_s5 + $0x900] sm:$0xff]  ;;  %v4631_v7 = vld [vmem:[%s13019_s5 + $0xad0] sm:$0xff]  ;;  %v7410_v2 = vpack.c.bf16 %v4624_v57, %v4621_v33 }
 0x4b5   : > { %7359 = vmatpush1.bf16.msra.mxu0 %v7358_v61  ;;  %v7378_v61 = vpack.c.bf16 %v4576_v46, %v4573_v28  ;;  %v4637_v28 = vld [vmem:[%s13019_s5 + $0xb00] sm:$0xff] }
 0x4b6   : > { %7647 = vmatpush3.bf16.msra.mxu1 %v7646_v19  ;;  %7361 = vmatprep.subr.bf16.mxu0 %v7360_v34  ;;  %v7380_v19 = vpack.c.bf16 %v4583_v25, %v4580_v41  ;;  %v4579_v34 = vld [vmem:[%s13019_s5 + $0x930] sm:$0xff]  ;;  %v4633_v41 = vld [vmem:[%s13019_s5 + $0xae0] sm:$0xff]  ;;  %v4636_v25 = vld [vmem:[%s13019_s5 + $0xaf8] sm:$0xff] }
 0x4b7   : > { %7649 = vmatprep.subr.bf16.mxu1 %v7648_v59  ;;  %v7382_v59 = vpack.c.bf16 %v4582_v15, %v4579_v34  ;;  %v7418_v34 = vpack.c.bf16 %v4636_v25, %v4633_v41  ;;  %v4700_v41 = vld [vmem:[%s13019_s5 + $0xcf8] sm:$0xff]  ;;  %v4703_v25 = vld [vmem:[%s13019_s5 + $0xd10] sm:$0xff] }
 0x4b9   : > { %7363 = vmatpush1.bf16.msra.mxu0 %v7362_v22  ;;  %v4598_v22 = vld [vmem:[%s13019_s5 + $0x9c8] sm:$0xff] }
 0x4ba   : > { %7651 = vmatpush3.bf16.msra.mxu1 %v7650_v47  ;;  %7365 = vmatprep.subr.bf16.mxu0 %v7364_v39  ;;  %v4601_v47 = vld [vmem:[%s13019_s5 + $0x9e0] sm:$0xff]  ;;  %v7390_v39 = vpack.c.bf16 %v4594_v16, %v4591_v58 }
 0x4bb   : > { %7653 = vmatprep.subr.bf16.mxu1 %v7652_v60  ;;  %v7392_v14 = vpack.c.bf16 %v4601_v47, %v4598_v22  ;;  %v4604_v60 = vld [vmem:[%s13019_s5 + $0x9f8] sm:$0xff]  ;;  %v4651_v22 = vld [vmem:[%s13019_s5 + $0xb70] sm:$0xff]  ;;  %v4654_v47 = vld [vmem:[%s13019_s5 + $0xb88] sm:$0xff] }
 0x4bc   : > { %v7396_v11 = vpack.c.bf16 %v4607_v21, %v4604_v60  ;;  %v7430_v48 = vpack.c.bf16 %v4654_v47, %v4651_v22  ;;  %v4657_v60 = vld [vmem:[%s13019_s5 + $0xba0] sm:$0xff]  ;;  %v4660_v21 = vld [vmem:[%s13019_s5 + $0xbb8] sm:$0xff]  ;;  %v4711_v47 = vld [vmem:[%s13019_s5 + $0xd50] sm:$0xff] }
 0x4bd   : > { %7367 = vmatpush1.bf16.msra.mxu0 %v7366_v17  ;;  %v4610_v17 = vld [vmem:[%s13019_s5 + $0xa28] sm:$0xff] }
 0x4be   : > { %7655 = vmatpush3.bf16.msra.mxu1 %v7654_v5  ;;  %7369 = vmatprep.subr.bf16.mxu0 %v7368_v27  ;;  %v4613_v5 = vld [vmem:[%s13019_s5 + $0xa40] sm:$0xff]  ;;  %v7398_v27 = vpack.c.bf16 %v4606_v45, %v4603_v18  ;;  %v7434_v18 = vpack.c.bf16 %v4660_v21, %v4657_v60  ;;  %v4720_v21 = vld [vmem:[%s13019_s5 + $0xd98] sm:$0xff] }
 0x4bf   : > { %7657 = vmatprep.subr.bf16.mxu1 %v7656_v8  ;;  %v7400_v51 = vpack.c.bf16 %v4613_v5, %v4610_v17  ;;  %v4616_v8 = vld [vmem:[%s13019_s5 + $0xa58] sm:$0xff]  ;;  %v4663_v17 = vld [vmem:[%s13019_s5 + $0xbd0] sm:$0xff]  ;;  %v4666_v5 = vld [vmem:[%s13019_s5 + $0xbe8] sm:$0xff] }
 0x4c0   : > { %v7404_v23 = vpack.c.bf16 %v4619_v30, %v4616_v8  ;;  %v7438_v32 = vpack.c.bf16 %v4666_v5, %v4663_v17  ;;  %v4669_v8 = vld [vmem:[%s13019_s5 + $0xc00] sm:$0xff]  ;;  %v4672_v30 = vld [vmem:[%s13019_s5 + $0xc18] sm:$0xff]  ;;  %v5507_v17 = vld [vmem:[%s13021_s7 + $0x88] sm:$0xff] }
 0x4c1   : > { %7371 = vmatpush1.bf16.msra.mxu0 %v7370_v62  ;;  %v4622_v62 = vld [vmem:[%s13019_s5 + $0xa88] sm:$0xff]  ;;  %v5490_v5 = vld [vmem:[%s13021_s7] sm:$0xff] }
 0x4c2   : > { %7659 = vmatpush3.bf16.msra.mxu1 %v7658_v13  ;;  %7373 = vmatprep.subr.bf16.mxu0 %v7372_v52  ;;  %v4625_v13 = vld [vmem:[%s13019_s5 + $0xaa0] sm:$0xff]  ;;  %v7406_v52 = vpack.c.bf16 %v4618_v43, %v4615_v37  ;;  %v7442_v37 = vpack.c.bf16 %v4672_v30, %v4669_v8 }
 0x4c3   : > { %7661 = vmatprep.subr.bf16.mxu1 %v7660_v31  ;;  %v7408_v35 = vpack.c.bf16 %v4625_v13, %v4622_v62  ;;  %v4628_v31 = vld [vmem:[%s13019_s5 + $0xab8] sm:$0xff]  ;;  %v4675_v62 = vld [vmem:[%s13019_s5 + $0xc30] sm:$0xff]  ;;  %v4678_v13 = vld [vmem:[%s13019_s5 + $0xc48] sm:$0xff] }
 0x4c4   : > { %v7412_v6 = vpack.c.bf16 %v4631_v7, %v4628_v31  ;;  %v7446_v33 = vpack.c.bf16 %v4678_v13, %v4675_v62  ;;  %v4681_v31 = vld [vmem:[%s13019_s5 + $0xc60] sm:$0xff]  ;;  %v4684_v7 = vld [vmem:[%s13019_s5 + $0xc78] sm:$0xff]  ;;  %v5511_v62 = vld [vmem:[%s13021_s7 + $0xa8] sm:$0xff] }
 0x4c5   : > { %7375 = vmatpush1.bf16.msra.mxu0 %v7374_v3  ;;  %v4627_v3 = vld [vmem:[%s13019_s5 + $0xab0] sm:$0xff] }
 0x4c6   : > { %7663 = vmatpush3.bf16.msra.mxu1 %v7662_v0  ;;  %7377 = vmatprep.subr.bf16.mxu0 %v7376_v42  ;;  %v4630_v0 = vld [vmem:[%s13019_s5 + $0xac8] sm:$0xff] }
 0x4c7   : > { %v4634_v42 = vld [vmem:[%s13019_s5 + $0xae8] sm:$0xff]  ;;  %v7414_v46 = vpack.c.bf16 %v4630_v0, %v4627_v3  ;;  %v4697_v0 = vld [vmem:[%s13019_s5 + $0xce0] sm:$0xff] }
 0x4c8   : > { %6287 = vmatmul.mubr.msk.f32.vlgmr.msra.gmra.mrb[92].mxu0 %vm4274_vm5, %v4268_v55  ;;  %v4592_v55 = vld [vmem:[%s13019_s5 + $0x998] sm:$0xff]  ;;  %v7416_v12 = vpack.c.bf16 %v4637_v28, %v4634_v42  ;;  %v4694_v3 = vld [vmem:[%s13019_s5 + $0xcc8] sm:$0xff] }
 0x4c9   : > { %6301 = vmatmul.mubr.msk.f32.vlgmr.msra.gmra.mrb[148].mxu1 %vm4274_vm5, %v4272_v1  ;;  %7379 = vmatpush1.bf16.msra.mxu0 %v7378_v61  ;;  %v7388_v36 = vpack.c.bf16 %v4595_v63, %v4592_v55  ;;  %v4640_v61 = vld [vmem:[%s13019_s5 + $0xb18] sm:$0xff]  ;;  %v4645_v55 = vld [vmem:[%s13019_s5 + $0xb40] sm:$0xff]  ;;  %v7456_v28 = vpack.c.bf16 %v4697_v0, %v4694_v3 }
 0x4ca   : > { %6288 = vmatprep.mubr.msk.f32.mxu0 %vm4274_vm5, %v4271_v38  ;;  %7381 = vmatprep.subr.bf16.mxu0 %v7380_v19  ;;  %v7386_v38 = vpack.c.bf16 %v4588_v50, %v4585_v26  ;;  %v4643_v19 = vld [vmem:[%s13019_s5 + $0xb30] sm:$0xff]  ;;  %v7422_v26 = vpack.c.bf16 %v4642_v44, %v4639_v40  ;;  %v4648_v63 = vld [vmem:[%s13019_s5 + $0xb58] sm:$0xff]  ;;  %v4706_v40 = vld [vmem:[%s13019_s5 + $0xd28] sm:$0xff] }
 0x4cb   : > { %v7420_v15 = vpack.c.bf16 %v4643_v19, %v4640_v61  ;;  %v7426_v58 = vpack.c.bf16 %v4648_v63, %v4645_v55  ;;  %v7460_v19 = vpack.c.bf16 %v4703_v25, %v4700_v41  ;;  %v4709_v44 = vld [vmem:[%s13019_s5 + $0xd40] sm:$0xff]  ;;  %v4712_v63 = vld [vmem:[%s13019_s5 + $0xd58] sm:$0xff]  ;;  %v5496_v41 = vld [vmem:[%s13021_s7 + $0x30] sm:$0xff] }
 0x4cc   : > { %v4729_v3 = vld [vmem:[%s13019_s5 + $0xde0] sm:$0xff]  ;;  %v4732_v0 = vld [vmem:[%s13019_s5 + $0xdf8] sm:$0xff] }
 0x4cd   : > { %7383 = vmatpush1.bf16.msra.mxu0 %v7382_v59  ;;  %v4646_v59 = vld [vmem:[%s13019_s5 + $0xb48] sm:$0xff]  ;;  %v5497_v25 = vld [vmem:[%s13021_s7 + $0x38] sm:$0xff] }
 0x4ce   : > { %7385 = vmatprep.subr.bf16.mxu0 %v7384_v49  ;;  %v4649_v49 = vld [vmem:[%s13019_s5 + $0xb60] sm:$0xff] }
 0x4cf   : > { %v7424_v50 = vpack.c.bf16 %v4649_v49, %v4646_v59  ;;  %v7464_v49 = vpack.c.bf16 %v4709_v44, %v4706_v40  ;;  %v4735_v40 = vld [vmem:[%s13019_s5 + $0xe10] sm:$0xff]  ;;  %v4738_v44 = vld [vmem:[%s13019_s5 + $0xe28] sm:$0xff] }
 0x4d1   : > { %7387 = vmatpush1.bf16.msra.mxu0 %v7386_v38  ;;  %v4652_v38 = vld [vmem:[%s13019_s5 + $0xb78] sm:$0xff] }
 0x4d2   : > { %7389 = vmatprep.subr.bf16.mxu0 %v7388_v36  ;;  %v4655_v36 = vld [vmem:[%s13019_s5 + $0xb90] sm:$0xff] }
 0x4d3   : > { %v7428_v16 = vpack.c.bf16 %v4655_v36, %v4652_v38  ;;  %v4715_v38 = vld [vmem:[%s13019_s5 + $0xd70] sm:$0xff] }
 0x4d4   : > { %v7468_v22 = vpack.c.bf16 %v4715_v38, %v4712_v63  ;;  %v5499_v63 = vld [vmem:[%s13021_s7 + $0x48] sm:$0xff]  ;;  %v5516_v38 = vld [vmem:[%s13021_s7 + $0xd0] sm:$0xff] }
 0x4d5   : > { %7391 = vmatpush1.bf16.msra.mxu0 %v7390_v39  ;;  %v4658_v39 = vld [vmem:[%s13019_s5 + $0xba8] sm:$0xff] }
 0x4d6   : > { %7393 = vmatprep.subr.bf16.mxu0 %v7392_v14  ;;  %v4661_v14 = vld [vmem:[%s13019_s5 + $0xbc0] sm:$0xff] }
 0x4d7   : > { %v7432_v56 = vpack.c.bf16 %v4661_v14, %v4658_v39  ;;  %v4714_v39 = vld [vmem:[%s13019_s5 + $0xd68] sm:$0xff] }
 0x4d8   : > { %v4718_v14 = vld [vmem:[%s13019_s5 + $0xd88] sm:$0xff]  ;;  %v7470_v60 = vpack.c.bf16 %v4714_v39, %v4711_v47  ;;  %v4741_v47 = vld [vmem:[%s13019_s5 + $0xe40] sm:$0xff]  ;;  %v4744_v39 = vld [vmem:[%s13019_s5 + $0xe58] sm:$0xff] }
 0x4d9   : > { %7395 = vmatpush1.bf16.msra.mxu0 %v7394_v54  ;;  %v4664_v54 = vld [vmem:[%s13019_s5 + $0xbd8] sm:$0xff] }
 0x4da   : > { %7397 = vmatprep.subr.bf16.mxu0 %v7396_v11  ;;  %v4667_v11 = vld [vmem:[%s13019_s5 + $0xbf0] sm:$0xff] }
 0x4db   : > { %v7436_v45 = vpack.c.bf16 %v4667_v11, %v4664_v54  ;;  %v4724_v54 = vld [vmem:[%s13019_s5 + $0xdb8] sm:$0xff]  ;;  %v4727_v11 = vld [vmem:[%s13019_s5 + $0xdd0] sm:$0xff] }
 0x4dc   : > { %v7476_v13 = vpack.c.bf16 %v4727_v11, %v4724_v54  ;;  %v5501_v54 = vld [vmem:[%s13021_s7 + $0x58] sm:$0xff]  ;;  %v5518_v11 = vld [vmem:[%s13021_s7 + $0xe0] sm:$0xff] }
 0x4dd   : > { %7399 = vmatpush1.bf16.msra.mxu0 %v7398_v27  ;;  %v4670_v27 = vld [vmem:[%s13019_s5 + $0xc08] sm:$0xff] }
 0x4de   : > { %7401 = vmatprep.subr.bf16.mxu0 %v7400_v51  ;;  %v4673_v51 = vld [vmem:[%s13019_s5 + $0xc20] sm:$0xff] }
 0x4df   : > { %v7440_v10 = vpack.c.bf16 %v4673_v51, %v4670_v27  ;;  %v5491_v51 = vld [vmem:[%s13021_s7 + $0x8] sm:$0xff] }
 0x4e0   : > { %v7666_v8 = vpack.c.bf16 %v5491_v51, %v5490_v5 }
 0x4e1   : > { %7403 = vmatpush1.bf16.msra.mxu0 %v7402_v9  ;;  %v4676_v9 = vld [vmem:[%s13019_s5 + $0xc38] sm:$0xff] }
 0x4e2   : > { %7405 = vmatprep.subr.bf16.mxu0 %v7404_v23  ;;  %v4679_v23 = vld [vmem:[%s13019_s5 + $0xc50] sm:$0xff] }
 0x4e3   : > { %v7444_v43 = vpack.c.bf16 %v4679_v23, %v4676_v9  ;;  %v5492_v9 = vld [vmem:[%s13021_s7 + $0x10] sm:$0xff]  ;;  %v5493_v23 = vld [vmem:[%s13021_s7 + $0x18] sm:$0xff] }
 0x4e5   : > { %7407 = vmatpush1.bf16.msra.mxu0 %v7406_v52  ;;  %v4682_v52 = vld [vmem:[%s13019_s5 + $0xc68] sm:$0xff] }
 0x4e6   : > { %7409 = vmatprep.subr.bf16.mxu0 %v7408_v35  ;;  %v4685_v35 = vld [vmem:[%s13019_s5 + $0xc80] sm:$0xff] }
 0x4e7   : > { %v7448_v57 = vpack.c.bf16 %v4685_v35, %v4682_v52  ;;  %v4723_v52 = vld [vmem:[%s13019_s5 + $0xdb0] sm:$0xff]  ;;  %v4726_v35 = vld [vmem:[%s13019_s5 + $0xdc8] sm:$0xff] }
 0x4e9   : > { %7411 = vmatpush1.bf16.msra.mxu0 %v7410_v2  ;;  %v4687_v2 = vld [vmem:[%s13019_s5 + $0xc90] sm:$0xff] }
 0x4ea   : > { %7413 = vmatprep.subr.bf16.mxu0 %v7412_v6  ;;  %v4690_v6 = vld [vmem:[%s13019_s5 + $0xca8] sm:$0xff] }
 0x4eb   : > { %v7454_v42 = vpack.c.bf16 %v4690_v6, %v4687_v2  ;;  %v7478_v2 = vpack.c.bf16 %v4726_v35, %v4723_v52  ;;  %v4753_v35 = vld [vmem:[%s13019_s5 + $0xea0] sm:$0xff] }
 0x4ed   : > { %7415 = vmatpush1.bf16.msra.mxu0 %v7414_v46  ;;  %v4693_v46 = vld [vmem:[%s13019_s5 + $0xcc0] sm:$0xff] }
 0x4ee   : > { %7417 = vmatprep.subr.bf16.mxu0 %v7416_v12  ;;  %v4696_v12 = vld [vmem:[%s13019_s5 + $0xcd8] sm:$0xff] }
 0x4ef   : > { %v7458_v61 = vpack.c.bf16 %v4696_v12, %v4693_v46  ;;  %v4739_v46 = vld [vmem:[%s13019_s5 + $0xe30] sm:$0xff] }
 0x4f1   : > { %7419 = vmatpush1.bf16.msra.mxu0 %v7418_v34  ;;  %v4699_v34 = vld [vmem:[%s13019_s5 + $0xcf0] sm:$0xff] }
 0x4f2   : > { %7421 = vmatprep.subr.bf16.mxu0 %v7420_v15  ;;  %v4702_v15 = vld [vmem:[%s13019_s5 + $0xd08] sm:$0xff] }
 0x4f3   : > { %v7462_v59 = vpack.c.bf16 %v4702_v15, %v4699_v34  ;;  %v7482_v34 = vpack.c.bf16 %v4732_v0, %v4729_v3  ;;  %v4759_v3 = vld [vmem:[%s13019_s5 + $0xed0] sm:$0xff]  ;;  %v4762_v0 = vld [vmem:[%s13019_s5 + $0xee8] sm:$0xff] }
 0x4f5   : > { %7423 = vmatpush1.bf16.msra.mxu0 %v7422_v26  ;;  %v4705_v26 = vld [vmem:[%s13019_s5 + $0xd20] sm:$0xff] }
 0x4f6   : > { %7425 = vmatprep.subr.bf16.mxu0 %v7424_v50  ;;  %v4708_v50 = vld [vmem:[%s13019_s5 + $0xd38] sm:$0xff] }
 0x4f9   : > { %7427 = vmatpush1.bf16.msra.mxu0 %v7426_v58 }
 0x4fa   : > { %7429 = vmatprep.subr.bf16.mxu0 %v7428_v16  ;;  %v7466_v16 = vpack.c.bf16 %v4708_v50, %v4705_v26  ;;  %v4745_v26 = vld [vmem:[%s13019_s5 + $0xe60] sm:$0xff] }
 0x4fd   : > { %7431 = vmatpush1.bf16.msra.mxu0 %v7430_v48  ;;  %v4721_v48 = vld [vmem:[%s13019_s5 + $0xda0] sm:$0xff] }
 0x4fe   : > { %7433 = vmatprep.subr.bf16.mxu0 %v7432_v56  ;;  %v4717_v56 = vld [vmem:[%s13019_s5 + $0xd80] sm:$0xff] }
 0x501   : > { %7435 = vmatpush1.bf16.msra.mxu0 %v7434_v18  ;;  %v7472_v18 = vpack.c.bf16 %v4721_v48, %v4718_v14  ;;  %v4748_v14 = vld [vmem:[%s13019_s5 + $0xe78] sm:$0xff] }
 0x502   : > { %7437 = vmatprep.subr.bf16.mxu0 %v7436_v45  ;;  %v5506_v45 = vld [vmem:[%s13021_s7 + $0x80] sm:$0xff] }
 0x503   : > { %v7664_v27 = vpack.c.bf16 %v5507_v17, %v5506_v45  ;;  %v12838_v45 = vld [vmem:[%s13020_s6] sm:$0x7]  ;;  %v13409_v17 = vld [vmem:[#allocation90_spill] sm:$0xff] }
 0x504   : > { %v4777_v5 = vsub.s32 2, %v13409_v17 }
 0x505   : > { %7439 = vmatpush1.bf16.msra.mxu0 %v7438_v32  ;;  %v5508_v32 = vld [vmem:[%s13021_s7 + $0x90] sm:$0xff]  ;;  %7665 = vmatprep.subr.bf16.mxu1 %v7664_v27  ;;  %v7490_v27 = vpack.c.bf16 %v4744_v39, %v4741_v47 }
 0x506   : > { %7441 = vmatprep.subr.bf16.mxu0 %v7440_v10  ;;  %v5509_v10 = vld [vmem:[%s13021_s7 + $0x98] sm:$0xff]  ;;  %7667 = vmatpush3.bf16.msra.mxu1 %v7666_v8  ;;  %v4754_v8 = vld [vmem:[%s13019_s5 + $0xea8] sm:$0xff] }
 0x507   : > { %v7668_v30 = vpack.c.bf16 %v5509_v10, %v5508_v32  ;;  %v4747_v32 = vld [vmem:[%s13019_s5 + $0xe70] sm:$0xff]  ;;  %v4750_v10 = vld [vmem:[%s13019_s5 + $0xe88] sm:$0xff] }
 0x508   : > { %6289 = vmatmul.mubr.msk.f32.vlgmr.msra.gmra.mrb[92].mxu0 %vm4274_vm5, %v4270_v4  ;;  %v7450_v4 = vpack.c.bf16 %v4684_v7, %v4681_v31  ;;  %v4733_v31 = vld [vmem:[%s13019_s5 + $0xe00] sm:$0xff] }
 0x509   : > { %7443 = vmatpush1.bf16.msra.mxu0 %v7442_v37  ;;  %6290 = vmatprep.mubr.msk.f32.mxu0 %vm4274_vm5, %v4273_v29  ;;  %v7452_v29 = vpack.c.bf16 %v4691_v53, %v4688_v24  ;;  %v5510_v37 = vld [vmem:[%s13021_s7 + $0xa0] sm:$0xff]  ;;  %v5495_v53 = vld [vmem:[%s13021_s7 + $0x28] sm:$0xff] }
 0x50a   : > { %7445 = vmatprep.subr.bf16.mxu0 %v7444_v43  ;;  %v7474_v43 = vpack.c.bf16 %v4720_v21, %v4717_v56  ;;  %7669 = vmatprep.subr.bf16.mxu1 %v7668_v30  ;;  %v7672_v7 = vpack.c.bf16 %v5511_v62, %v5510_v37  ;;  %v5494_v24 = vld [vmem:[%s13021_s7 + $0x20] sm:$0xff]  ;;  %v4751_v56 = vld [vmem:[%s13019_s5 + $0xe90] sm:$0xff]  ;;  %v4778_v62 = vrot.slane %v12838_v45, %v4777_v5  ;;  %v13413_v5 = vmov 0.0  }
 0x50b   : > { %v5500_v21 = vld [vmem:[%s13021_s7 + $0x50] sm:$0xff]  ;;  %v7492_v51 = vpack.c.bf16 %v4751_v56, %v4748_v14  ;;  %v5502_v37 = vld [vmem:[%s13021_s7 + $0x60] sm:$0xff]  ;;  %v5523_v56 = vld [vmem:[%s13021_s7 + $0x108] sm:$0xff] }
 0x50c   : > { %v7686_v30 = vpack.c.bf16 %v5501_v54, %v5500_v21 }
 0x50d   : > { %7447 = vmatpush1.bf16.msra.mxu0 %v7446_v33  ;;  %v4730_v33 = vld [vmem:[%s13019_s5 + $0xde8] sm:$0xff] }
 0x50e   : > { %7449 = vmatprep.subr.bf16.mxu0 %v7448_v57  ;;  %v7670_v57 = vpack.c.bf16 %v5493_v23, %v5492_v9  ;;  %v7480_v6 = vpack.c.bf16 %v4733_v31, %v4730_v33  ;;  %v4757_v9 = vld [vmem:[%s13019_s5 + $0xec0] sm:$0xff]  ;;  %v4756_v33 = vld [vmem:[%s13019_s5 + $0xeb8] sm:$0xff] }
 0x50f   : > { %v7496_v52 = vpack.c.bf16 %v4757_v9, %v4754_v8  ;;  %v5685_v9 = vld [vmem:[%s13023_s9 + $0x8] sm:$0xff] }
 0x510   : > { %7671 = vmatpush3.bf16.msra.mxu1 %v7670_v57 }
 0x511   : > { %7451 = vmatpush1.bf16.msra.mxu0 %v7450_v4  ;;  %v5512_v4 = vld [vmem:[%s13021_s7 + $0xb0] sm:$0xff]  ;;  %7673 = vmatprep.subr.bf16.mxu1 %v7672_v7  ;;  %v4760_v7 = vld [vmem:[%s13019_s5 + $0xed8] sm:$0xff] }
 0x512   : > { %7453 = vmatprep.subr.bf16.mxu0 %v7452_v29  ;;  %v5513_v29 = vld [vmem:[%s13021_s7 + $0xb8] sm:$0xff] }
 0x513   : > { %v7676_v12 = vpack.c.bf16 %v5513_v29, %v5512_v4 }
 0x515   : > { %7455 = vmatpush1.bf16.msra.mxu0 %v7454_v42  ;;  %v4736_v42 = vld [vmem:[%s13019_s5 + $0xe18] sm:$0xff] }
 0x516   : > { %7457 = vmatprep.subr.bf16.mxu0 %v7456_v28  ;;  %v7674_v28 = vpack.c.bf16 %v5495_v53, %v5494_v24  ;;  %v7484_v15 = vpack.c.bf16 %v4739_v46, %v4736_v42  ;;  %v4763_v24 = vld [vmem:[%s13019_s5 + $0xef0] sm:$0xff] }
 0x518   : > { %7675 = vmatpush3.bf16.msra.mxu1 %v7674_v28  ;;  %v7502_v28 = vpack.c.bf16 %v4762_v0, %v4759_v3 }
 0x519   : > { %7459 = vmatpush1.bf16.msra.mxu0 %v7458_v61  ;;  %v5514_v61 = vld [vmem:[%s13021_s7 + $0xc0] sm:$0xff]  ;;  %7677 = vmatprep.subr.bf16.mxu1 %v7676_v12 }
 0x51a   : > { %7461 = vmatprep.subr.bf16.mxu0 %v7460_v19  ;;  %v5515_v19 = vld [vmem:[%s13021_s7 + $0xc8] sm:$0xff] }
 0x51b   : > { %v6344_v55 = vpop.f32.mrb[140].mxu1  ;;  %v7680_v50 = vpack.c.bf16 %v5515_v19, %v5514_v61 }
 0x51c   : > { %v6345_v36 = vpop.f32.mrb[141].mxu1 }
 0x51d   : > { %7463 = vmatpush1.bf16.msra.mxu0 %v7462_v59  ;;  %v12683_v58 = vadd.f32 %v6345_v36, %v6344_v55  ;;  %v4742_v59 = vld [vmem:[%s13019_s5 + $0xe48] sm:$0xff]  ;;  %v5498_v55 = vld [vmem:[%s13021_s7 + $0x40] sm:$0xff]  ;;  %v5517_v36 = vld [vmem:[%s13021_s7 + $0xd8] sm:$0xff] }
 0x51e   : > { %7465 = vmatprep.subr.bf16.mxu0 %v7464_v49  ;;  %v7678_v49 = vpack.c.bf16 %v5497_v25, %v5496_v41  ;;  %v7682_v48 = vpack.c.bf16 %v5499_v63, %v5498_v55  ;;  %v13410_v63 = vmov 0.0|0.0  }
 0x51f   : > { %v5204_v4 = vadd.f32 %v12683_v58, %v4778_v62 }
 0x520   : > { %7679 = vmatpush3.bf16.msra.mxu1 %v7678_v49 }
 0x521   : > { %7467 = vmatpush1.bf16.msra.mxu0 %v7466_v16  ;;  %v7486_v16 = vpack.c.bf16 %v4738_v44, %v4735_v40  ;;  %7681 = vmatprep.subr.bf16.mxu1 %v7680_v50  ;;  %v5521_v40 = vld [vmem:[%s13021_s7 + $0xf8] sm:$0xff] }
 0x522   : > { %7469 = vmatprep.subr.bf16.mxu0 %v7468_v22  ;;  %v7488_v22 = vpack.c.bf16 %v4745_v26, %v4742_v59  ;;  %v5505_v59 = vld [vmem:[%s13021_s7 + $0x78] sm:$0xff] }
 0x524   : > { %7683 = vmatpush3.bf16.msra.mxu1 %v7682_v48  ;;  %v5522_v48 = vld [vmem:[%s13021_s7 + $0x100] sm:$0xff] }
 0x525   : > { %7471 = vmatpush1.bf16.msra.mxu0 %v7470_v60  ;;  %v7684_v60 = vpack.c.bf16 %v5517_v36, %v5516_v38  ;;  %v13411_v38 = vsub.s32 0, %v13409_v17  ;;  %v7697_v54 = vpack.c.bf16 %v5523_v56, %v5522_v48 }
 0x526   : > { %7473 = vmatprep.subr.bf16.mxu0 %v7472_v18  ;;  %v5519_v18 = vld [vmem:[%s13021_s7 + $0xe8] sm:$0xff] }
 0x527   : > { %7685 = vmatprep.subr.bf16.mxu1 %v7684_v60  ;;  %v7688_v23 = vpack.c.bf16 %v5519_v18, %v5518_v11  ;;  %v4770_v36 = vrot.slane %v12838_v45, %v13411_v38  ;;  %v5524_v18 = vld [vmem:[%s13021_s7 + $0x110] sm:$0xff] }
 0x528   : > { %7687 = vmatpush3.bf16.msra.mxu1 %v7686_v30  ;;  %v5684_v30 = vld [vmem:[%s13023_s9] sm:$0xff] }
 0x529   : > { %7475 = vmatpush1.bf16.msra.mxu0 %v7474_v43  ;;  %v5503_v43 = vld [vmem:[%s13021_s7 + $0x68] sm:$0xff]  ;;  %7689 = vmatprep.subr.bf16.mxu1 %v7688_v23  ;;  %v7707_v23 = vpack.c.bf16 %v5685_v9, %v5684_v30 }
 0x52a   : > { %7477 = vmatprep.subr.bf16.mxu0 %v7476_v13  ;;  %v7494_v13 = vpack.c.bf16 %v4750_v10, %v4747_v32  ;;  %v7690_v57 = vpack.c.bf16 %v5503_v43, %v5502_v37  ;;  %v5686_v37 = vld [vmem:[%s13023_s9 + $0x10] sm:$0xff]  ;;  %v5687_v43 = vld [vmem:[%s13023_s9 + $0x18] sm:$0xff] }
 0x52b   : > { %v7710_v62 = vpack.c.bf16 %v5687_v43, %v5686_v37 }
 0x52c   : > { %7691 = vmatpush3.bf16.msra.mxu1 %v7690_v57  ;;  %v5691_v57 = vld [vmem:[%s13023_s9 + $0x38] sm:$0xf] }
 0x52d   : > { %7479 = vmatpush1.bf16.msra.mxu0 %v7478_v2  ;;  %v7498_v2 = vpack.c.bf16 %v4756_v33, %v4753_v35  ;;  %v5690_v33 = vld [vmem:[%s13023_s9 + $0x30] sm:$0xff] }
 0x52e   : > { %7481 = vmatprep.subr.bf16.mxu0 %v7480_v6  ;;  %v7500_v6 = vpack.c.bf16 %v4763_v24, %v4760_v7 }
 0x531   : > { %7483 = vmatpush1.bf16.msra.mxu0 %v7482_v34 }
 0x532   : > { %7485 = vmatprep.subr.bf16.mxu0 %v7484_v15  ;;  %v5520_v15 = vld [vmem:[%s13021_s7 + $0xf0] sm:$0xff] }
 0x533   : > { %v7692_v20 = vpack.c.bf16 %v5521_v40, %v5520_v15 }
 0x535   : > { %7487 = vmatpush1.bf16.msra.mxu0 %v7486_v16  ;;  %7693 = vmatprep.subr.bf16.mxu1 %v7692_v20  ;;  %v13412_v16 = vsub.s32 1, %v13409_v17 }
 0x536   : > { %7489 = vmatprep.subr.bf16.mxu0 %v7488_v22 }
 0x537   : > { %v4774_v22 = vrot.slane %v12838_v45, %v13412_v16  ;;  %v5525_v45 = vld [vmem:[%s13021_s7 + $0x118] sm:$0xff] }
 0x538   : > { %v7700_v17 = vpack.c.bf16 %v5525_v45, %v5524_v18 }
 0x539   : > { %7491 = vmatpush1.bf16.msra.mxu0 %v7490_v27  ;;  %v5526_v27 = vld [vmem:[%s13021_s7 + $0x120] sm:$0xff] }
 0x53a   : > { %7493 = vmatprep.subr.bf16.mxu0 %v7492_v51  ;;  %v5527_v51 = vld [vmem:[%s13021_s7 + $0x128] sm:$0xf] }
 0x53b   : > { %v6379_v31 = vpop.f32.mrb[142].mxu1  ;;  %v7703_v32 = vpack.c.bf16 %v5527_v51, %v5526_v27 }
 0x53c   : > { %v6380_v53 = vpop.f32.mrb[143].mxu1 }
 0x53d   : > { %v6381_v29 = vadd.f32 %v6380_v53, %v6379_v31  ;;  %7495 = vmatpush1.bf16.msra.mxu0 %v7494_v13  ;;  %v5688_v13 = vld [vmem:[%s13023_s9 + $0x20] sm:$0xff]  ;;  %v7716_v31 = vpack.c.bf16 %v5691_v57, %v5690_v33 }
 0x53e   : > { %7497 = vmatprep.subr.bf16.mxu0 %v7496_v52  ;;  %v5689_v52 = vld [vmem:[%s13023_s9 + $0x28] sm:$0xff] }
 0x53f   : > { %v5274_v42 = vadd.f32 %v6381_v29, %v5204_v4  ;;  %v7713_v35 = vpack.c.bf16 %v5689_v52, %v5688_v13  ;;  %v6302_v4 = vld [vmem:[%s13022_s8] ss:$0 sm:$0xff] }
 0x541   : > { %7499 = vmatpush1.bf16.msra.mxu0 %v7498_v2 }
 0x542   : > { %7501 = vmatprep.subr.bf16.mxu0 %v7500_v6 }
 0x545   : > { %7503 = vmatpush1.bf16.msra.mxu0 %v7502_v28 }
 0x548   : > { %6291 = vmatmul.mubr.msk.f32.vlgmr.msra.gmra.mrb[92].mxu0 %vm4274_vm5, %v4272_v1  ;;  %v5504_v1 = vld [vmem:[%s13021_s7 + $0x70] sm:$0xff] }
 0x549   : > { %v7694_v26 = vpack.c.bf16 %v5505_v59, %v5504_v1 }
 0x54b   : > { %7695 = vmatpush3.bf16.msra.mxu1 %v7694_v26 }
 0x54c   : > { %7696 = vmatprep.subr.bf16.mxu1 %v13410_v63 }
 0x55b   : > { %v6414_v58 = vpop.f32.mrb[144].mxu1 }
 0x55c   : > { %v6415_v46 = vpop.f32.mrb[145].mxu1 }
 0x55d   : > { %v6416_v12 = vadd.f32 %v6415_v46, %v6414_v58 }
 0x55f   : > { %v5344_v41 = vadd.f32 %v6416_v12, %v5274_v42  ;;  %v6305_v42 = vld [vmem:[%s13024_s10] ss:$0 sm:$0xff] }
 0x57c   : > { %v6449_v25 = vpop.f32.mrb[146].mxu1 }
 0x57d   : > { %v6450_v61 = vpop.f32.mrb[147].mxu1 }
 0x57e   : > { %v6451_v19 = vadd.f32 %v6450_v61, %v6449_v25 }
 0x580   : > { %v5414_v34 = vadd.f32 %v6451_v19, %v5344_v41 }
 0x59c   : > { %v6484_v44 = vpop.f32.mrb[148].mxu1 }
 0x59d   : > { %v6485_v49 = vpop.f32.mrb[149].mxu1 }
 0x59e   : > { %v6486_v50 = vadd.f32 %v6485_v49, %v6484_v44 }
 0x5a0   : > { %v5484_v55 = vadd.f32 %v6486_v50, %v5414_v34 }
 0x5a2   : > { %v5489_v8 = vmax.f32 %v5484_v55, 0.0 }
 0x61b   : > { %v5132_v47 = vpop.f32.mrb[92].mxu0 }
 0x61c   : > { %v7719_v39 = vadd.f32 %v5132_v47, %v4770_v36  ;;  %v5134_v14 = vpop.f32.mrb[93].mxu0 }
 0x61d   : > { %v7720_v60 = vadd.f32 %v5134_v14, %v4774_v22 }
 0x61e   : > { %v5487_v11 = vmax.f32 %v7719_v39, 0.0 }
 0x61f   : > { %v5488_v21 = vmax.f32 %v7720_v60, 0.0 }
 0x621   : > { %5607 = vmatprep.mubr.f32.mxu1 %v5488_v21 }
 0x622   : > { %5608 = vmatmul.mubr.f32.vlgmr.msra.gmra.mrb[150].mxu1 %v5487_v11 }
 0x623   : > { %7698 = vmatpush3.bf16.msra.mxu1 %v7697_v54  ;;  %6550 = vmatprep.mubr.msk.f32.mxu1 %vm8004_vm6, %v13413_v5 }
 0x624   : > { %7699 = vmatprep.subr.bf16.mxu1 %v13410_v63 }
 0x627   : > { %7701 = vmatpush3.bf16.msra.mxu1 %v7700_v17 }
 0x628   : > { %7702 = vmatprep.subr.bf16.mxu1 %v13410_v63 }
 0x62b   : > { %7705 = vmatpush3.bf16.msk.msra.mxu1 %vm12923_vm9, %v7703_v32 }
 0x62c   : > { %7706 = vmatprep.subr.bf16.mxu1 %v13410_v63 }
 0x62e   : > { %6551 = vmatmul.mubr.msk.f32.vlgmr.msra.gmra.mrb[152].mxu1 %vm5535_vm10, %v5489_v8 }
 0x62f   : > { %6569 = vmatprep.mubr.msk.f32.mxu1 %vm8004_vm6, %v13413_v5  ;;  %7708 = vmatpush3.bf16.msra.mxu1 %v7707_v23 }
 0x630   : > { %7709 = vmatprep.subr.bf16.mxu1 %v13410_v63 }
 0x633   : > { %7711 = vmatpush3.bf16.msra.mxu1 %v7710_v62 }
 0x634   : > { %7712 = vmatprep.subr.bf16.mxu1 %v13410_v63 }
 0x637   : > { %7714 = vmatpush3.bf16.msra.mxu1 %v7713_v35 }
 0x638   : > { %7715 = vmatprep.subr.bf16.mxu1 %v13410_v63 }
 0x63b   : > { %7718 = vmatpush3.bf16.msk.msra.mxu1 %vm12923_vm9, %v7716_v31 }
 0x6f5   : > { %v6519_v7 = vpop.f32.mrb[150].mxu1 }
 0x6f6   : > { %v6520_v24 = vpop.f32.mrb[151].mxu1 }
 0x6f7   : > { %v6521_v53 = vadd.f32 %v6520_v24, %v6519_v7 }
 0x6f9   : > { %v5610_v29 = vadd.f32 %v6521_v53, %v6302_v4 }
 0x701   : > { %v5679_v2 = vpop.f32.mrb[152].mxu1 }
 0x702   : > { %v5680_v6 = vadd.f32 %v5679_v2, %v5610_v29  ;;  %v6552_v3 = vpop.f32.mrb[153].mxu1 }
 0x704   : > { %v5683_v0 = vmax.f32 %v5680_v6, 0.0 }
 0x706   : > { %6570 = vmatmul.mubr.msk.f32.vlgmr.msra.gmra.mrb[154].mxu1 %vm5699_vm11, %v5683_v0 }
 0x7d9   : > { %v5772_v28 = vpop.f32.mrb[154].mxu1 }
 0x7da   : > { %v5773_v58 = vadd.f32 %v6305_v42, %v5772_v28  ;;  %v6571_v46 = vpop.f32.mrb[155].mxu1 }
 0x7dc   : > { %5777 = vst.msk [vmem:[%s379_s15] sm:$0xff] %vm5776_vm12, %v5773_v58 }
 0x7dd   : > { %7949 = shalt.err (!%p7946_p3)
}
 0x7de   : > { %s7950_s14 = scalar_lea.hbm %s12972_s30, 128  ;;  %s7954_s15 = scalar_lea.hbm %s13025_s11, 256 }
 0x7df   : > { %p7951_p4 = scmp.ne.s32.totalorder %s12972_s30, %s7950_s14  ;;  %p7955_p9 = scmp.lt.u32.totalorder %s12972_s30, %s13025_s11 }
 0x7e0   : > { %p7956_p10 = scmp.lt.u32.totalorder %s7954_s15, %s7950_s14  ;;  %p7958_p12 = scmp.lt.u32.totalorder %s7950_s14, %s12972_s30 }
 0x7e1   : > { %p7952_p7 = pnand %p7951_p4, %p8105_p5 }
 0x7e2   : > { %p7957_p11 = por %p7956_p10, %p7955_p9 }
 0x7e3   : > { %p7953_p8 = pneg %p7952_p7 }
 0x7e4   : > { %p7959_p13 = por %p7958_p12, %p7957_p11 }
 0x7e6   : > { %p7960_p0 = pnand %p7959_p13, %p7953_p8 }
 0x7e8   : > { %7963 = shalt.err (!%p7960_p0)
}
 0x7e9   : > { %7890 = dma.vmem_to_hbm [thread:$0]  (%p8105_p5), %s12974_s19, 128, %s12972_s30, %s5779_s12  }
 0x7ea PF: > { %p7896_p1 = scmp.ge.s32.totalorder %s7998_s20, 2  ;;  %s5804_s13 = sand.u32 1, %s7986_s17  }
 0x7eb   : > { %s5805_s21 = scalar_lea.sflag [#allocation3], %s5804_s13 }
 0x7ec   : > { %p7893_p2 = pnand %p7896_p1, %p8109_p6 }
 0x7ee   : > { %7981 = dma.done.wait (!%p7893_p2), %s5805_s21, 128  }
 0x7ef   : > { %7983 = vsyncadd (!%p7893_p2), %s5805_s21, 4294967168  ;;  %s13416_s22 = sld [smem:[#allocation5_spill]]  ;;  %s13417_s19 = sld [smem:[#allocation6_spill]] }
 0x7f0   : > { %p21_p3 = scmp.ge.s32.totalorder %s8092_s23, 4   ;;  %s13418_s17 = smov %s7990_s18 }
 0x7f1   : > { %s13420_s20 = smov %s8092_s23 }
 0x7f2   :  { %23 = sbr.rel (!%p21_p3) target bundleno = 3 (0x3), region = 106 }
 0x7f5   : > { %s13419_s18 = smov %s13416_s22 }
 0x7f9   :  { %5810 = vsyncpa [#allocation3], 1 }
 0x7fa   :  { %5812 = vsyncpa [#allocation3 + $0x1], 1 }

</bundles_post_ra>
